<compile_context>
chip_gen: v7x
topology: tpu7x:2x2x1
jax: 0.10.0
libtpu: 0.0.40
codegen_flags: <defaults>
</compile_context>

<pallas_src>
import jax
import jax.numpy as jnp
from jax.experimental import pallas as pl
from jax.experimental.pallas import tpu as pltpu

LANE = 128


def _round_up(x, m):
    return (x + m - 1) // m * m


# ----------------------------------------------------------------------------
# Pallas kernels
# ----------------------------------------------------------------------------
def _conv_relu_pool_kernel(s00_ref, s01_ref, s10_ref, s11_ref, w_ref, b_ref, o_ref):
    """Fused im2col-GEMM + bias + ReLU + 2x2 maxpool.

    Each s*_ref holds the im2col rows of one pool tap (dy, dx) in (n, ph, pw)
    row order.  Pool = elementwise max of the four MXU results (valid because
    the bias is shared across the window and ReLU/max commute).
    """
    w = w_ref[...]
    d00 = jnp.dot(s00_ref[...], w, preferred_element_type=jnp.float32)
    d01 = jnp.dot(s01_ref[...], w, preferred_element_type=jnp.float32)
    d10 = jnp.dot(s10_ref[...], w, preferred_element_type=jnp.float32)
    d11 = jnp.dot(s11_ref[...], w, preferred_element_type=jnp.float32)
    m = jnp.maximum(jnp.maximum(d00, d01), jnp.maximum(d10, d11))
    o_ref[...] = jnp.maximum(m + b_ref[...], 0.0).astype(o_ref.dtype)


def _mlp_kernel(x_ref, w1_ref, b1_ref, w2_ref, b2_ref, w3_ref, b3_ref, o_ref):
    """fc1 -> ReLU -> fc2 -> ReLU -> fc3, all weights resident in VMEM."""
    h1 = jnp.dot(x_ref[...], w1_ref[...], preferred_element_type=jnp.float32)
    h1 = jnp.maximum(h1 + b1_ref[...], 0.0)
    h2 = jnp.dot(h1.astype(jnp.bfloat16), w2_ref[...],
                 preferred_element_type=jnp.float32)
    h2 = jnp.maximum(h2 + b2_ref[...], 0.0)
    h3 = jnp.dot(h2.astype(jnp.bfloat16), w3_ref[...],
                 preferred_element_type=jnp.float32)
    o_ref[...] = (h3 + b3_ref[...]).astype(o_ref.dtype)


# ----------------------------------------------------------------------------
# Wrappers
# ----------------------------------------------------------------------------
def conv2d_relu_pool(x_nhwc, w_mat, b_row, *, KH=5, KW=5, max_tm=512):
    """relu(conv2d(x) + b) followed by 2x2/2 maxpool, fused in one kernel.

    x_nhwc : (N, H, W, C)   channels-last, any C
    w_mat  : (Kp, OCp)      (kh, kw, ic)-ordered, zero-padded to 128 multiples
    b_row  : (1, OCp)       f32
    returns: (N, OH//2, OW//2, OCp)  bf16, lanes >= real OC are exact zeros
    """
    x_nhwc = x_nhwc.astype(jnp.bfloat16)
    N, H, W, C = x_nhwc.shape
    OH, OW = H - KH + 1, W - KW + 1
    assert OH % 2 == 0 and OW % 2 == 0, "2x2 pool requires even conv output"
    PH, PW = OH // 2, OW // 2
    K = KH * KW * C
    Kp = _round_up(K, LANE)
    OCp = w_mat.shape[1]
    assert w_mat.shape[0] == Kp

    # im2col, (kh, kw, c)-ordered columns, channels-last input (no transposes).
    cols = jnp.concatenate(
        [x_nhwc[:, i:i + OH, j:j + OW, :] for i in range(KH) for j in range(KW)],
        axis=-1)                                            # (N, OH, OW, K)
    if Kp != K:
        cols = jnp.pad(cols, ((0, 0), (0, 0), (0, 0), (0, Kp - K)))

    # Four pool-tap sub-matrices, rows ordered (n, ph, pw).
    M = N * PH * PW
    subs = [cols[:, dy::2, dx::2, :].reshape(M, Kp)
            for dy in (0, 1) for dx in (0, 1)]

    # Tile rows only when there is enough work; pad M to the tile size.
    if M <= max_tm:
        tm, Mp = M, M
    else:
        tm = max_tm
        Mp = _round_up(M, tm)
        subs = [jnp.pad(s, ((0, Mp - M), (0, 0))) for s in subs]

    out = pl.pallas_call(
        _conv_relu_pool_kernel,
        out_shape=jax.ShapeDtypeStruct((Mp, OCp), jnp.bfloat16),
        grid=(Mp // tm,),
        in_specs=[pl.BlockSpec((tm, Kp), lambda i: (i, 0))] * 4
        + [pl.BlockSpec((Kp, OCp), lambda i: (0, 0)),
           pl.BlockSpec((1, OCp), lambda i: (0, 0))],
        out_specs=pl.BlockSpec((tm, OCp), lambda i: (i, 0)),
        compiler_params=pltpu.CompilerParams(dimension_semantics=("parallel",)),
    )(*subs, w_mat, b_row)

    if Mp != M:
        out = out[:M]
    return out.reshape(N, PH, PW, OCp)


def mlp_fused(x, w1, b1, w2, b2, w3, b3):
    """Single pallas_call for fc1 -> ReLU -> fc2 -> ReLU -> fc3."""
    Nb, K1 = x.shape
    H1, H2, H3 = w1.shape[1], w2.shape[1], w3.shape[1]
    return pl.pallas_call(
        _mlp_kernel,
        out_shape=jax.ShapeDtypeStruct((Nb, H3), jnp.float32),
        grid=(1,),
        in_specs=[
            pl.BlockSpec((Nb, K1), lambda i: (0, 0)),
            pl.BlockSpec((K1, H1), lambda i: (0, 0)),
            pl.BlockSpec((1, H1), lambda i: (0, 0)),
            pl.BlockSpec((H1, H2), lambda i: (0, 0)),
            pl.BlockSpec((1, H2), lambda i: (0, 0)),
            pl.BlockSpec((H2, H3), lambda i: (0, 0)),
            pl.BlockSpec((1, H3), lambda i: (0, 0)),
        ],
        out_specs=pl.BlockSpec((Nb, H3), lambda i: (0, 0)),
    )(x.astype(jnp.bfloat16), w1, b1, w2, b2, w3, b3)


# ----------------------------------------------------------------------------
# Parameters: PyTorch-layout init, then one-time pad/permute/cast for the TPU
# ----------------------------------------------------------------------------
def _uniform(key, shape, fan_in):
    k = 1.0 / jnp.sqrt(jnp.float32(fan_in))
    return jax.random.uniform(key, shape, jnp.float32, -k, k)


def init_params(key):
    ks = jax.random.split(key, 10)
    p = {}
    p["conv1_w"] = _uniform(ks[0], (6, 3, 5, 5), 3 * 5 * 5)
    p["conv1_b"] = _uniform(ks[1], (6,), 3 * 5 * 5)
    p["conv2_w"] = _uniform(ks[2], (16, 6, 5, 5), 6 * 5 * 5)
    p["conv2_b"] = _uniform(ks[3], (16,), 6 * 5 * 5)
    p["fc1_w"] = _uniform(ks[4], (120, 16 * 5 * 5), 16 * 5 * 5)
    p["fc1_b"] = _uniform(ks[5], (120,), 16 * 5 * 5)
    p["fc2_w"] = _uniform(ks[6], (84, 120), 120)
    p["fc2_b"] = _uniform(ks[7], (84,), 120)
    p["fc3_w"] = _uniform(ks[8], (10, 84), 84)
    p["fc3_b"] = _uniform(ks[9], (10,), 84)
    return p


def prepare_params(p):
    """Pad to lane-dense 128-multiples, reorder to the kernel layouts, cast."""
    def conv_mat(w, b, ocp=LANE):
        OC, IC, KH, KW = w.shape
        K = KH * KW * IC
        Kp = _round_up(K, LANE)
        wm = jnp.transpose(w, (2, 3, 1, 0)).reshape(K, OC)   # (kh,kw,ic) x oc
        wm = jnp.pad(wm, ((0, Kp - K), (0, ocp - OC))).astype(jnp.bfloat16)
        bm = jnp.pad(b, (0, ocp - OC)).reshape(1, ocp).astype(jnp.float32)
        return wm, bm

    q = {}
    q["c1_w"], q["c1_b"] = conv_mat(p["conv1_w"], p["conv1_b"])
    q["c2_w"], q["c2_b"] = conv_mat(p["conv2_w"], p["conv2_b"])

    # fc1: permute columns from PyTorch's NCHW flatten (c*25 + h*5 + w) to our
    # channels-last, lane-padded flatten ((h*5 + w)*128 + c), then pad.
    w1 = p["fc1_w"].reshape(120, 16, 5, 5).transpose(2, 3, 1, 0)   # (5,5,16,120)
    w1 = w1.reshape(25, 16, 120)
    w1 = jnp.pad(w1, ((0, 0), (0, LANE - 16), (0, LANE - 120)))    # (25,128,128)
    q["fc1_w"] = w1.reshape(25 * LANE, LANE).astype(jnp.bfloat16)
    q["fc1_b"] = jnp.pad(p["fc1_b"], (0, LANE - 120)).reshape(1, LANE).astype(jnp.float32)

    q["fc2_w"] = jnp.pad(p["fc2_w"].T, ((0, LANE - 120), (0, LANE - 84))).astype(jnp.bfloat16)
    q["fc2_b"] = jnp.pad(p["fc2_b"], (0, LANE - 84)).reshape(1, LANE).astype(jnp.float32)

    q["fc3_w"] = jnp.pad(p["fc3_w"].T, ((0, LANE - 84), (0, LANE - 10))).astype(jnp.bfloat16)
    q["fc3_b"] = jnp.pad(p["fc3_b"], (0, LANE - 10)).reshape(1, LANE).astype(jnp.float32)
    return q


# ----------------------------------------------------------------------------
# Full forward (mirrors Net.forward)
# ----------------------------------------------------------------------------
def net_forward(params, x_nchw):
    N = x_nchw.shape[0]
    x = jnp.transpose(x_nchw, (0, 2, 3, 1))                        # NCHW -> NHWC once
    y1 = conv2d_relu_pool(x, params["c1_w"], params["c1_b"])       # (N,14,14,128)
    y1 = y1[..., :6]                                               # real channels only
    y2 = conv2d_relu_pool(y1, params["c2_w"], params["c2_b"])      # (N,5,5,128)
    feat = y2.reshape(N, 5 * 5 * LANE)                             # lane-padded flatten
    logits = mlp_fused(feat,
                       params["fc1_w"], params["fc1_b"],
                       params["fc2_w"], params["fc2_b"],
                       params["fc3_w"], params["fc3_b"])           # (N,128)
    return logits[:, :10]


if __name__ == "__main__":
    key = jax.random.PRNGKey(0)
    k_params, k_x = jax.random.split(key)
    params = prepare_params(init_params(k_params))
    # Net requires 32x32 spatial input (16*5*5 flatten); batch kept small.
    x = jax.random.normal(k_x, (2, 3, 32, 32), jnp.float32)

    fwd = jax.jit(net_forward)
    out = jax.block_until_ready(fwd(params, x))
    assert out.shape == (2, 10), out.shape
    assert out.dtype == jnp.float32
    assert bool(jnp.all(jnp.isfinite(out)))
    print("KERNEL_OK")
</pallas_src>

<mosaic_0001>
module attributes {stable_mosaic.version = 11 : i64} {
  func.func @_conv_relu_pool_kernel(%arg0: i32, %arg1: memref<392x128xbf16, #tpu.memory_space<vmem>>, %arg2: memref<392x128xbf16, #tpu.memory_space<vmem>>, %arg3: memref<392x128xbf16, #tpu.memory_space<vmem>>, %arg4: memref<392x128xbf16, #tpu.memory_space<vmem>>, %arg5: memref<128x128xbf16, #tpu.memory_space<vmem>>, %arg6: memref<1x128xf32, #tpu.memory_space<vmem>>, %arg7: memref<392x128xbf16, #tpu.memory_space<vmem>>) attributes {dimension_semantics = [#tpu.dimension_semantics<parallel>], iteration_bounds = array<i64: 1>, scalar_prefetch = 0 : i64, scratch_operands = 0 : i64, tpu.core_type = #tpu.core_type<tc>, window_params = [{transform_indices = @transform_0, window_bounds = array<i64: 392, 128>}, {transform_indices = @transform_1, window_bounds = array<i64: 392, 128>}, {transform_indices = @transform_2, window_bounds = array<i64: 392, 128>}, {transform_indices = @transform_3, window_bounds = array<i64: 392, 128>}, {pipeline_mode = #tpu.pipeline_mode<synchronous>, transform_indices = @transform_4, window_bounds = array<i64: 128, 128>}, {pipeline_mode = #tpu.pipeline_mode<synchronous>, transform_indices = @transform_5, window_bounds = array<i64: 1, 128>}, {transform_indices = @transform_6, window_bounds = array<i64: 392, 128>}]} {
    %c0 = arith.constant 0 : index
    %c0_0 = arith.constant 0 : index
    %0 = vector.load %arg5[%c0, %c0_0] : memref<128x128xbf16, #tpu.memory_space<vmem>>, vector<128x128xbf16>
    %c0_1 = arith.constant 0 : index
    %c0_2 = arith.constant 0 : index
    %1 = vector.load %arg1[%c0_1, %c0_2] : memref<392x128xbf16, #tpu.memory_space<vmem>>, vector<392x128xbf16>
    %cst = arith.constant dense<0.000000e+00> : vector<392x128xf32>
    %2 = tpu.matmul %1, %0, %cst {dimension_numbers = #tpu.dot_dimension_numbers<[1], [0], [0], [1], [0, 0, 1, 1], [], []>} : vector<392x128xbf16>, vector<128x128xbf16>, vector<392x128xf32> -> vector<392x128xf32>
    %c0_3 = arith.constant 0 : index
    %c0_4 = arith.constant 0 : index
    %3 = vector.load %arg2[%c0_3, %c0_4] : memref<392x128xbf16, #tpu.memory_space<vmem>>, vector<392x128xbf16>
    %cst_5 = arith.constant dense<0.000000e+00> : vector<392x128xf32>
    %4 = tpu.matmul %3, %0, %cst_5 {dimension_numbers = #tpu.dot_dimension_numbers<[1], [0], [0], [1], [0, 0, 1, 1], [], []>} : vector<392x128xbf16>, vector<128x128xbf16>, vector<392x128xf32> -> vector<392x128xf32>
    %c0_6 = arith.constant 0 : index
    %c0_7 = arith.constant 0 : index
    %5 = vector.load %arg3[%c0_6, %c0_7] : memref<392x128xbf16, #tpu.memory_space<vmem>>, vector<392x128xbf16>
    %cst_8 = arith.constant dense<0.000000e+00> : vector<392x128xf32>
    %6 = tpu.matmul %5, %0, %cst_8 {dimension_numbers = #tpu.dot_dimension_numbers<[1], [0], [0], [1], [0, 0, 1, 1], [], []>} : vector<392x128xbf16>, vector<128x128xbf16>, vector<392x128xf32> -> vector<392x128xf32>
    %c0_9 = arith.constant 0 : index
    %c0_10 = arith.constant 0 : index
    %7 = vector.load %arg4[%c0_9, %c0_10] : memref<392x128xbf16, #tpu.memory_space<vmem>>, vector<392x128xbf16>
    %cst_11 = arith.constant dense<0.000000e+00> : vector<392x128xf32>
    %8 = tpu.matmul %7, %0, %cst_11 {dimension_numbers = #tpu.dot_dimension_numbers<[1], [0], [0], [1], [0, 0, 1, 1], [], []>} : vector<392x128xbf16>, vector<128x128xbf16>, vector<392x128xf32> -> vector<392x128xf32>
    %9 = arith.maximumf %2, %4 : vector<392x128xf32>
    %10 = arith.maximumf %6, %8 : vector<392x128xf32>
    %11 = arith.maximumf %9, %10 : vector<392x128xf32>
    %c0_12 = arith.constant 0 : index
    %c0_13 = arith.constant 0 : index
    %12 = vector.load %arg6[%c0_12, %c0_13] : memref<1x128xf32, #tpu.memory_space<vmem>>, vector<1x128xf32>
    %13 = vector.broadcast %12 : vector<1x128xf32> to vector<392x128xf32>
    %14 = arith.addf %11, %13 : vector<392x128xf32>
    %cst_14 = arith.constant 0.000000e+00 : f32
    %15 = vector.broadcast %cst_14 : f32 to vector<392x128xf32>
    %16 = arith.maximumf %14, %15 : vector<392x128xf32>
    %17 = arith.truncf %16 : vector<392x128xf32> to vector<392x128xbf16>
    %c0_15 = arith.constant 0 : index
    %c0_16 = arith.constant 0 : index
    %18 = vector.load %arg7[%c0_15, %c0_16] : memref<392x128xbf16, #tpu.memory_space<vmem>>, vector<392x128xbf16>
    tpu.vector_store %arg7[%c0_15, %c0_16], %17 {strides = array<i32>} : memref<392x128xbf16, #tpu.memory_space<vmem>>, vector<392x128xbf16>,
    return
  }
  func.func @transform_0(%arg0: i32) -> (i32, i32) {
    %c0_i32 = arith.constant 0 : i32
    %c0_i32_0 = arith.constant 0 : i32
    return %arg0, %c0_i32 : i32, i32
  }
  func.func @transform_1(%arg0: i32) -> (i32, i32) {
    %c0_i32 = arith.constant 0 : i32
    %c0_i32_0 = arith.constant 0 : i32
    return %arg0, %c0_i32 : i32, i32
  }
  func.func @transform_2(%arg0: i32) -> (i32, i32) {
    %c0_i32 = arith.constant 0 : i32
    %c0_i32_0 = arith.constant 0 : i32
    return %arg0, %c0_i32 : i32, i32
  }
  func.func @transform_3(%arg0: i32) -> (i32, i32) {
    %c0_i32 = arith.constant 0 : i32
    %c0_i32_0 = arith.constant 0 : i32
    return %arg0, %c0_i32 : i32, i32
  }
  func.func @transform_4(%arg0: i32) -> (i32, i32) {
    %c0_i32 = arith.constant 0 : i32
    %c0_i32_0 = arith.constant 0 : i32
    %c0_i32_1 = arith.constant 0 : i32
    return %c0_i32, %c0_i32_0 : i32, i32
  }
  func.func @transform_5(%arg0: i32) -> (i32, i32) {
    %c0_i32 = arith.constant 0 : i32
    %c0_i32_0 = arith.constant 0 : i32
    %c0_i32_1 = arith.constant 0 : i32
    return %c0_i32, %c0_i32_0 : i32, i32
  }
  func.func @transform_6(%arg0: i32) -> (i32, i32) {
    %c0_i32 = arith.constant 0 : i32
    %c0_i32_0 = arith.constant 0 : i32
    return %arg0, %c0_i32 : i32, i32
  }
}

module attributes {stable_mosaic.version = 11 : i64} {
  func.func @_conv_relu_pool_kernel(%arg0: i32, %arg1: memref<50x256xbf16, #tpu.memory_space<vmem>>, %arg2: memref<50x256xbf16, #tpu.memory_space<vmem>>, %arg3: memref<50x256xbf16, #tpu.memory_space<vmem>>, %arg4: memref<50x256xbf16, #tpu.memory_space<vmem>>, %arg5: memref<256x128xbf16, #tpu.memory_space<vmem>>, %arg6: memref<1x128xf32, #tpu.memory_space<vmem>>, %arg7: memref<50x128xbf16, #tpu.memory_space<vmem>>) attributes {dimension_semantics = [#tpu.dimension_semantics<parallel>], iteration_bounds = array<i64: 1>, scalar_prefetch = 0 : i64, scratch_operands = 0 : i64, tpu.core_type = #tpu.core_type<tc>, window_params = [{transform_indices = @transform_0, window_bounds = array<i64: 50, 256>}, {transform_indices = @transform_1, window_bounds = array<i64: 50, 256>}, {transform_indices = @transform_2, window_bounds = array<i64: 50, 256>}, {transform_indices = @transform_3, window_bounds = array<i64: 50, 256>}, {pipeline_mode = #tpu.pipeline_mode<synchronous>, transform_indices = @transform_4, window_bounds = array<i64: 256, 128>}, {pipeline_mode = #tpu.pipeline_mode<synchronous>, transform_indices = @transform_5, window_bounds = array<i64: 1, 128>}, {transform_indices = @transform_6, window_bounds = array<i64: 50, 128>}]} {
    %c0 = arith.constant 0 : index
    %c0_0 = arith.constant 0 : index
    %0 = vector.load %arg5[%c0, %c0_0] : memref<256x128xbf16, #tpu.memory_space<vmem>>, vector<256x128xbf16>
    %c0_1 = arith.constant 0 : index
    %c0_2 = arith.constant 0 : index
    %1 = vector.load %arg1[%c0_1, %c0_2] : memref<50x256xbf16, #tpu.memory_space<vmem>>, vector<50x256xbf16>
    %cst = arith.constant dense<0.000000e+00> : vector<50x128xf32>
    %2 = tpu.matmul %1, %0, %cst {dimension_numbers = #tpu.dot_dimension_numbers<[1], [0], [0], [1], [0, 0, 1, 1], [], []>} : vector<50x256xbf16>, vector<256x128xbf16>, vector<50x128xf32> -> vector<50x128xf32>
    %c0_3 = arith.constant 0 : index
    %c0_4 = arith.constant 0 : index
    %3 = vector.load %arg2[%c0_3, %c0_4] : memref<50x256xbf16, #tpu.memory_space<vmem>>, vector<50x256xbf16>
    %cst_5 = arith.constant dense<0.000000e+00> : vector<50x128xf32>
    %4 = tpu.matmul %3, %0, %cst_5 {dimension_numbers = #tpu.dot_dimension_numbers<[1], [0], [0], [1], [0, 0, 1, 1], [], []>} : vector<50x256xbf16>, vector<256x128xbf16>, vector<50x128xf32> -> vector<50x128xf32>
    %c0_6 = arith.constant 0 : index
    %c0_7 = arith.constant 0 : index
    %5 = vector.load %arg3[%c0_6, %c0_7] : memref<50x256xbf16, #tpu.memory_space<vmem>>, vector<50x256xbf16>
    %cst_8 = arith.constant dense<0.000000e+00> : vector<50x128xf32>
    %6 = tpu.matmul %5, %0, %cst_8 {dimension_numbers = #tpu.dot_dimension_numbers<[1], [0], [0], [1], [0, 0, 1, 1], [], []>} : vector<50x256xbf16>, vector<256x128xbf16>, vector<50x128xf32> -> vector<50x128xf32>
    %c0_9 = arith.constant 0 : index
    %c0_10 = arith.constant 0 : index
    %7 = vector.load %arg4[%c0_9, %c0_10] : memref<50x256xbf16, #tpu.memory_space<vmem>>, vector<50x256xbf16>
    %cst_11 = arith.constant dense<0.000000e+00> : vector<50x128xf32>
    %8 = tpu.matmul %7, %0, %cst_11 {dimension_numbers = #tpu.dot_dimension_numbers<[1], [0], [0], [1], [0, 0, 1, 1], [], []>} : vector<50x256xbf16>, vector<256x128xbf16>, vector<50x128xf32> -> vector<50x128xf32>
    %9 = arith.maximumf %2, %4 : vector<50x128xf32>
    %10 = arith.maximumf %6, %8 : vector<50x128xf32>
    %11 = arith.maximumf %9, %10 : vector<50x128xf32>
    %c0_12 = arith.constant 0 : index
    %c0_13 = arith.constant 0 : index
    %12 = vector.load %arg6[%c0_12, %c0_13] : memref<1x128xf32, #tpu.memory_space<vmem>>, vector<1x128xf32>
    %13 = vector.broadcast %12 : vector<1x128xf32> to vector<50x128xf32>
    %14 = arith.addf %11, %13 : vector<50x128xf32>
    %cst_14 = arith.constant 0.000000e+00 : f32
    %15 = vector.broadcast %cst_14 : f32 to vector<50x128xf32>
    %16 = arith.maximumf %14, %15 : vector<50x128xf32>
    %17 = arith.truncf %16 : vector<50x128xf32> to vector<50x128xbf16>
    %c0_15 = arith.constant 0 : index
    %c0_16 = arith.constant 0 : index
    %18 = vector.load %arg7[%c0_15, %c0_16] : memref<50x128xbf16, #tpu.memory_space<vmem>>, vector<50x128xbf16>
    tpu.vector_store %arg7[%c0_15, %c0_16], %17 {strides = array<i32>} : memref<50x128xbf16, #tpu.memory_space<vmem>>, vector<50x128xbf16>,
    return
  }
  func.func @transform_0(%arg0: i32) -> (i32, i32) {
    %c0_i32 = arith.constant 0 : i32
    %c0_i32_0 = arith.constant 0 : i32
    return %arg0, %c0_i32 : i32, i32
  }
  func.func @transform_1(%arg0: i32) -> (i32, i32) {
    %c0_i32 = arith.constant 0 : i32
    %c0_i32_0 = arith.constant 0 : i32
    return %arg0, %c0_i32 : i32, i32
  }
  func.func @transform_2(%arg0: i32) -> (i32, i32) {
    %c0_i32 = arith.constant 0 : i32
    %c0_i32_0 = arith.constant 0 : i32
    return %arg0, %c0_i32 : i32, i32
  }
  func.func @transform_3(%arg0: i32) -> (i32, i32) {
    %c0_i32 = arith.constant 0 : i32
    %c0_i32_0 = arith.constant 0 : i32
    return %arg0, %c0_i32 : i32, i32
  }
  func.func @transform_4(%arg0: i32) -> (i32, i32) {
    %c0_i32 = arith.constant 0 : i32
    %c0_i32_0 = arith.constant 0 : i32
    %c0_i32_1 = arith.constant 0 : i32
    return %c0_i32, %c0_i32_0 : i32, i32
  }
  func.func @transform_5(%arg0: i32) -> (i32, i32) {
    %c0_i32 = arith.constant 0 : i32
    %c0_i32_0 = arith.constant 0 : i32
    %c0_i32_1 = arith.constant 0 : i32
    return %c0_i32, %c0_i32_0 : i32, i32
  }
  func.func @transform_6(%arg0: i32) -> (i32, i32) {
    %c0_i32 = arith.constant 0 : i32
    %c0_i32_0 = arith.constant 0 : i32
    return %arg0, %c0_i32 : i32, i32
  }
}

module attributes {stable_mosaic.version = 11 : i64} {
  func.func @_mlp_kernel(%arg0: i32, %arg1: memref<2x3200xbf16, #tpu.memory_space<vmem>>, %arg2: memref<3200x128xbf16, #tpu.memory_space<vmem>>, %arg3: memref<1x128xf32, #tpu.memory_space<vmem>>, %arg4: memref<128x128xbf16, #tpu.memory_space<vmem>>, %arg5: memref<1x128xf32, #tpu.memory_space<vmem>>, %arg6: memref<128x128xbf16, #tpu.memory_space<vmem>>, %arg7: memref<1x128xf32, #tpu.memory_space<vmem>>, %arg8: memref<2x128xf32, #tpu.memory_space<vmem>>) attributes {dimension_semantics = [#tpu.dimension_semantics<arbitrary>], iteration_bounds = array<i64: 1>, scalar_prefetch = 0 : i64, scratch_operands = 0 : i64, tpu.core_type = #tpu.core_type<tc>, window_params = [{pipeline_mode = #tpu.pipeline_mode<synchronous>, transform_indices = @transform_0, window_bounds = array<i64: 2, 3200>}, {pipeline_mode = #tpu.pipeline_mode<synchronous>, transform_indices = @transform_1, window_bounds = array<i64: 3200, 128>}, {pipeline_mode = #tpu.pipeline_mode<synchronous>, transform_indices = @transform_2, window_bounds = array<i64: 1, 128>}, {pipeline_mode = #tpu.pipeline_mode<synchronous>, transform_indices = @transform_3, window_bounds = array<i64: 128, 128>}, {pipeline_mode = #tpu.pipeline_mode<synchronous>, transform_indices = @transform_4, window_bounds = array<i64: 1, 128>}, {pipeline_mode = #tpu.pipeline_mode<synchronous>, transform_indices = @transform_5, window_bounds = array<i64: 128, 128>}, {pipeline_mode = #tpu.pipeline_mode<synchronous>, transform_indices = @transform_6, window_bounds = array<i64: 1, 128>}, {pipeline_mode = #tpu.pipeline_mode<synchronous>, transform_indices = @transform_7, window_bounds = array<i64: 2, 128>}]} {
    %c0 = arith.constant 0 : index
    %c0_0 = arith.constant 0 : index
    %0 = vector.load %arg1[%c0, %c0_0] : memref<2x3200xbf16, #tpu.memory_space<vmem>>, vector<2x3200xbf16>
    %c0_1 = arith.constant 0 : index
    %c0_2 = arith.constant 0 : index
    %1 = vector.load %arg2[%c0_1, %c0_2] : memref<3200x128xbf16, #tpu.memory_space<vmem>>, vector<3200x128xbf16>
    %cst = arith.constant dense<0.000000e+00> : vector<2x128xf32>
    %2 = tpu.matmul %0, %1, %cst {dimension_numbers = #tpu.dot_dimension_numbers<[1], [0], [0], [1], [0, 0, 1, 1], [], []>} : vector<2x3200xbf16>, vector<3200x128xbf16>, vector<2x128xf32> -> vector<2x128xf32>
    %c0_3 = arith.constant 0 : index
    %c0_4 = arith.constant 0 : index
    %3 = vector.load %arg3[%c0_3, %c0_4] : memref<1x128xf32, #tpu.memory_space<vmem>>, vector<1x128xf32>
    %4 = vector.broadcast %3 : vector<1x128xf32> to vector<2x128xf32>
    %5 = arith.addf %2, %4 : vector<2x128xf32>
    %cst_5 = arith.constant 0.000000e+00 : f32
    %6 = vector.broadcast %cst_5 : f32 to vector<2x128xf32>
    %7 = arith.maximumf %5, %6 : vector<2x128xf32>
    %8 = arith.truncf %7 : vector<2x128xf32> to vector<2x128xbf16>
    %c0_6 = arith.constant 0 : index
    %c0_7 = arith.constant 0 : index
    %9 = vector.load %arg4[%c0_6, %c0_7] : memref<128x128xbf16, #tpu.memory_space<vmem>>, vector<128x128xbf16>
    %cst_8 = arith.constant dense<0.000000e+00> : vector<2x128xf32>
    %10 = tpu.matmul %8, %9, %cst_8 {dimension_numbers = #tpu.dot_dimension_numbers<[1], [0], [0], [1], [0, 0, 1, 1], [], []>} : vector<2x128xbf16>, vector<128x128xbf16>, vector<2x128xf32> -> vector<2x128xf32>
    %c0_9 = arith.constant 0 : index
    %c0_10 = arith.constant 0 : index
    %11 = vector.load %arg5[%c0_9, %c0_10] : memref<1x128xf32, #tpu.memory_space<vmem>>, vector<1x128xf32>
    %12 = vector.broadcast %11 : vector<1x128xf32> to vector<2x128xf32>
    %13 = arith.addf %10, %12 : vector<2x128xf32>
    %cst_11 = arith.constant 0.000000e+00 : f32
    %14 = vector.broadcast %cst_11 : f32 to vector<2x128xf32>
    %15 = arith.maximumf %13, %14 : vector<2x128xf32>
    %16 = arith.truncf %15 : vector<2x128xf32> to vector<2x128xbf16>
    %c0_12 = arith.constant 0 : index
    %c0_13 = arith.constant 0 : index
    %17 = vector.load %arg6[%c0_12, %c0_13] : memref<128x128xbf16, #tpu.memory_space<vmem>>, vector<128x128xbf16>
    %cst_14 = arith.constant dense<0.000000e+00> : vector<2x128xf32>
    %18 = tpu.matmul %16, %17, %cst_14 {dimension_numbers = #tpu.dot_dimension_numbers<[1], [0], [0], [1], [0, 0, 1, 1], [], []>} : vector<2x128xbf16>, vector<128x128xbf16>, vector<2x128xf32> -> vector<2x128xf32>
    %c0_15 = arith.constant 0 : index
    %c0_16 = arith.constant 0 : index
    %19 = vector.load %arg7[%c0_15, %c0_16] : memref<1x128xf32, #tpu.memory_space<vmem>>, vector<1x128xf32>
    %20 = vector.broadcast %19 : vector<1x128xf32> to vector<2x128xf32>
    %21 = arith.addf %18, %20 : vector<2x128xf32>
    %c0_17 = arith.constant 0 : index
    %c0_18 = arith.constant 0 : index
    %22 = vector.load %arg8[%c0_17, %c0_18] : memref<2x128xf32, #tpu.memory_space<vmem>>, vector<2x128xf32>
    tpu.vector_store %arg8[%c0_17, %c0_18], %21 {strides = array<i32>} : memref<2x128xf32, #tpu.memory_space<vmem>>, vector<2x128xf32>,
    return
  }
  func.func @transform_0(%arg0: i32) -> (i32, i32) {
    %c0_i32 = arith.constant 0 : i32
    %c0_i32_0 = arith.constant 0 : i32
    %c0_i32_1 = arith.constant 0 : i32
    return %c0_i32, %c0_i32_0 : i32, i32
  }
  func.func @transform_1(%arg0: i32) -> (i32, i32) {
    %c0_i32 = arith.constant 0 : i32
    %c0_i32_0 = arith.constant 0 : i32
    %c0_i32_1 = arith.constant 0 : i32
    return %c0_i32, %c0_i32_0 : i32, i32
  }
  func.func @transform_2(%arg0: i32) -> (i32, i32) {
    %c0_i32 = arith.constant 0 : i32
    %c0_i32_0 = arith.constant 0 : i32
    %c0_i32_1 = arith.constant 0 : i32
    return %c0_i32, %c0_i32_0 : i32, i32
  }
  func.func @transform_3(%arg0: i32) -> (i32, i32) {
    %c0_i32 = arith.constant 0 : i32
    %c0_i32_0 = arith.constant 0 : i32
    %c0_i32_1 = arith.constant 0 : i32
    return %c0_i32, %c0_i32_0 : i32, i32
  }
  func.func @transform_4(%arg0: i32) -> (i32, i32) {
    %c0_i32 = arith.constant 0 : i32
    %c0_i32_0 = arith.constant 0 : i32
    %c0_i32_1 = arith.constant 0 : i32
    return %c0_i32, %c0_i32_0 : i32, i32
  }
  func.func @transform_5(%arg0: i32) -> (i32, i32) {
    %c0_i32 = arith.constant 0 : i32
    %c0_i32_0 = arith.constant 0 : i32
    %c0_i32_1 = arith.constant 0 : i32
    return %c0_i32, %c0_i32_0 : i32, i32
  }
  func.func @transform_6(%arg0: i32) -> (i32, i32) {
    %c0_i32 = arith.constant 0 : i32
    %c0_i32_0 = arith.constant 0 : i32
    %c0_i32_1 = arith.constant 0 : i32
    return %c0_i32, %c0_i32_0 : i32, i32
  }
  func.func @transform_7(%arg0: i32) -> (i32, i32) {
    %c0_i32 = arith.constant 0 : i32
    %c0_i32_0 = arith.constant 0 : i32
    %c0_i32_1 = arith.constant 0 : i32
    return %c0_i32, %c0_i32_0 : i32, i32
  }
}

</mosaic_0001>

<bundles_post_ra>
// kernel: net_forward.3
= control target key start
LH: loop header
LB: loop body
LE: loop exit
PB: predicated region body
PF: predicated region fallthrough
CT: control target
= control target key end

     0   :  { %v4532_v0 = vmov 0.0   ;;  %vm3363_vm0 = vmmov 0   ;;  %s4525_s4 = inlined_call_operand.vmem [shape: bf16[128,128], index: 4, kind: input, shape index: {}]   ;;  %s4526_s0 = inlined_call_operand.vmem [shape: bf16[392,128], index: 0, kind: input, shape index: {}]   ;;  %s4527_s1 = inlined_call_operand.vmem [shape: bf16[392,128], index: 1, kind: input, shape index: {}]   ;;  %s4528_s2 = inlined_call_operand.vmem [shape: bf16[392,128], index: 2, kind: input, shape index: {}]   ;;  %s4529_s3 = inlined_call_operand.vmem [shape: bf16[392,128], index: 3, kind: input, shape index: {}]   ;;  %s4530_s5 = inlined_call_operand.vmem [shape: f32[1,128], index: 5, kind: input, shape index: {}]   ;;  %s4531_s6 = inlined_call_operand.vmem [shape: bf16[392,128], index: 6, kind: output, shape index: {}]  }
   0x1   :  { %2788 = vmatprep.subr.bf16.mxu0 %v4532_v0  ;;  %2904 = vmatprep.subr.bf16.mxu1 %v4532_v0  ;;  %v3254_v1 = vld [vmem:[%s4525_s4] sm:$0xff]   ;;  %v3255_v2 = vld [vmem:[%s4525_s4 + $0x8] sm:$0xff]   ;;  %v3256_v3 = vld [vmem:[%s4525_s4 + $0x10] sm:$0xff]  }
   0x2   :  { %2804 = vmatprep.mubr.msk.bf16.mxu0 %vm3363_vm0, %v4532_v0  ;;  %2920 = vmatprep.mubr.msk.bf16.mxu1 %vm3363_vm0, %v4532_v0  ;;  %v3257_v4 = vld [vmem:[%s4525_s4 + $0x18] sm:$0xff]   ;;  %v3258_v5 = vld [vmem:[%s4525_s4 + $0x20] sm:$0xff]   ;;  %v3259_v6 = vld [vmem:[%s4525_s4 + $0x28] sm:$0xff]  }
   0x3   :  { %2789 = vmatpush3.bf16.msra.mxu0 %v3254_v1  ;;  %2905 = vmatpush3.bf16.msra.mxu1 %v3254_v1  ;;  %v3260_v7 = vld [vmem:[%s4525_s4 + $0x30] sm:$0xff]   ;;  %v3261_v8 = vld [vmem:[%s4525_s4 + $0x38] sm:$0xff]   ;;  %v3262_v9 = vld [vmem:[%s4526_s0] sm:$0xff]  }
   0x4   :  { %2790 = vmatprep.subr.bf16.mxu0 %v4532_v0  ;;  %2906 = vmatprep.subr.bf16.mxu1 %v4532_v0  ;;  %v3263_v10 = vld [vmem:[%s4527_s1] sm:$0xff]   ;;  %v3264_v11 = vld [vmem:[%s4526_s0 + $0x8] sm:$0xff]   ;;  %v3266_v13 = vld [vmem:[%s4526_s0 + $0x10] sm:$0xff]  }
   0x5   :  { %v3265_v12 = vld [vmem:[%s4527_s1 + $0x8] sm:$0xff]   ;;  %v3267_v14 = vld [vmem:[%s4527_s1 + $0x10] sm:$0xff]   ;;  %v3268_v15 = vld [vmem:[%s4526_s0 + $0x18] sm:$0xff]  }
   0x6   :  { %v3269_v16 = vld [vmem:[%s4527_s1 + $0x18] sm:$0xff]   ;;  %v3270_v17 = vld [vmem:[%s4526_s0 + $0x20] sm:$0xff]   ;;  %v3272_v19 = vld [vmem:[%s4526_s0 + $0x28] sm:$0xff]  }
   0x7   :  { %2791 = vmatpush3.bf16.msra.mxu0 %v3255_v2  ;;  %2907 = vmatpush3.bf16.msra.mxu1 %v3255_v2  ;;  %v3271_v18 = vld [vmem:[%s4527_s1 + $0x20] sm:$0xff]   ;;  %v3273_v20 = vld [vmem:[%s4527_s1 + $0x28] sm:$0xff]   ;;  %v3274_v21 = vld [vmem:[%s4526_s0 + $0x30] sm:$0xff]  }
   0x8   :  { %2792 = vmatprep.subr.bf16.mxu0 %v4532_v0  ;;  %2908 = vmatprep.subr.bf16.mxu1 %v4532_v0  ;;  %v3275_v22 = vld [vmem:[%s4527_s1 + $0x30] sm:$0xff]   ;;  %v3276_v23 = vld [vmem:[%s4526_s0 + $0x38] sm:$0xff]   ;;  %v3278_v25 = vld [vmem:[%s4526_s0 + $0x40] sm:$0xff]  }
   0x9   :  { %v3277_v24 = vld [vmem:[%s4527_s1 + $0x38] sm:$0xff]   ;;  %v3279_v26 = vld [vmem:[%s4527_s1 + $0x40] sm:$0xff]   ;;  %v3280_v27 = vld [vmem:[%s4526_s0 + $0x48] sm:$0xff]  }
   0xa   :  { %v3281_v28 = vld [vmem:[%s4527_s1 + $0x48] sm:$0xff]   ;;  %v3282_v29 = vld [vmem:[%s4526_s0 + $0x50] sm:$0xff]   ;;  %v3284_v31 = vld [vmem:[%s4526_s0 + $0x58] sm:$0xff]  }
   0xb   :  { %2793 = vmatpush3.bf16.msra.mxu0 %v3256_v3  ;;  %2909 = vmatpush3.bf16.msra.mxu1 %v3256_v3  ;;  %v3283_v30 = vld [vmem:[%s4527_s1 + $0x50] sm:$0xff]   ;;  %v3285_v32 = vld [vmem:[%s4527_s1 + $0x58] sm:$0xff]   ;;  %v3286_v33 = vld [vmem:[%s4526_s0 + $0x60] sm:$0xff]  }
   0xc   :  { %2794 = vmatprep.subr.bf16.mxu0 %v4532_v0  ;;  %2910 = vmatprep.subr.bf16.mxu1 %v4532_v0  ;;  %v3287_v34 = vld [vmem:[%s4527_s1 + $0x60] sm:$0xff]   ;;  %v3288_v35 = vld [vmem:[%s4526_s0 + $0x68] sm:$0xff]   ;;  %v3290_v37 = vld [vmem:[%s4526_s0 + $0x70] sm:$0xff]  }
   0xd   :  { %v3289_v36 = vld [vmem:[%s4527_s1 + $0x68] sm:$0xff]   ;;  %v3291_v38 = vld [vmem:[%s4527_s1 + $0x70] sm:$0xff]   ;;  %v3292_v39 = vld [vmem:[%s4526_s0 + $0x78] sm:$0xff]  }
   0xe   :  { %v3293_v40 = vld [vmem:[%s4527_s1 + $0x78] sm:$0xff]   ;;  %v3294_v41 = vld [vmem:[%s4526_s0 + $0x80] sm:$0xff]   ;;  %v3296_v43 = vld [vmem:[%s4526_s0 + $0x88] sm:$0xff]  }
   0xf   :  { %2795 = vmatpush3.bf16.msra.mxu0 %v3257_v4  ;;  %2911 = vmatpush3.bf16.msra.mxu1 %v3257_v4  ;;  %v3295_v42 = vld [vmem:[%s4527_s1 + $0x80] sm:$0xff]   ;;  %v3297_v44 = vld [vmem:[%s4527_s1 + $0x88] sm:$0xff]   ;;  %v3298_v45 = vld [vmem:[%s4526_s0 + $0x90] sm:$0xff]  }
  0x10   :  { %2796 = vmatprep.subr.bf16.mxu0 %v4532_v0  ;;  %2912 = vmatprep.subr.bf16.mxu1 %v4532_v0  ;;  %v3299_v46 = vld [vmem:[%s4527_s1 + $0x90] sm:$0xff]   ;;  %v3300_v47 = vld [vmem:[%s4526_s0 + $0x98] sm:$0xff]   ;;  %v3302_v49 = vld [vmem:[%s4526_s0 + $0xa0] sm:$0xff]  }
  0x11   :  { %v3301_v48 = vld [vmem:[%s4527_s1 + $0x98] sm:$0xff]   ;;  %v3303_v50 = vld [vmem:[%s4527_s1 + $0xa0] sm:$0xff]   ;;  %v3304_v51 = vld [vmem:[%s4526_s0 + $0xa8] sm:$0xff]  }
  0x12   :  { %v3305_v52 = vld [vmem:[%s4527_s1 + $0xa8] sm:$0xff]   ;;  %v3306_v53 = vld [vmem:[%s4526_s0 + $0xb0] sm:$0xff]   ;;  %v3308_v55 = vld [vmem:[%s4526_s0 + $0xb8] sm:$0xff]  }
  0x13   :  { %2797 = vmatpush3.bf16.msra.mxu0 %v3258_v5  ;;  %2913 = vmatpush3.bf16.msra.mxu1 %v3258_v5  ;;  %v3307_v54 = vld [vmem:[%s4527_s1 + $0xb0] sm:$0xff]   ;;  %v3309_v56 = vld [vmem:[%s4527_s1 + $0xb8] sm:$0xff]   ;;  %v3310_v57 = vld [vmem:[%s4526_s0 + $0xc0] ss:$0 sps:$4 sm:$0xff]  }
  0x14   :  { %2798 = vmatprep.subr.bf16.mxu0 %v4532_v0  ;;  %2914 = vmatprep.subr.bf16.mxu1 %v4532_v0  ;;  %v3311_v58 = vld [vmem:[%s4527_s1 + $0xc0] ss:$0 sps:$4 sm:$0xff]   ;;  %v3314_v61 = vld [vmem:[%s4528_s2 + $0x8] sm:$0xff]  }
  0x15   :  { %v3312_v59 = vld [vmem:[%s4528_s2] sm:$0xff]   ;;  %v3315_v62 = vld [vmem:[%s4529_s3 + $0x8] sm:$0xff]  }
  0x16   :  { %v3313_v60 = vld [vmem:[%s4529_s3] sm:$0xff]  }
  0x17   :  { %2799 = vmatpush3.bf16.msra.mxu0 %v3259_v6  ;;  %2915 = vmatpush3.bf16.msra.mxu1 %v3259_v6 }
  0x18   :  { %2800 = vmatprep.subr.bf16.mxu0 %v4532_v0  ;;  %2916 = vmatprep.subr.bf16.mxu1 %v4532_v0 }
  0x1b   :  { %2801 = vmatpush3.bf16.msra.mxu0 %v3260_v7  ;;  %2917 = vmatpush3.bf16.msra.mxu1 %v3260_v7 }
  0x1c   :  { %2802 = vmatprep.subr.bf16.mxu0 %v4532_v0  ;;  %2918 = vmatprep.subr.bf16.mxu1 %v4532_v0 }
  0x1f   :  { %2803 = vmatpush3.bf16.msra.mxu0 %v3261_v8  ;;  %2919 = vmatpush3.bf16.msra.mxu1 %v3261_v8 }
  0x20   :  { %3020 = vmatprep.subr.bf16.mxu0 %v4532_v0  ;;  %3136 = vmatprep.subr.bf16.mxu1 %v4532_v0 }
  0x22   :  { %2805 = vmatmul.mubr.bf16.vlgmr.msra.gmra.mrb[0].mxu0 %v3262_v9  ;;  %2921 = vmatmul.mubr.bf16.vlgmr.msra.gmra.mrb[0].mxu1 %v3263_v10 }
  0x23   :  { %3021 = vmatpush3.bf16.msra.mxu0 %v3254_v1  ;;  %3137 = vmatpush3.bf16.msra.mxu1 %v3254_v1 }
  0x24   :  { %2808 = vmatprep.mubr.msk.bf16.mxu0 %vm3363_vm0, %v4532_v0  ;;  %2924 = vmatprep.mubr.msk.bf16.mxu1 %vm3363_vm0, %v4532_v0 }
  0x25   :  { %3022 = vmatprep.subr.bf16.mxu0 %v4532_v0  ;;  %3138 = vmatprep.subr.bf16.mxu1 %v4532_v0 }
  0x27   :  { %3023 = vmatpush3.bf16.msra.mxu0 %v3255_v2  ;;  %3139 = vmatpush3.bf16.msra.mxu1 %v3255_v2 }
  0x28   :  { %3024 = vmatprep.subr.bf16.mxu0 %v4532_v0  ;;  %3140 = vmatprep.subr.bf16.mxu1 %v4532_v0 }
  0x2a   :  { %2809 = vmatmul.mubr.bf16.gmra.mrb[4].mxu0 %v3264_v11  ;;  %2925 = vmatmul.mubr.bf16.gmra.mrb[4].mxu1 %v3265_v12 }
  0x2b   :  { %2812 = vmatprep.mubr.msk.bf16.mxu0 %vm3363_vm0, %v4532_v0  ;;  %2928 = vmatprep.mubr.msk.bf16.mxu1 %vm3363_vm0, %v4532_v0 }
  0x2c   :  { %3025 = vmatpush3.bf16.msra.mxu0 %v3256_v3  ;;  %3141 = vmatpush3.bf16.msra.mxu1 %v3256_v3 }
  0x2d   :  { %3026 = vmatprep.subr.bf16.mxu0 %v4532_v0  ;;  %3142 = vmatprep.subr.bf16.mxu1 %v4532_v0 }
  0x30   :  { %3027 = vmatpush3.bf16.msra.mxu0 %v3257_v4  ;;  %3143 = vmatpush3.bf16.msra.mxu1 %v3257_v4 }
  0x31   :  { %3028 = vmatprep.subr.bf16.mxu0 %v4532_v0  ;;  %3144 = vmatprep.subr.bf16.mxu1 %v4532_v0 }
  0x32   :  { %2813 = vmatmul.mubr.bf16.gmra.mrb[8].mxu0 %v3266_v13  ;;  %2929 = vmatmul.mubr.bf16.gmra.mrb[8].mxu1 %v3267_v14 }
  0x33   :  { %2816 = vmatprep.mubr.msk.bf16.mxu0 %vm3363_vm0, %v4532_v0  ;;  %2932 = vmatprep.mubr.msk.bf16.mxu1 %vm3363_vm0, %v4532_v0 }
  0x34   :  { %3029 = vmatpush3.bf16.msra.mxu0 %v3258_v5  ;;  %3145 = vmatpush3.bf16.msra.mxu1 %v3258_v5  ;;  %v3316_v5 = vld [vmem:[%s4528_s2 + $0x10] sm:$0xff]  }
  0x35   :  { %3030 = vmatprep.subr.bf16.mxu0 %v4532_v0  ;;  %3146 = vmatprep.subr.bf16.mxu1 %v4532_v0 }
  0x38   :  { %3031 = vmatpush3.bf16.msra.mxu0 %v3259_v6  ;;  %3147 = vmatpush3.bf16.msra.mxu1 %v3259_v6  ;;  %v3317_v6 = vld [vmem:[%s4529_s3 + $0x10] sm:$0xff]  }
  0x39   :  { %3032 = vmatprep.subr.bf16.mxu0 %v4532_v0  ;;  %3148 = vmatprep.subr.bf16.mxu1 %v4532_v0 }
  0x3a   :  { %2817 = vmatmul.mubr.bf16.gmra.mrb[12].mxu0 %v3268_v15  ;;  %2933 = vmatmul.mubr.bf16.gmra.mrb[12].mxu1 %v3269_v16 }
  0x3b   :  { %2820 = vmatprep.mubr.msk.bf16.mxu0 %vm3363_vm0, %v4532_v0  ;;  %2936 = vmatprep.mubr.msk.bf16.mxu1 %vm3363_vm0, %v4532_v0 }
  0x3c   :  { %3033 = vmatpush3.bf16.msra.mxu0 %v3260_v7  ;;  %3149 = vmatpush3.bf16.msra.mxu1 %v3260_v7 }
  0x3d   :  { %3034 = vmatprep.subr.bf16.mxu0 %v4532_v0  ;;  %3150 = vmatprep.subr.bf16.mxu1 %v4532_v0 }
  0x40   :  { %3035 = vmatpush3.bf16.msra.mxu0 %v3261_v8  ;;  %3151 = vmatpush3.bf16.msra.mxu1 %v3261_v8 }
  0x42   :  { %2821 = vmatmul.mubr.bf16.gmra.mrb[16].mxu0 %v3270_v17  ;;  %2937 = vmatmul.mubr.bf16.gmra.mrb[16].mxu1 %v3271_v18  ;;  %v3318_v17 = vld [vmem:[%s4528_s2 + $0x18] sm:$0xff]  }
  0x43   :  { %2824 = vmatprep.mubr.msk.bf16.mxu0 %vm3363_vm0, %v4532_v0  ;;  %2940 = vmatprep.mubr.msk.bf16.mxu1 %vm3363_vm0, %v4532_v0  ;;  %v3319_v18 = vld [vmem:[%s4529_s3 + $0x18] sm:$0xff]  }
  0x4a   :  { %2825 = vmatmul.mubr.bf16.gmra.mrb[20].mxu0 %v3272_v19  ;;  %2941 = vmatmul.mubr.bf16.gmra.mrb[20].mxu1 %v3273_v20 }
  0x4b   :  { %2828 = vmatprep.mubr.msk.bf16.mxu0 %vm3363_vm0, %v4532_v0  ;;  %2944 = vmatprep.mubr.msk.bf16.mxu1 %vm3363_vm0, %v4532_v0 }
  0x52   :  { %2829 = vmatmul.mubr.bf16.gmra.mrb[24].mxu0 %v3274_v21  ;;  %2945 = vmatmul.mubr.bf16.gmra.mrb[24].mxu1 %v3275_v22 }
  0x53   :  { %2832 = vmatprep.mubr.msk.bf16.mxu0 %vm3363_vm0, %v4532_v0  ;;  %2948 = vmatprep.mubr.msk.bf16.mxu1 %vm3363_vm0, %v4532_v0 }
  0x5a   :  { %2833 = vmatmul.mubr.bf16.gmra.mrb[28].mxu0 %v3276_v23  ;;  %2949 = vmatmul.mubr.bf16.gmra.mrb[28].mxu1 %v3277_v24 }
  0x5b   :  { %2836 = vmatprep.mubr.msk.bf16.mxu0 %vm3363_vm0, %v4532_v0  ;;  %2952 = vmatprep.mubr.msk.bf16.mxu1 %vm3363_vm0, %v4532_v0 }
  0x62   :  { %2837 = vmatmul.mubr.bf16.gmra.mrb[32].mxu0 %v3278_v25  ;;  %2953 = vmatmul.mubr.bf16.gmra.mrb[32].mxu1 %v3279_v26 }
  0x63   :  { %2840 = vmatprep.mubr.msk.bf16.mxu0 %vm3363_vm0, %v4532_v0  ;;  %2956 = vmatprep.mubr.msk.bf16.mxu1 %vm3363_vm0, %v4532_v0 }
  0x6a   :  { %2841 = vmatmul.mubr.bf16.gmra.mrb[36].mxu0 %v3280_v27  ;;  %2957 = vmatmul.mubr.bf16.gmra.mrb[36].mxu1 %v3281_v28 }
  0x6b   :  { %2844 = vmatprep.mubr.msk.bf16.mxu0 %vm3363_vm0, %v4532_v0  ;;  %2960 = vmatprep.mubr.msk.bf16.mxu1 %vm3363_vm0, %v4532_v0 }
  0x72   :  { %2845 = vmatmul.mubr.bf16.gmra.mrb[40].mxu0 %v3282_v29  ;;  %2961 = vmatmul.mubr.bf16.gmra.mrb[40].mxu1 %v3283_v30  ;;  %v3320_v29 = vld [vmem:[%s4528_s2 + $0x20] sm:$0xff]  }
  0x73   :  { %2848 = vmatprep.mubr.msk.bf16.mxu0 %vm3363_vm0, %v4532_v0  ;;  %2964 = vmatprep.mubr.msk.bf16.mxu1 %vm3363_vm0, %v4532_v0  ;;  %v3321_v30 = vld [vmem:[%s4529_s3 + $0x20] sm:$0xff]  }
  0x7a   :  { %2849 = vmatmul.mubr.bf16.gmra.mrb[44].mxu0 %v3284_v31  ;;  %2965 = vmatmul.mubr.bf16.gmra.mrb[44].mxu1 %v3285_v32 }
  0x7b   :  { %2852 = vmatprep.mubr.msk.bf16.mxu0 %vm3363_vm0, %v4532_v0  ;;  %2968 = vmatprep.mubr.msk.bf16.mxu1 %vm3363_vm0, %v4532_v0 }
  0x82   :  { %2853 = vmatmul.mubr.bf16.gmra.mrb[48].mxu0 %v3286_v33  ;;  %2969 = vmatmul.mubr.bf16.gmra.mrb[48].mxu1 %v3287_v34 }
  0x83   :  { %2856 = vmatprep.mubr.msk.bf16.mxu0 %vm3363_vm0, %v4532_v0  ;;  %2972 = vmatprep.mubr.msk.bf16.mxu1 %vm3363_vm0, %v4532_v0 }
  0x8a   :  { %2857 = vmatmul.mubr.bf16.gmra.mrb[52].mxu0 %v3288_v35  ;;  %2973 = vmatmul.mubr.bf16.gmra.mrb[52].mxu1 %v3289_v36 }
  0x8b   :  { %2860 = vmatprep.mubr.msk.bf16.mxu0 %vm3363_vm0, %v4532_v0  ;;  %2976 = vmatprep.mubr.msk.bf16.mxu1 %vm3363_vm0, %v4532_v0 }
  0x92   :  { %2861 = vmatmul.mubr.bf16.gmra.mrb[56].mxu0 %v3290_v37  ;;  %2977 = vmatmul.mubr.bf16.gmra.mrb[56].mxu1 %v3291_v38 }
  0x93   :  { %2864 = vmatprep.mubr.msk.bf16.mxu0 %vm3363_vm0, %v4532_v0  ;;  %2980 = vmatprep.mubr.msk.bf16.mxu1 %vm3363_vm0, %v4532_v0 }
  0x9a   :  { %2865 = vmatmul.mubr.bf16.gmra.mrb[60].mxu0 %v3292_v39  ;;  %2981 = vmatmul.mubr.bf16.gmra.mrb[60].mxu1 %v3293_v40 }
  0x9b   :  { %2868 = vmatprep.mubr.msk.bf16.mxu0 %vm3363_vm0, %v4532_v0  ;;  %2984 = vmatprep.mubr.msk.bf16.mxu1 %vm3363_vm0, %v4532_v0 }
  0xa2   :  { %2869 = vmatmul.mubr.bf16.gmra.mrb[64].mxu0 %v3294_v41  ;;  %2985 = vmatmul.mubr.bf16.gmra.mrb[64].mxu1 %v3295_v42  ;;  %v3322_v41 = vld [vmem:[%s4528_s2 + $0x28] sm:$0xff]  }
  0xa3   :  { %2872 = vmatprep.mubr.msk.bf16.mxu0 %vm3363_vm0, %v4532_v0  ;;  %2988 = vmatprep.mubr.msk.bf16.mxu1 %vm3363_vm0, %v4532_v0  ;;  %v3323_v42 = vld [vmem:[%s4529_s3 + $0x28] sm:$0xff]  }
  0xaa   :  { %2873 = vmatmul.mubr.bf16.gmra.mrb[68].mxu0 %v3296_v43  ;;  %2989 = vmatmul.mubr.bf16.gmra.mrb[68].mxu1 %v3297_v44 }
  0xab   :  { %2876 = vmatprep.mubr.msk.bf16.mxu0 %vm3363_vm0, %v4532_v0  ;;  %2992 = vmatprep.mubr.msk.bf16.mxu1 %vm3363_vm0, %v4532_v0 }
  0xb2   :  { %2877 = vmatmul.mubr.bf16.gmra.mrb[72].mxu0 %v3298_v45  ;;  %2993 = vmatmul.mubr.bf16.gmra.mrb[72].mxu1 %v3299_v46 }
  0xb3   :  { %2880 = vmatprep.mubr.msk.bf16.mxu0 %vm3363_vm0, %v4532_v0  ;;  %2996 = vmatprep.mubr.msk.bf16.mxu1 %vm3363_vm0, %v4532_v0 }
  0xba   :  { %2881 = vmatmul.mubr.bf16.gmra.mrb[76].mxu0 %v3300_v47  ;;  %2997 = vmatmul.mubr.bf16.gmra.mrb[76].mxu1 %v3301_v48 }
  0xbb   :  { %2884 = vmatprep.mubr.msk.bf16.mxu0 %vm3363_vm0, %v4532_v0  ;;  %3000 = vmatprep.mubr.msk.bf16.mxu1 %vm3363_vm0, %v4532_v0 }
  0xc2   :  { %2885 = vmatmul.mubr.bf16.gmra.mrb[80].mxu0 %v3302_v49  ;;  %3001 = vmatmul.mubr.bf16.gmra.mrb[80].mxu1 %v3303_v50 }
  0xc3   :  { %2888 = vmatprep.mubr.msk.bf16.mxu0 %vm3363_vm0, %v4532_v0  ;;  %3004 = vmatprep.mubr.msk.bf16.mxu1 %vm3363_vm0, %v4532_v0 }
  0xca   :  { %2889 = vmatmul.mubr.bf16.gmra.mrb[84].mxu0 %v3304_v51  ;;  %3005 = vmatmul.mubr.bf16.gmra.mrb[84].mxu1 %v3305_v52 }
  0xcb   :  { %2892 = vmatprep.mubr.msk.bf16.mxu0 %vm3363_vm0, %v4532_v0  ;;  %3008 = vmatprep.mubr.msk.bf16.mxu1 %vm3363_vm0, %v4532_v0 }
  0xd2   :  { %2893 = vmatmul.mubr.bf16.gmra.mrb[88].mxu0 %v3306_v53  ;;  %3009 = vmatmul.mubr.bf16.gmra.mrb[88].mxu1 %v3307_v54  ;;  %v3324_v53 = vld [vmem:[%s4528_s2 + $0x30] sm:$0xff]  }
  0xd3   :  { %2896 = vmatprep.mubr.msk.bf16.mxu0 %vm3363_vm0, %v4532_v0  ;;  %3012 = vmatprep.mubr.msk.bf16.mxu1 %vm3363_vm0, %v4532_v0  ;;  %v3325_v54 = vld [vmem:[%s4529_s3 + $0x30] sm:$0xff]  }
  0xda   :  { %2897 = vmatmul.mubr.bf16.gmra.mrb[92].mxu0 %v3308_v55  ;;  %3013 = vmatmul.mubr.bf16.gmra.mrb[92].mxu1 %v3309_v56 }
  0xdb   :  { %2900 = vmatprep.mubr.msk.bf16.mxu0 %vm3363_vm0, %v4532_v0  ;;  %3016 = vmatprep.mubr.msk.bf16.mxu1 %vm3363_vm0, %v4532_v0 }
  0xe2   :  { %2901 = vmatmul.mubr.bf16.gmra.mrb[96].mxu0 %v3310_v57  ;;  %3017 = vmatmul.mubr.bf16.gmra.mrb[96].mxu1 %v3311_v58 }
  0xe3   :  { %3036 = vmatprep.mubr.msk.bf16.mxu0 %vm3363_vm0, %v4532_v0  ;;  %3152 = vmatprep.mubr.msk.bf16.mxu1 %vm3363_vm0, %v4532_v0 }
  0xea   :  { %3037 = vmatmul.mubr.bf16.vlgmr.msra.gmra.mrb[100].mxu0 %v3312_v59  ;;  %3153 = vmatmul.mubr.bf16.vlgmr.msra.gmra.mrb[100].mxu1 %v3313_v60 }
  0xeb   :  { %3040 = vmatprep.mubr.msk.bf16.mxu0 %vm3363_vm0, %v4532_v0  ;;  %3156 = vmatprep.mubr.msk.bf16.mxu1 %vm3363_vm0, %v4532_v0 }
  0xf2   :  { %3041 = vmatmul.mubr.bf16.gmra.mrb[104].mxu0 %v3314_v61  ;;  %3157 = vmatmul.mubr.bf16.gmra.mrb[104].mxu1 %v3315_v62 }
  0xf3   :  { %3044 = vmatprep.mubr.msk.bf16.mxu0 %vm3363_vm0, %v4532_v0  ;;  %3160 = vmatprep.mubr.msk.bf16.mxu1 %vm3363_vm0, %v4532_v0 }
  0xf5   :  { %v3729_v63 = vpop.f32.mrb[0].mxu0  ;;  %v3731_v1 = vpop.f32.mrb[0].mxu1 }
  0xf6   :  { %v2806_v3 = vpop.f32.mrb[1].mxu0  ;;  %v2922_v4 = vpop.f32.mrb[1].mxu1 }
  0xf7   :  { %v3741_v7 = vpop.f32.mrb[2].mxu0  ;;  %v3743_v8 = vpop.f32.mrb[2].mxu1 }
  0xf8   :  { %v2807_v10 = vpop.f32.mrb[3].mxu0  ;;  %v2923_v11 = vpop.f32.mrb[3].mxu1 }
  0xfa   :  { %3045 = vmatmul.mubr.bf16.gmra.mrb[108].mxu0 %v3316_v5  ;;  %3161 = vmatmul.mubr.bf16.gmra.mrb[108].mxu1 %v3317_v6  ;;  %v3326_v5 = vld [vmem:[%s4528_s2 + $0x38] sm:$0xff]  }
  0xfb   :  { %3048 = vmatprep.mubr.msk.bf16.mxu0 %vm3363_vm0, %v4532_v0  ;;  %3164 = vmatprep.mubr.msk.bf16.mxu1 %vm3363_vm0, %v4532_v0  ;;  %v3327_v6 = vld [vmem:[%s4529_s3 + $0x38] sm:$0xff]  }
  0xfd   :  { %v3751_v12 = vpop.f32.mrb[4].mxu0  ;;  %v3753_v13 = vpop.f32.mrb[4].mxu1 }
  0xfe   :  { %v2810_v15 = vpop.f32.mrb[5].mxu0  ;;  %v2926_v16 = vpop.f32.mrb[5].mxu1 }
  0xff   :  { %v3763_v19 = vpop.f32.mrb[6].mxu0  ;;  %v3765_v20 = vpop.f32.mrb[6].mxu1 }
 0x100   :  { %v2811_v22 = vpop.f32.mrb[7].mxu0  ;;  %v2927_v23 = vpop.f32.mrb[7].mxu1 }
 0x102   :  { %3049 = vmatmul.mubr.bf16.gmra.mrb[112].mxu0 %v3318_v17  ;;  %3165 = vmatmul.mubr.bf16.gmra.mrb[112].mxu1 %v3319_v18 }
 0x103   :  { %3052 = vmatprep.mubr.msk.bf16.mxu0 %vm3363_vm0, %v4532_v0  ;;  %3168 = vmatprep.mubr.msk.bf16.mxu1 %vm3363_vm0, %v4532_v0 }
 0x105   :  { %v3773_v24 = vpop.f32.mrb[8].mxu0  ;;  %v3775_v25 = vpop.f32.mrb[8].mxu1 }
 0x106   :  { %v2814_v27 = vpop.f32.mrb[9].mxu0  ;;  %v2930_v28 = vpop.f32.mrb[9].mxu1 }
 0x107   :  { %v3785_v31 = vpop.f32.mrb[10].mxu0  ;;  %v3787_v32 = vpop.f32.mrb[10].mxu1 }
 0x108   :  { %v2815_v34 = vpop.f32.mrb[11].mxu0  ;;  %v2931_v35 = vpop.f32.mrb[11].mxu1 }
 0x10a   :  { %3053 = vmatmul.mubr.bf16.gmra.mrb[116].mxu0 %v3320_v29  ;;  %3169 = vmatmul.mubr.bf16.gmra.mrb[116].mxu1 %v3321_v30  ;;  %v3328_v29 = vld [vmem:[%s4528_s2 + $0x40] sm:$0xff]  }
 0x10b   :  { %3056 = vmatprep.mubr.msk.bf16.mxu0 %vm3363_vm0, %v4532_v0  ;;  %3172 = vmatprep.mubr.msk.bf16.mxu1 %vm3363_vm0, %v4532_v0  ;;  %v3329_v30 = vld [vmem:[%s4529_s3 + $0x40] sm:$0xff]  }
 0x10d   :  { %v3795_v36 = vpop.f32.mrb[12].mxu0  ;;  %v3797_v37 = vpop.f32.mrb[12].mxu1 }
 0x10e   :  { %v2818_v39 = vpop.f32.mrb[13].mxu0  ;;  %v2934_v40 = vpop.f32.mrb[13].mxu1 }
 0x10f   :  { %v3807_v43 = vpop.f32.mrb[14].mxu0  ;;  %v3809_v44 = vpop.f32.mrb[14].mxu1 }
 0x110   :  { %v2819_v46 = vpop.f32.mrb[15].mxu0  ;;  %v2935_v47 = vpop.f32.mrb[15].mxu1 }
 0x112   :  { %3057 = vmatmul.mubr.bf16.gmra.mrb[120].mxu0 %v3322_v41  ;;  %3173 = vmatmul.mubr.bf16.gmra.mrb[120].mxu1 %v3323_v42 }
 0x113   :  { %3060 = vmatprep.mubr.msk.bf16.mxu0 %vm3363_vm0, %v4532_v0  ;;  %3176 = vmatprep.mubr.msk.bf16.mxu1 %vm3363_vm0, %v4532_v0 }
 0x115   :  { %v3817_v48 = vpop.f32.mrb[16].mxu0  ;;  %v3819_v49 = vpop.f32.mrb[16].mxu1 }
 0x116   :  { %v2822_v51 = vpop.f32.mrb[17].mxu0  ;;  %v2938_v52 = vpop.f32.mrb[17].mxu1 }
 0x117   :  { %v3829_v55 = vpop.f32.mrb[18].mxu0  ;;  %v3831_v56 = vpop.f32.mrb[18].mxu1 }
 0x118   :  { %v2823_v58 = vpop.f32.mrb[19].mxu0  ;;  %v2939_v59 = vpop.f32.mrb[19].mxu1 }
 0x11a   :  { %3061 = vmatmul.mubr.bf16.gmra.mrb[124].mxu0 %v3324_v53  ;;  %3177 = vmatmul.mubr.bf16.gmra.mrb[124].mxu1 %v3325_v54  ;;  %v3330_v53 = vld [vmem:[%s4528_s2 + $0x48] sm:$0xff]  }
 0x11b   :  { %3064 = vmatprep.mubr.msk.bf16.mxu0 %vm3363_vm0, %v4532_v0  ;;  %3180 = vmatprep.mubr.msk.bf16.mxu1 %vm3363_vm0, %v4532_v0  ;;  %v3331_v54 = vld [vmem:[%s4529_s3 + $0x48] sm:$0xff]  }
 0x11d   :  { %v3839_v60 = vpop.f32.mrb[20].mxu0  ;;  %v3841_v61 = vpop.f32.mrb[20].mxu1 }
 0x11e   :  { %v2826_v3 = vpop.f32.mrb[21].mxu0  ;;  %v2942_v4 = vpop.f32.mrb[21].mxu1 }
 0x11f   :  { %v3851_v10 = vpop.f32.mrb[22].mxu0  ;;  %v3853_v11 = vpop.f32.mrb[22].mxu1 }
 0x120   :  { %v2827_v16 = vpop.f32.mrb[23].mxu0  ;;  %v2943_v17 = vpop.f32.mrb[23].mxu1 }
 0x122   :  { %3065 = vmatmul.mubr.bf16.gmra.mrb[128].mxu0 %v3326_v5  ;;  %3181 = vmatmul.mubr.bf16.gmra.mrb[128].mxu1 %v3327_v6 }
 0x123   :  { %3068 = vmatprep.mubr.msk.bf16.mxu0 %vm3363_vm0, %v4532_v0  ;;  %3184 = vmatprep.mubr.msk.bf16.mxu1 %vm3363_vm0, %v4532_v0 }
 0x125   :  { %v3861_v18 = vpop.f32.mrb[24].mxu0  ;;  %v3863_v22 = vpop.f32.mrb[24].mxu1 }
 0x126   :  { %v2830_v27 = vpop.f32.mrb[25].mxu0  ;;  %v2946_v28 = vpop.f32.mrb[25].mxu1 }
 0x127   :  { %v3873_v34 = vpop.f32.mrb[26].mxu0  ;;  %v3875_v35 = vpop.f32.mrb[26].mxu1 }
 0x128   :  { %v2831_v40 = vpop.f32.mrb[27].mxu0  ;;  %v2947_v41 = vpop.f32.mrb[27].mxu1 }
 0x12a   :  { %3069 = vmatmul.mubr.bf16.gmra.mrb[132].mxu0 %v3328_v29  ;;  %3185 = vmatmul.mubr.bf16.gmra.mrb[132].mxu1 %v3329_v30  ;;  %v3332_v29 = vld [vmem:[%s4528_s2 + $0x50] sm:$0xff]  }
 0x12b   :  { %3072 = vmatprep.mubr.msk.bf16.mxu0 %vm3363_vm0, %v4532_v0  ;;  %3188 = vmatprep.mubr.msk.bf16.mxu1 %vm3363_vm0, %v4532_v0  ;;  %v3333_v30 = vld [vmem:[%s4529_s3 + $0x50] sm:$0xff]  }
 0x12d   :  { %v3883_v42 = vpop.f32.mrb[28].mxu0  ;;  %v3885_v46 = vpop.f32.mrb[28].mxu1 }
 0x12e   :  { %v2834_v51 = vpop.f32.mrb[29].mxu0  ;;  %v2950_v52 = vpop.f32.mrb[29].mxu1 }
 0x12f   :  { %v3895_v58 = vpop.f32.mrb[30].mxu0  ;;  %v3897_v59 = vpop.f32.mrb[30].mxu1 }
 0x130   :  { %v2835_v4 = vpop.f32.mrb[31].mxu0  ;;  %v2951_v5 = vpop.f32.mrb[31].mxu1 }
 0x132   :  { %3073 = vmatmul.mubr.bf16.gmra.mrb[136].mxu0 %v3330_v53  ;;  %3189 = vmatmul.mubr.bf16.gmra.mrb[136].mxu1 %v3331_v54 }
 0x133   :  { %3076 = vmatprep.mubr.msk.bf16.mxu0 %vm3363_vm0, %v4532_v0  ;;  %3192 = vmatprep.mubr.msk.bf16.mxu1 %vm3363_vm0, %v4532_v0 }
 0x135   :  { %v3905_v6 = vpop.f32.mrb[32].mxu0  ;;  %v3907_v16 = vpop.f32.mrb[32].mxu1 }
 0x136   :  { %v2838_v27 = vpop.f32.mrb[33].mxu0  ;;  %v2954_v28 = vpop.f32.mrb[33].mxu1 }
 0x137   :  { %v3917_v40 = vpop.f32.mrb[34].mxu0  ;;  %v3919_v41 = vpop.f32.mrb[34].mxu1 }
 0x138   :  { %v2839_v52 = vpop.f32.mrb[35].mxu0  ;;  %v2955_v53 = vpop.f32.mrb[35].mxu1 }
 0x13a   :  { %3077 = vmatmul.mubr.bf16.gmra.mrb[140].mxu0 %v3332_v29  ;;  %3193 = vmatmul.mubr.bf16.gmra.mrb[140].mxu1 %v3333_v30  ;;  %v3334_v29 = vld [vmem:[%s4528_s2 + $0x58] sm:$0xff]  }
 0x13b   :  { %3080 = vmatprep.mubr.msk.bf16.mxu0 %vm3363_vm0, %v4532_v0  ;;  %3196 = vmatprep.mubr.msk.bf16.mxu1 %vm3363_vm0, %v4532_v0  ;;  %v3335_v30 = vld [vmem:[%s4529_s3 + $0x58] sm:$0xff]  }
 0x13d   :  { %v3927_v54 = vpop.f32.mrb[36].mxu0  ;;  %v3929_v4 = vpop.f32.mrb[36].mxu1 }
 0x13e   :  { %v2842_v27 = vpop.f32.mrb[37].mxu0  ;;  %v2958_v28 = vpop.f32.mrb[37].mxu1 }
 0x13f   :  { %v3939_v52 = vpop.f32.mrb[38].mxu0  ;;  %v3941_v53 = vpop.f32.mrb[38].mxu1 }
 0x140   :  { %v2843_v17 = vpop.f32.mrb[39].mxu0  ;;  %v2959_v3 = vpop.f32.mrb[39].mxu1 }
 0x141   :  { %v3336_v3 = vld [vmem:[%s4528_s2 + $0x60] sm:$0xff]  }
 0x142   :  { %3081 = vmatmul.mubr.bf16.gmra.mrb[144].mxu0 %v3334_v29  ;;  %3197 = vmatmul.mubr.bf16.gmra.mrb[144].mxu1 %v3335_v30  ;;  %v3337_v17 = vld [vmem:[%s4529_s3 + $0x60] sm:$0xff]  }
 0x143   :  { %3084 = vmatprep.mubr.msk.bf16.mxu0 %vm3363_vm0, %v4532_v0  ;;  %3200 = vmatprep.mubr.msk.bf16.mxu1 %vm3363_vm0, %v4532_v0 }
 0x145   :  { %v3949_v27 = vpop.f32.mrb[40].mxu0  ;;  %v3951_v28 = vpop.f32.mrb[40].mxu1 }
 0x146   :  { %v2846_v47 = vpop.f32.mrb[41].mxu0  ;;  %v2962_v39 = vpop.f32.mrb[41].mxu1 }
 0x147   :  { %v3961_v29 = vpop.f32.mrb[42].mxu0  ;;  %v3963_v30 = vpop.f32.mrb[42].mxu1 }
 0x148   :  { %v2847_v23 = vpop.f32.mrb[43].mxu0  ;;  %v2963_v15 = vpop.f32.mrb[43].mxu1 }
 0x149   :  { %v3338_v15 = vld [vmem:[%s4528_s2 + $0x68] sm:$0xff]  }
 0x14a   :  { %3085 = vmatmul.mubr.bf16.gmra.mrb[148].mxu0 %v3336_v3  ;;  %3201 = vmatmul.mubr.bf16.gmra.mrb[148].mxu1 %v3337_v17  ;;  %v3339_v23 = vld [vmem:[%s4529_s3 + $0x68] sm:$0xff]  }
 0x14b   :  { %3088 = vmatprep.mubr.msk.bf16.mxu0 %vm3363_vm0, %v4532_v0  ;;  %3204 = vmatprep.mubr.msk.bf16.mxu1 %vm3363_vm0, %v4532_v0 }
 0x14d   :  { %v3971_v39 = vpop.f32.mrb[44].mxu0  ;;  %v3973_v47 = vpop.f32.mrb[44].mxu1 }
 0x14e   :  { %4588 = vst [vmem:[#allocation2_spill] sm:$0xff] %v3971_v39  ;;  %4589 = vst [vmem:[#allocation3_spill] sm:$0xff] %v3973_v47  ;;  %v2850_v62 = vpop.f32.mrb[45].mxu0  ;;  %v2966_v57 = vpop.f32.mrb[45].mxu1 }
 0x14f   :  { %v3983_v3 = vpop.f32.mrb[46].mxu0  ;;  %v3985_v17 = vpop.f32.mrb[46].mxu1 }
 0x150   :  { %4590 = vst [vmem:[#allocation4_spill] sm:$0xff] %v3983_v3  ;;  %4591 = vst [vmem:[#allocation5_spill] sm:$0xff] %v3985_v17  ;;  %v2851_v50 = vpop.f32.mrb[47].mxu0  ;;  %v2967_v45 = vpop.f32.mrb[47].mxu1 }
 0x151   :  { %v3340_v45 = vld [vmem:[%s4528_s2 + $0x70] sm:$0xff]  }
 0x152   :  { %3089 = vmatmul.mubr.bf16.gmra.mrb[152].mxu0 %v3338_v15  ;;  %3205 = vmatmul.mubr.bf16.gmra.mrb[152].mxu1 %v3339_v23  ;;  %v3341_v50 = vld [vmem:[%s4529_s3 + $0x70] sm:$0xff]  }
 0x153   :  { %3092 = vmatprep.mubr.msk.bf16.mxu0 %vm3363_vm0, %v4532_v0  ;;  %3208 = vmatprep.mubr.msk.bf16.mxu1 %vm3363_vm0, %v4532_v0 }
 0x155   :  { %v3993_v57 = vpop.f32.mrb[48].mxu0  ;;  %v3995_v62 = vpop.f32.mrb[48].mxu1 }
 0x156   :  { %4592 = vst [vmem:[#allocation6_spill] sm:$0xff] %v3993_v57  ;;  %4593 = vst [vmem:[#allocation7_spill] sm:$0xff] %v3995_v62  ;;  %v2854_v38 = vpop.f32.mrb[49].mxu0  ;;  %v2970_v33 = vpop.f32.mrb[49].mxu1 }
 0x157   :  { %v4005_v15 = vpop.f32.mrb[50].mxu0  ;;  %v4007_v23 = vpop.f32.mrb[50].mxu1 }
 0x158   :  { %4594 = vst [vmem:[#allocation8_spill] sm:$0xff] %v4005_v15  ;;  %4595 = vst [vmem:[#allocation9_spill] sm:$0xff] %v4007_v23  ;;  %v2855_v26 = vpop.f32.mrb[51].mxu0  ;;  %v2971_v21 = vpop.f32.mrb[51].mxu1 }
 0x159   :  { %v3342_v21 = vld [vmem:[%s4528_s2 + $0x78] sm:$0xff]  }
 0x15a   :  { %3093 = vmatmul.mubr.bf16.gmra.mrb[156].mxu0 %v3340_v45  ;;  %3209 = vmatmul.mubr.bf16.gmra.mrb[156].mxu1 %v3341_v50  ;;  %v3343_v26 = vld [vmem:[%s4529_s3 + $0x78] sm:$0xff]  }
 0x15b   :  { %3096 = vmatprep.mubr.msk.bf16.mxu0 %vm3363_vm0, %v4532_v0  ;;  %3212 = vmatprep.mubr.msk.bf16.mxu1 %vm3363_vm0, %v4532_v0 }
 0x15d   :  { %v4015_v33 = vpop.f32.mrb[52].mxu0  ;;  %v4017_v38 = vpop.f32.mrb[52].mxu1 }
 0x15e   :  { %4596 = vst [vmem:[#allocation10_spill] sm:$0xff] %v4015_v33  ;;  %4597 = vst [vmem:[#allocation11_spill] sm:$0xff] %v4017_v38  ;;  %v2858_v14 = vpop.f32.mrb[53].mxu0  ;;  %v2974_v9 = vpop.f32.mrb[53].mxu1 }
 0x15f   :  { %v4027_v45 = vpop.f32.mrb[54].mxu0  ;;  %v4029_v50 = vpop.f32.mrb[54].mxu1  ;;  %v4600_v9 = vmov 0.0  }
 0x160   :  { %4598 = vst [vmem:[#allocation12_spill] sm:$0xff] %v4027_v45  ;;  %4599 = vst [vmem:[#allocation13_spill] sm:$0xff] %v4029_v50  ;;  %v2859_v2 = vpop.f32.mrb[55].mxu0  ;;  %v2975_v0 = vpop.f32.mrb[55].mxu1 }
 0x161   :  { %v3344_v0 = vld [vmem:[%s4528_s2 + $0x80] sm:$0xff]  }
 0x162   :  { %3097 = vmatmul.mubr.bf16.gmra.mrb[160].mxu0 %v3342_v21  ;;  %3213 = vmatmul.mubr.bf16.gmra.mrb[160].mxu1 %v3343_v26  ;;  %v3345_v2 = vld [vmem:[%s4529_s3 + $0x80] sm:$0xff]  }
 0x163   :  { %3100 = vmatprep.mubr.msk.bf16.mxu0 %vm3363_vm0, %v4600_v9  ;;  %3216 = vmatprep.mubr.msk.bf16.mxu1 %vm3363_vm0, %v4600_v9 }
 0x165   :  { %v4037_v14 = vpop.f32.mrb[56].mxu0  ;;  %v4039_v5 = vpop.f32.mrb[56].mxu1 }
 0x166   :  { %4601 = vst [vmem:[#allocation14_spill] sm:$0xff] %v4037_v14  ;;  %4602 = vst [vmem:[#allocation15_spill] sm:$0xff] %v4039_v5  ;;  %v2862_v33 = vpop.f32.mrb[57].mxu0  ;;  %v2978_v23 = vpop.f32.mrb[57].mxu1 }
 0x167   :  { %v4049_v21 = vpop.f32.mrb[58].mxu0  ;;  %v4051_v26 = vpop.f32.mrb[58].mxu1 }
 0x168   :  { %4603 = vst [vmem:[#allocation16_spill] sm:$0xff] %v4049_v21  ;;  %4604 = vst [vmem:[#allocation17_spill] sm:$0xff] %v4051_v26  ;;  %v2863_v50 = vpop.f32.mrb[59].mxu0  ;;  %v2979_v45 = vpop.f32.mrb[59].mxu1 }
 0x169   :  { %v3346_v45 = vld [vmem:[%s4528_s2 + $0x88] sm:$0xff]  }
 0x16a   :  { %3101 = vmatmul.mubr.bf16.gmra.mrb[164].mxu0 %v3344_v0  ;;  %3217 = vmatmul.mubr.bf16.gmra.mrb[164].mxu1 %v3345_v2  ;;  %v3347_v50 = vld [vmem:[%s4529_s3 + $0x88] sm:$0xff]  }
 0x16b   :  { %3104 = vmatprep.mubr.msk.bf16.mxu0 %vm3363_vm0, %v4600_v9  ;;  %3220 = vmatprep.mubr.msk.bf16.mxu1 %vm3363_vm0, %v4600_v9 }
 0x16d   :  { %v4059_v23 = vpop.f32.mrb[60].mxu0  ;;  %v4061_v33 = vpop.f32.mrb[60].mxu1 }
 0x16e   :  { %4605 = vst [vmem:[#allocation18_spill] sm:$0xff] %v4059_v23  ;;  %4606 = vst [vmem:[#allocation19_spill] sm:$0xff] %v4061_v33  ;;  %v2866_v5 = vpop.f32.mrb[61].mxu0  ;;  %v2982_v14 = vpop.f32.mrb[61].mxu1 }
 0x16f   :  { %v4071_v0 = vpop.f32.mrb[62].mxu0  ;;  %v4073_v2 = vpop.f32.mrb[62].mxu1 }
 0x170   :  { %4607 = vst [vmem:[#allocation20_spill] sm:$0xff] %v4071_v0  ;;  %4608 = vst [vmem:[#allocation21_spill] sm:$0xff] %v4073_v2  ;;  %v2867_v26 = vpop.f32.mrb[63].mxu0  ;;  %v2983_v21 = vpop.f32.mrb[63].mxu1 }
 0x171   :  { %v3348_v21 = vld [vmem:[%s4528_s2 + $0x90] sm:$0xff]  }
 0x172   :  { %3105 = vmatmul.mubr.bf16.gmra.mrb[168].mxu0 %v3346_v45  ;;  %3221 = vmatmul.mubr.bf16.gmra.mrb[168].mxu1 %v3347_v50  ;;  %v3349_v26 = vld [vmem:[%s4529_s3 + $0x90] sm:$0xff]  }
 0x173   :  { %3108 = vmatprep.mubr.msk.bf16.mxu0 %vm3363_vm0, %v4600_v9  ;;  %3224 = vmatprep.mubr.msk.bf16.mxu1 %vm3363_vm0, %v4600_v9 }
 0x175   :  { %v4081_v5 = vpop.f32.mrb[64].mxu0  ;;  %v4083_v14 = vpop.f32.mrb[64].mxu1 }
 0x176   :  { %4609 = vst [vmem:[#allocation22_spill] sm:$0xff] %v4081_v5  ;;  %4610 = vst [vmem:[#allocation23_spill] sm:$0xff] %v4083_v14  ;;  %v2870_v33 = vpop.f32.mrb[65].mxu0  ;;  %v2986_v23 = vpop.f32.mrb[65].mxu1 }
 0x177   :  { %v4093_v45 = vpop.f32.mrb[66].mxu0  ;;  %v4095_v50 = vpop.f32.mrb[66].mxu1 }
 0x178   :  { %4611 = vst [vmem:[#allocation24_spill] sm:$0xff] %v4093_v45  ;;  %4612 = vst [vmem:[#allocation25_spill] sm:$0xff] %v4095_v50  ;;  %v2871_v2 = vpop.f32.mrb[67].mxu0  ;;  %v2987_v0 = vpop.f32.mrb[67].mxu1 }
 0x179   :  { %v3350_v0 = vld [vmem:[%s4528_s2 + $0x98] sm:$0xff]  }
 0x17a   :  { %3109 = vmatmul.mubr.bf16.gmra.mrb[172].mxu0 %v3348_v21  ;;  %3225 = vmatmul.mubr.bf16.gmra.mrb[172].mxu1 %v3349_v26  ;;  %v3351_v2 = vld [vmem:[%s4529_s3 + $0x98] sm:$0xff]  }
 0x17b   :  { %3112 = vmatprep.mubr.msk.bf16.mxu0 %vm3363_vm0, %v4600_v9  ;;  %3228 = vmatprep.mubr.msk.bf16.mxu1 %vm3363_vm0, %v4600_v9 }
 0x17d   :  { %v4103_v23 = vpop.f32.mrb[68].mxu0  ;;  %v4105_v33 = vpop.f32.mrb[68].mxu1 }
 0x17e   :  { %4613 = vst [vmem:[#allocation26_spill] sm:$0xff] %v4103_v23  ;;  %4614 = vst [vmem:[#allocation27_spill] sm:$0xff] %v4105_v33  ;;  %v2874_v14 = vpop.f32.mrb[69].mxu0  ;;  %v2990_v5 = vpop.f32.mrb[69].mxu1 }
 0x17f   :  { %v4115_v21 = vpop.f32.mrb[70].mxu0  ;;  %v4117_v26 = vpop.f32.mrb[70].mxu1 }
 0x180   :  { %4615 = vst [vmem:[#allocation28_spill] sm:$0xff] %v4115_v21  ;;  %4616 = vst [vmem:[#allocation29_spill] sm:$0xff] %v4117_v26  ;;  %v2875_v50 = vpop.f32.mrb[71].mxu0  ;;  %v2991_v45 = vpop.f32.mrb[71].mxu1 }
 0x181   :  { %v3352_v45 = vld [vmem:[%s4528_s2 + $0xa0] sm:$0xff]  }
 0x182   :  { %3113 = vmatmul.mubr.bf16.gmra.mrb[176].mxu0 %v3350_v0  ;;  %3229 = vmatmul.mubr.bf16.gmra.mrb[176].mxu1 %v3351_v2  ;;  %v3353_v50 = vld [vmem:[%s4529_s3 + $0xa0] sm:$0xff]  }
 0x183   :  { %3116 = vmatprep.mubr.msk.bf16.mxu0 %vm3363_vm0, %v4600_v9  ;;  %3232 = vmatprep.mubr.msk.bf16.mxu1 %vm3363_vm0, %v4600_v9 }
 0x185   :  { %v4125_v5 = vpop.f32.mrb[72].mxu0  ;;  %v4127_v14 = vpop.f32.mrb[72].mxu1 }
 0x186   :  { %4617 = vst [vmem:[#allocation30_spill] sm:$0xff] %v4125_v5  ;;  %4618 = vst [vmem:[#allocation31_spill] sm:$0xff] %v4127_v14  ;;  %v2878_v33 = vpop.f32.mrb[73].mxu0  ;;  %v2994_v23 = vpop.f32.mrb[73].mxu1 }
 0x187   :  { %v4137_v0 = vpop.f32.mrb[74].mxu0  ;;  %v4139_v2 = vpop.f32.mrb[74].mxu1 }
 0x188   :  { %4619 = vst [vmem:[#allocation32_spill] sm:$0xff] %v4137_v0  ;;  %4620 = vst [vmem:[#allocation33_spill] sm:$0xff] %v4139_v2  ;;  %v2879_v26 = vpop.f32.mrb[75].mxu0  ;;  %v2995_v21 = vpop.f32.mrb[75].mxu1 }
 0x189   :  { %v3354_v21 = vld [vmem:[%s4528_s2 + $0xa8] sm:$0xff]  }
 0x18a   :  { %3117 = vmatmul.mubr.bf16.gmra.mrb[180].mxu0 %v3352_v45  ;;  %3233 = vmatmul.mubr.bf16.gmra.mrb[180].mxu1 %v3353_v50  ;;  %v3355_v26 = vld [vmem:[%s4529_s3 + $0xa8] sm:$0xff]  }
 0x18b   :  { %3120 = vmatprep.mubr.msk.bf16.mxu0 %vm3363_vm0, %v4600_v9  ;;  %3236 = vmatprep.mubr.msk.bf16.mxu1 %vm3363_vm0, %v4600_v9 }
 0x18d   :  { %v4147_v23 = vpop.f32.mrb[76].mxu0  ;;  %v4149_v33 = vpop.f32.mrb[76].mxu1 }
 0x18e   :  { %4621 = vst [vmem:[#allocation34_spill] sm:$0xff] %v4147_v23  ;;  %4622 = vst [vmem:[#allocation35_spill] sm:$0xff] %v4149_v33  ;;  %v2882_v14 = vpop.f32.mrb[77].mxu0  ;;  %v2998_v5 = vpop.f32.mrb[77].mxu1 }
 0x18f   :  { %v4159_v45 = vpop.f32.mrb[78].mxu0  ;;  %v4161_v50 = vpop.f32.mrb[78].mxu1 }
 0x190   :  { %4623 = vst [vmem:[#allocation36_spill] sm:$0xff] %v4159_v45  ;;  %4624 = vst [vmem:[#allocation37_spill] sm:$0xff] %v4161_v50  ;;  %v2883_v2 = vpop.f32.mrb[79].mxu0  ;;  %v2999_v0 = vpop.f32.mrb[79].mxu1 }
 0x191   :  { %v3356_v0 = vld [vmem:[%s4528_s2 + $0xb0] sm:$0xff]  }
 0x192   :  { %3121 = vmatmul.mubr.bf16.gmra.mrb[184].mxu0 %v3354_v21  ;;  %3237 = vmatmul.mubr.bf16.gmra.mrb[184].mxu1 %v3355_v26  ;;  %v3357_v2 = vld [vmem:[%s4529_s3 + $0xb0] sm:$0xff]  }
 0x193   :  { %3124 = vmatprep.mubr.msk.bf16.mxu0 %vm3363_vm0, %v4600_v9  ;;  %3240 = vmatprep.mubr.msk.bf16.mxu1 %vm3363_vm0, %v4600_v9 }
 0x195   :  { %v4169_v5 = vpop.f32.mrb[80].mxu0  ;;  %v4171_v14 = vpop.f32.mrb[80].mxu1 }
 0x196   :  { %4625 = vst [vmem:[#allocation38_spill] sm:$0xff] %v4169_v5  ;;  %4626 = vst [vmem:[#allocation39_spill] sm:$0xff] %v4171_v14  ;;  %v2886_v33 = vpop.f32.mrb[81].mxu0  ;;  %v3002_v23 = vpop.f32.mrb[81].mxu1 }
 0x197   :  { %v4181_v21 = vpop.f32.mrb[82].mxu0  ;;  %v4183_v26 = vpop.f32.mrb[82].mxu1 }
 0x198   :  { %4627 = vst [vmem:[#allocation40_spill] sm:$0xff] %v4181_v21  ;;  %4628 = vst [vmem:[#allocation41_spill] sm:$0xff] %v4183_v26  ;;  %v2887_v50 = vpop.f32.mrb[83].mxu0  ;;  %v3003_v45 = vpop.f32.mrb[83].mxu1 }
 0x199   :  { %v3358_v45 = vld [vmem:[%s4528_s2 + $0xb8] sm:$0xff]  }
 0x19a   :  { %3125 = vmatmul.mubr.bf16.gmra.mrb[188].mxu0 %v3356_v0  ;;  %3241 = vmatmul.mubr.bf16.gmra.mrb[188].mxu1 %v3357_v2  ;;  %v3359_v50 = vld [vmem:[%s4529_s3 + $0xb8] sm:$0xff]  }
 0x19b   :  { %3128 = vmatprep.mubr.msk.bf16.mxu0 %vm3363_vm0, %v4600_v9  ;;  %3244 = vmatprep.mubr.msk.bf16.mxu1 %vm3363_vm0, %v4600_v9 }
 0x19d   :  { %v4191_v23 = vpop.f32.mrb[84].mxu0  ;;  %v4193_v33 = vpop.f32.mrb[84].mxu1 }
 0x19e   :  { %4629 = vst [vmem:[#allocation42_spill] sm:$0xff] %v4191_v23  ;;  %4630 = vst [vmem:[#allocation43_spill] sm:$0xff] %v4193_v33  ;;  %v2890_v14 = vpop.f32.mrb[85].mxu0  ;;  %v3006_v5 = vpop.f32.mrb[85].mxu1 }
 0x19f   :  { %v4203_v0 = vpop.f32.mrb[86].mxu0  ;;  %v4205_v2 = vpop.f32.mrb[86].mxu1 }
 0x1a0   :  { %4631 = vst [vmem:[#allocation44_spill] sm:$0xff] %v4203_v0  ;;  %4632 = vst [vmem:[#allocation45_spill] sm:$0xff] %v4205_v2  ;;  %v2891_v26 = vpop.f32.mrb[87].mxu0  ;;  %v3007_v21 = vpop.f32.mrb[87].mxu1 }
 0x1a1   :  { %v3360_v21 = vld [vmem:[%s4528_s2 + $0xc0] ss:$0 sps:$4 sm:$0xff]  }
 0x1a2   :  { %3129 = vmatmul.mubr.bf16.gmra.mrb[192].mxu0 %v3358_v45  ;;  %3245 = vmatmul.mubr.bf16.gmra.mrb[192].mxu1 %v3359_v50  ;;  %v3361_v26 = vld [vmem:[%s4529_s3 + $0xc0] ss:$0 sps:$4 sm:$0xff]  }
 0x1a3   :  { %3132 = vmatprep.mubr.msk.bf16.mxu0 %vm3363_vm0, %v4600_v9  ;;  %3248 = vmatprep.mubr.msk.bf16.mxu1 %vm3363_vm0, %v4600_v9 }
 0x1a5   :  { %v4213_v5 = vpop.f32.mrb[88].mxu0  ;;  %v4215_v14 = vpop.f32.mrb[88].mxu1 }
 0x1a6   :  { %4633 = vst [vmem:[#allocation46_spill] sm:$0xff] %v4213_v5  ;;  %4634 = vst [vmem:[#allocation47_spill] sm:$0xff] %v4215_v14  ;;  %v2894_v33 = vpop.f32.mrb[89].mxu0  ;;  %v3010_v23 = vpop.f32.mrb[89].mxu1 }
 0x1a7   :  { %v4225_v45 = vpop.f32.mrb[90].mxu0  ;;  %v4227_v9 = vpop.f32.mrb[90].mxu1 }
 0x1a8   :  { %4635 = vst [vmem:[#allocation48_spill] sm:$0xff] %v4225_v45  ;;  %4636 = vst [vmem:[#allocation49_spill] sm:$0xff] %v4227_v9  ;;  %v2895_v51 = vpop.f32.mrb[91].mxu0  ;;  %v3011_v2 = vpop.f32.mrb[91].mxu1 }
 0x1aa   :  { %3133 = vmatmul.mubr.bf16.gmra.mrb[196].mxu0 %v3360_v21  ;;  %3249 = vmatmul.mubr.bf16.gmra.mrb[196].mxu1 %v3361_v26 }
 0x1ad   :  { %v4231_v23 = vpop.f32.mrb[92].mxu0  ;;  %v4233_v33 = vpop.f32.mrb[92].mxu1 }
 0x1ae   :  { %4637 = vst [vmem:[#allocation50_spill] sm:$0xff] %v4231_v23  ;;  %4638 = vst [vmem:[#allocation51_spill] sm:$0xff] %v4233_v33  ;;  %v2898_v14 = vpop.f32.mrb[93].mxu0  ;;  %v3014_v5 = vpop.f32.mrb[93].mxu1 }
 0x1af   :  { %v4237_v0 = vpop.f32.mrb[94].mxu0  ;;  %v4239_v15 = vpop.f32.mrb[94].mxu1 }
 0x1b0   :  { %4639 = vst [vmem:[#allocation52_spill] sm:$0xff] %v4237_v0  ;;  %4640 = vst [vmem:[#allocation53_spill] sm:$0xff] %v4239_v15  ;;  %v2899_v51 = vpop.f32.mrb[95].mxu0  ;;  %v3015_v2 = vpop.f32.mrb[95].mxu1 }
 0x1b1   :  { %v4252_v51 = vld [vmem:[%s4530_s5] ss:$0 sm:$0xff] }
 0x1b5   :  { %v4243_v21 = vpop.f32.mrb[96].mxu0  ;;  %v4245_v26 = vpop.f32.mrb[96].mxu1 }
 0x1b6   :  { %4641 = vst [vmem:[#allocation54_spill] sm:$0xff] %v4243_v21  ;;  %4642 = vst [vmem:[#allocation55_spill] sm:$0xff] %v4245_v26  ;;  %v2902_v45 = vpop.f32.mrb[97].mxu0  ;;  %v3018_v38 = vpop.f32.mrb[97].mxu1 }
 0x1b7   :  { %v514_v14 = vpop.f32.mrb[98].mxu0  ;;  %v943_v5 = vpop.f32.mrb[98].mxu1  ;;  %v4643_v45 = vmax.f32 %v3729_v63, %v3731_v1 }
 0x1b8   :  { %v2903_v33 = vpop.f32.mrb[99].mxu0  ;;  %v3019_v23 = vpop.f32.mrb[99].mxu1 }
 0x1bd   :  { %v1177_v62 = vpop.f32.mrb[100].mxu0  ;;  %v1606_v57 = vpop.f32.mrb[100].mxu1 }
 0x1be   :  { %v1853_v17 = vmax.f32 %v1177_v62, %v1606_v57  ;;  %v3038_v3 = vpop.f32.mrb[101].mxu0  ;;  %v3154_v50 = vpop.f32.mrb[101].mxu1 }
 0x1bf   :  { %v1180_v2 = vpop.f32.mrb[102].mxu0  ;;  %v1609_v15 = vpop.f32.mrb[102].mxu1  ;;  %v4644_v3 = vmax.f32 %v3741_v7, %v3743_v8 }
 0x1c0   :  { %v1902_v38 = vmax.f32 %v4643_v45, %v1853_v17  ;;  %v1854_v14 = vmax.f32 %v1180_v2, %v1609_v15  ;;  %v3039_v5 = vpop.f32.mrb[103].mxu0  ;;  %v3155_v33 = vpop.f32.mrb[103].mxu1  ;;  %v4645_v15 = vmax.f32 %v3751_v12, %v3753_v13 }
 0x1c2   :  { %v1958_v23 = vadd.f32 %v4252_v51, %v1902_v38  ;;  %v1903_v57 = vmax.f32 %v4644_v3, %v1854_v14 }
 0x1c4   :  { %v1959_v62 = vadd.f32 %v4252_v51, %v1903_v57  ;;  %v2007_v26 = vmax.f32 %v1958_v23, 0.0  ;;  %v4647_v57 = vmax.f32 %v3773_v24, %v3775_v25 }
 0x1c5   :  { %v1185_v50 = vpop.f32.mrb[104].mxu0  ;;  %v1614_v9 = vpop.f32.mrb[104].mxu1 }
 0x1c6   :  { %v2008_v21 = vmax.f32 %v1959_v62, 0.0  ;;  %v1855_v0 = vmax.f32 %v1185_v50, %v1614_v9  ;;  %v3042_v47 = vpop.f32.mrb[105].mxu0  ;;  %v3158_v39 = vpop.f32.mrb[105].mxu1 }
 0x1c7   :  { %v1188_v63 = vpop.f32.mrb[106].mxu0  ;;  %v1617_v1 = vpop.f32.mrb[106].mxu1  ;;  %v4646_v47 = vmax.f32 %v3763_v19, %v3765_v20 }
 0x1c8   :  { %v2516_v17 = vpack.c.bf16 %v2008_v21, %v2007_v26  ;;  %v1904_v2 = vmax.f32 %v4645_v15, %v1855_v0  ;;  %v1856_v45 = vmax.f32 %v1188_v63, %v1617_v1  ;;  %v3043_v38 = vpop.f32.mrb[107].mxu0  ;;  %v3159_v7 = vpop.f32.mrb[107].mxu1  ;;  %v4648_v1 = vmax.f32 %v3785_v31, %v3787_v32 }
 0x1ca   :  { %2517 = vst [vmem:[%s4531_s6] sm:$0xff] %v2516_v17   ;;  %v1960_v8 = vadd.f32 %v4252_v51, %v1904_v2  ;;  %v1905_v39 = vmax.f32 %v4646_v47, %v1856_v45 }
 0x1cc   :  { %v1961_v9 = vadd.f32 %v4252_v51, %v1905_v39  ;;  %v2009_v14 = vmax.f32 %v1960_v8, 0.0 }
 0x1cd   :  { %v1193_v21 = vpop.f32.mrb[108].mxu0  ;;  %v1622_v26 = vpop.f32.mrb[108].mxu1 }
 0x1ce   :  { %v2010_v12 = vmax.f32 %v1961_v9, 0.0  ;;  %v1857_v13 = vmax.f32 %v1193_v21, %v1622_v26  ;;  %v3046_v0 = vpop.f32.mrb[109].mxu0  ;;  %v3162_v5 = vpop.f32.mrb[109].mxu1  ;;  %v4649_v21 = vmax.f32 %v3795_v36, %v3797_v37 }
 0x1cf   :  { %v1196_v33 = vpop.f32.mrb[110].mxu0  ;;  %v1625_v23 = vpop.f32.mrb[110].mxu1 }
 0x1d0   :  { %v2521_v3 = vpack.c.bf16 %v2010_v12, %v2009_v14  ;;  %v1906_v62 = vmax.f32 %v4647_v57, %v1857_v13  ;;  %v1858_v50 = vmax.f32 %v1196_v33, %v1625_v23  ;;  %v3047_v63 = vpop.f32.mrb[111].mxu0  ;;  %v3163_v19 = vpop.f32.mrb[111].mxu1  ;;  %v4650_v13 = vmax.f32 %v3807_v43, %v3809_v44 }
 0x1d2   :  { %2633 = vst [vmem:[%s4531_s6 + $0x8] sm:$0xff] %v2521_v3   ;;  %v1962_v20 = vadd.f32 %v4252_v51, %v1906_v62  ;;  %v1907_v17 = vmax.f32 %v4648_v1, %v1858_v50 }
 0x1d4   :  { %v1963_v15 = vadd.f32 %v4252_v51, %v1907_v17  ;;  %v2011_v38 = vmax.f32 %v1962_v20, 0.0  ;;  %v4651_v20 = vmax.f32 %v3817_v48, %v3819_v49 }
 0x1d5   :  { %v1201_v2 = vpop.f32.mrb[112].mxu0  ;;  %v1630_v45 = vpop.f32.mrb[112].mxu1 }
 0x1d6   :  { %v2012_v24 = vmax.f32 %v1963_v15, 0.0  ;;  %v1859_v25 = vmax.f32 %v1201_v2, %v1630_v45  ;;  %v3050_v7 = vpop.f32.mrb[113].mxu0  ;;  %v3166_v8 = vpop.f32.mrb[113].mxu1  ;;  %v4652_v2 = vmax.f32 %v3829_v55, %v3831_v56 }
 0x1d7   :  { %v1204_v47 = vpop.f32.mrb[114].mxu0  ;;  %v1633_v39 = vpop.f32.mrb[114].mxu1 }
 0x1d8   :  { %v2526_v9 = vpack.c.bf16 %v2012_v24, %v2011_v38  ;;  %v1908_v26 = vmax.f32 %v4649_v21, %v1859_v25  ;;  %v1860_v14 = vmax.f32 %v1204_v47, %v1633_v39  ;;  %v3051_v12 = vpop.f32.mrb[115].mxu0  ;;  %v3167_v31 = vpop.f32.mrb[115].mxu1 }
 0x1da   :  { %2634 = vst [vmem:[%s4531_s6 + $0x10] sm:$0xff] %v2526_v9   ;;  %v1964_v32 = vadd.f32 %v4252_v51, %v1908_v26  ;;  %v1909_v0 = vmax.f32 %v4650_v13, %v1860_v14  ;;  %v4653_v26 = vmax.f32 %v3839_v60, %v3841_v61 }
 0x1dc   :  { %v1965_v5 = vadd.f32 %v4252_v51, %v1909_v0  ;;  %v2013_v3 = vmax.f32 %v1964_v32, 0.0  ;;  %v4654_v32 = vmax.f32 %v3851_v10, %v3853_v11 }
 0x1dd   :  { %v1209_v33 = vpop.f32.mrb[116].mxu0  ;;  %v1638_v23 = vpop.f32.mrb[116].mxu1 }
 0x1de   :  { %v2014_v36 = vmax.f32 %v1965_v5, 0.0  ;;  %v1861_v37 = vmax.f32 %v1209_v33, %v1638_v23  ;;  %v3054_v57 = vpop.f32.mrb[117].mxu0  ;;  %v3170_v62 = vpop.f32.mrb[117].mxu1 }
 0x1df   :  { %v1212_v50 = vpop.f32.mrb[118].mxu0  ;;  %v1641_v63 = vpop.f32.mrb[118].mxu1 }
 0x1e0   :  { %v2531_v19 = vpack.c.bf16 %v2014_v36, %v2013_v3  ;;  %v1910_v1 = vmax.f32 %v4651_v20, %v1861_v37  ;;  %v1862_v17 = vmax.f32 %v1212_v50, %v1641_v63  ;;  %v3055_v15 = vpop.f32.mrb[119].mxu0  ;;  %v3171_v43 = vpop.f32.mrb[119].mxu1  ;;  %v4655_v50 = vmax.f32 %v3861_v18, %v3863_v22 }
 0x1e2   :  { %2635 = vst [vmem:[%s4531_s6 + $0x18] sm:$0xff] %v2531_v19   ;;  %v1966_v44 = vadd.f32 %v4252_v51, %v1910_v1  ;;  %v1911_v45 = vmax.f32 %v4652_v2, %v1862_v17  ;;  %v4656_v1 = vmax.f32 %v3873_v34, %v3875_v35 }
 0x1e4   :  { %v1967_v38 = vadd.f32 %v4252_v51, %v1911_v45  ;;  %v2015_v7 = vmax.f32 %v1966_v44, 0.0 }
 0x1e5   :  { %v1217_v24 = vpop.f32.mrb[120].mxu0  ;;  %v1646_v25 = vpop.f32.mrb[120].mxu1 }
 0x1e6   :  { %v2016_v48 = vmax.f32 %v1967_v38, 0.0  ;;  %v1863_v49 = vmax.f32 %v1217_v24, %v1646_v25  ;;  %v3058_v8 = vpop.f32.mrb[121].mxu0  ;;  %v3174_v47 = vpop.f32.mrb[121].mxu1 }
 0x1e7   :  { %v1220_v39 = vpop.f32.mrb[122].mxu0  ;;  %v1649_v9 = vpop.f32.mrb[122].mxu1 }
 0x1e8   :  { %v2536_v21 = vpack.c.bf16 %v2016_v48, %v2015_v7  ;;  %v1912_v14 = vmax.f32 %v4653_v26, %v1863_v49  ;;  %v1864_v12 = vmax.f32 %v1220_v39, %v1649_v9  ;;  %v3059_v31 = vpop.f32.mrb[123].mxu0  ;;  %v3175_v55 = vpop.f32.mrb[123].mxu1  ;;  %v4657_v48 = vmax.f32 %v3883_v42, %v3885_v46 }
 0x1e9   :  { %v4658_v39 = vmax.f32 %v3895_v58, %v3897_v59 }
 0x1ea   :  { %2636 = vst [vmem:[%s4531_s6 + $0x20] sm:$0xff] %v2536_v21   ;;  %v1968_v56 = vadd.f32 %v4252_v51, %v1912_v14  ;;  %v1913_v13 = vmax.f32 %v4654_v32, %v1864_v12 }
 0x1ec   :  { %v1969_v0 = vadd.f32 %v4252_v51, %v1913_v13  ;;  %v2017_v23 = vmax.f32 %v1968_v56, 0.0 }
 0x1ed   :  { %v1225_v5 = vpop.f32.mrb[124].mxu0  ;;  %v1654_v33 = vpop.f32.mrb[124].mxu1 }
 0x1ee   :  { %v2018_v60 = vmax.f32 %v1969_v0, 0.0  ;;  %v1865_v61 = vmax.f32 %v1225_v5, %v1654_v33  ;;  %v3062_v3 = vpop.f32.mrb[125].mxu0  ;;  %v3178_v36 = vpop.f32.mrb[125].mxu1  ;;  %v4659_v0 = vmax.f32 %v3905_v6, %v3907_v16 }
 0x1ef   :  { %v1228_v37 = vpop.f32.mrb[126].mxu0  ;;  %v1657_v57 = vpop.f32.mrb[126].mxu1 }
 0x1f0   :  { %v2541_v62 = vpack.c.bf16 %v2018_v60, %v2017_v23  ;;  %v1914_v63 = vmax.f32 %v4655_v50, %v1865_v61  ;;  %v1866_v19 = vmax.f32 %v1228_v37, %v1657_v57  ;;  %v3063_v20 = vpop.f32.mrb[127].mxu0  ;;  %v3179_v10 = vpop.f32.mrb[127].mxu1  ;;  %v4660_v60 = vmax.f32 %v3917_v40, %v3919_v41 }
 0x1f1   :  { %v4661_v10 = vmax.f32 %v3927_v54, %v3929_v4 }
 0x1f2   :  { %2637 = vst [vmem:[%s4531_s6 + $0x28] sm:$0xff] %v2541_v62   ;;  %v1970_v11 = vadd.f32 %v4252_v51, %v1914_v63  ;;  %v1915_v17 = vmax.f32 %v4656_v1, %v1866_v19 }
 0x1f4   :  { %v1971_v15 = vadd.f32 %v4252_v51, %v1915_v17  ;;  %v2019_v2 = vmax.f32 %v1970_v11, 0.0 }
 0x1f5   :  { %v1233_v43 = vpop.f32.mrb[128].mxu0  ;;  %v1662_v44 = vpop.f32.mrb[128].mxu1 }
 0x1f6   :  { %v2020_v18 = vmax.f32 %v1971_v15, 0.0  ;;  %v1867_v22 = vmax.f32 %v1233_v43, %v1662_v44  ;;  %v3066_v45 = vpop.f32.mrb[129].mxu0  ;;  %v3182_v38 = vpop.f32.mrb[129].mxu1  ;;  %v4662_v15 = vmax.f32 %v3939_v52, %v3941_v53 }
 0x1f7   :  { %v1236_v24 = vpop.f32.mrb[130].mxu0  ;;  %v1665_v25 = vpop.f32.mrb[130].mxu1 }
 0x1f8   :  { %v2546_v7 = vpack.c.bf16 %v2020_v18, %v2019_v2  ;;  %v1916_v49 = vmax.f32 %v4657_v48, %v1867_v22  ;;  %v1868_v8 = vmax.f32 %v1236_v24, %v1665_v25  ;;  %v3067_v47 = vpop.f32.mrb[131].mxu0  ;;  %v3183_v34 = vpop.f32.mrb[131].mxu1  ;;  %v4663_v48 = vmax.f32 %v3949_v27, %v3951_v28 }
 0x1f9   :  { %v4664_v34 = vmax.f32 %v3961_v29, %v3963_v30 }
 0x1fa   :  { %2638 = vst [vmem:[%s4531_s6 + $0x30] sm:$0xff] %v2546_v7   ;;  %v1972_v35 = vadd.f32 %v4252_v51, %v1916_v49  ;;  %v1917_v9 = vmax.f32 %v4658_v39, %v1868_v8 }
 0x1fc   :  { %v1973_v21 = vadd.f32 %v4252_v51, %v1917_v9  ;;  %v2021_v12 = vmax.f32 %v1972_v35, 0.0 }
 0x1fd   :  { %v1241_v26 = vpop.f32.mrb[132].mxu0  ;;  %v1670_v14 = vpop.f32.mrb[132].mxu1 }
 0x1fe   :  { %v2022_v42 = vmax.f32 %v1973_v21, 0.0  ;;  %v1869_v46 = vmax.f32 %v1241_v26, %v1670_v14  ;;  %v3070_v31 = vpop.f32.mrb[133].mxu0  ;;  %v3186_v55 = vpop.f32.mrb[133].mxu1 }
 0x1ff   :  { %v1244_v56 = vpop.f32.mrb[134].mxu0  ;;  %v1673_v32 = vpop.f32.mrb[134].mxu1  ;;  %v4665_v55 = vld [vmem:[#allocation2_spill] sm:$0xff] }
 0x200   :  { %v2551_v13 = vpack.c.bf16 %v2022_v42, %v2021_v12  ;;  %v1918_v5 = vmax.f32 %v4659_v0, %v1869_v46  ;;  %v1870_v33 = vmax.f32 %v1244_v56, %v1673_v32  ;;  %v3071_v23 = vpop.f32.mrb[135].mxu0  ;;  %v3187_v58 = vpop.f32.mrb[135].mxu1  ;;  %v4666_v56 = vld [vmem:[#allocation3_spill] sm:$0xff] }
 0x201   :  { %v4667_v32 = vmax.f32 %v4665_v55, %v4666_v56  ;;  %v4669_v23 = vld [vmem:[#allocation5_spill] sm:$0xff] }
 0x202   :  { %2639 = vst [vmem:[%s4531_s6 + $0x38] sm:$0xff] %v2551_v13   ;;  %v1974_v59 = vadd.f32 %v4252_v51, %v1918_v5  ;;  %v1919_v61 = vmax.f32 %v4660_v60, %v1870_v33  ;;  %v4668_v33 = vld [vmem:[#allocation4_spill] sm:$0xff] }
 0x203   :  { %v4670_v58 = vmax.f32 %v4668_v33, %v4669_v23 }
 0x204   :  { %v1975_v3 = vadd.f32 %v4252_v51, %v1919_v61  ;;  %v2023_v57 = vmax.f32 %v1974_v59, 0.0 }
 0x205   :  { %v1249_v36 = vpop.f32.mrb[136].mxu0  ;;  %v1678_v37 = vpop.f32.mrb[136].mxu1 }
 0x206   :  { %v2024_v6 = vmax.f32 %v1975_v3, 0.0  ;;  %v1871_v16 = vmax.f32 %v1249_v36, %v1678_v37  ;;  %v3074_v62 = vpop.f32.mrb[137].mxu0  ;;  %v3190_v50 = vpop.f32.mrb[137].mxu1 }
 0x207   :  { %v1252_v63 = vpop.f32.mrb[138].mxu0  ;;  %v1681_v19 = vpop.f32.mrb[138].mxu1 }
 0x208   :  { %v2556_v20 = vpack.c.bf16 %v2024_v6, %v2023_v57  ;;  %v1920_v11 = vmax.f32 %v4661_v10, %v1871_v16  ;;  %v1872_v1 = vmax.f32 %v1252_v63, %v1681_v19  ;;  %v3075_v17 = vpop.f32.mrb[139].mxu0  ;;  %v3191_v40 = vpop.f32.mrb[139].mxu1  ;;  %v4671_v19 = vld [vmem:[#allocation6_spill] sm:$0xff] }
 0x20a   :  { %2640 = vst [vmem:[%s4531_s6 + $0x40] sm:$0xff] %v2556_v20   ;;  %v1976_v41 = vadd.f32 %v4252_v51, %v1920_v11  ;;  %v1921_v43 = vmax.f32 %v4662_v15, %v1872_v1  ;;  %v4672_v20 = vld [vmem:[#allocation7_spill] sm:$0xff]  ;;  %v4674_v15 = vld [vmem:[#allocation8_spill] sm:$0xff] }
 0x20b   :  { %v4673_v10 = vmax.f32 %v4671_v19, %v4672_v20 }
 0x20c   :  { %v1977_v44 = vadd.f32 %v4252_v51, %v1921_v43  ;;  %v2025_v22 = vmax.f32 %v1976_v41, 0.0  ;;  %v4675_v43 = vld [vmem:[#allocation9_spill] sm:$0xff] }
 0x20d   :  { %v1257_v2 = vpop.f32.mrb[140].mxu0  ;;  %v1686_v18 = vpop.f32.mrb[140].mxu1 }
 0x20e   :  { %v2026_v54 = vmax.f32 %v1977_v44, 0.0  ;;  %v1873_v4 = vmax.f32 %v1257_v2, %v1686_v18  ;;  %v3078_v45 = vpop.f32.mrb[141].mxu0  ;;  %v3194_v38 = vpop.f32.mrb[141].mxu1  ;;  %v4676_v44 = vmax.f32 %v4674_v15, %v4675_v43 }
 0x20f   :  { %v1260_v24 = vpop.f32.mrb[142].mxu0  ;;  %v1689_v25 = vpop.f32.mrb[142].mxu1 }
 0x210   :  { %v2561_v7 = vpack.c.bf16 %v2026_v54, %v2025_v22  ;;  %v1922_v49 = vmax.f32 %v4663_v48, %v1873_v4  ;;  %v1874_v8 = vmax.f32 %v1260_v24, %v1689_v25  ;;  %v3079_v47 = vpop.f32.mrb[143].mxu0  ;;  %v3195_v52 = vpop.f32.mrb[143].mxu1 }
 0x211   :  { %v4678_v47 = vld [vmem:[#allocation11_spill] sm:$0xff] }
 0x212   :  { %2641 = vst [vmem:[%s4531_s6 + $0x48] sm:$0xff] %v2561_v7   ;;  %v1978_v53 = vadd.f32 %v4252_v51, %v1922_v49  ;;  %v1923_v35 = vmax.f32 %v4664_v34, %v1874_v8  ;;  %v4677_v8 = vld [vmem:[#allocation10_spill] sm:$0xff] }
 0x213   :  { %v4679_v52 = vmax.f32 %v4677_v8, %v4678_v47 }
 0x214   :  { %v1979_v39 = vadd.f32 %v4252_v51, %v1923_v35  ;;  %v2027_v26 = vmax.f32 %v1978_v53, 0.0 }
 0x215   :  { %v1265_v9 = vpop.f32.mrb[144].mxu0  ;;  %v1694_v21 = vpop.f32.mrb[144].mxu1 }
 0x216   :  { %v2028_v27 = vmax.f32 %v1979_v39, 0.0  ;;  %v1875_v28 = vmax.f32 %v1265_v9, %v1694_v21  ;;  %v3082_v14 = vpop.f32.mrb[145].mxu0  ;;  %v3198_v12 = vpop.f32.mrb[145].mxu1  ;;  %v4680_v21 = vld [vmem:[#allocation12_spill] sm:$0xff] }
 0x217   :  { %v1268_v42 = vpop.f32.mrb[146].mxu0  ;;  %v1697_v46 = vpop.f32.mrb[146].mxu1 }
 0x218   :  { %v2566_v31 = vpack.c.bf16 %v2028_v27, %v2027_v26  ;;  %v1924_v13 = vmax.f32 %v4667_v32, %v1875_v28  ;;  %v1876_v0 = vmax.f32 %v1268_v42, %v1697_v46  ;;  %v3083_v5 = vpop.f32.mrb[147].mxu0  ;;  %v3199_v29 = vpop.f32.mrb[147].mxu1  ;;  %v4681_v26 = vld [vmem:[#allocation13_spill] sm:$0xff] }
 0x219   :  { %v4682_v27 = vmax.f32 %v4680_v21, %v4681_v26  ;;  %v4683_v29 = vld [vmem:[#allocation14_spill] sm:$0xff] }
 0x21a   :  { %2642 = vst [vmem:[%s4531_s6 + $0x50] sm:$0xff] %v2566_v31   ;;  %v1980_v30 = vadd.f32 %v4252_v51, %v1924_v13  ;;  %v1925_v59 = vmax.f32 %v4670_v58, %v1876_v0 }
 0x21c   :  { %v1981_v60 = vadd.f32 %v4252_v51, %v1925_v59  ;;  %v2029_v36 = vmax.f32 %v1980_v30, 0.0  ;;  %v4684_v30 = vld [vmem:[#allocation15_spill] sm:$0xff] }
 0x21d   :  { %v1273_v61 = vpop.f32.mrb[148].mxu0  ;;  %v1702_v3 = vpop.f32.mrb[148].mxu1  ;;  %v4685_v33 = vmax.f32 %v4683_v29, %v4684_v30 }
 0x21e   :  { %v2030_v37 = vmax.f32 %v1981_v60, 0.0  ;;  %v1877_v57 = vmax.f32 %v1273_v61, %v1702_v3  ;;  %v3086_v6 = vpop.f32.mrb[149].mxu0  ;;  %v3202_v16 = vpop.f32.mrb[149].mxu1  ;;  %v4686_v3 = vld [vmem:[#allocation16_spill] sm:$0xff] }
 0x21f   :  { %v1276_v62 = vpop.f32.mrb[150].mxu0  ;;  %v1705_v50 = vpop.f32.mrb[150].mxu1 }
 0x220   :  { %v2571_v63 = vpack.c.bf16 %v2030_v37, %v2029_v36  ;;  %v1926_v11 = vmax.f32 %v4673_v10, %v1877_v57  ;;  %v1878_v1 = vmax.f32 %v1276_v62, %v1705_v50  ;;  %v3087_v17 = vpop.f32.mrb[151].mxu0  ;;  %v3203_v40 = vpop.f32.mrb[151].mxu1  ;;  %v4687_v36 = vld [vmem:[#allocation17_spill] sm:$0xff] }
 0x221   :  { %v4688_v37 = vmax.f32 %v4686_v3, %v4687_v36  ;;  %v4689_v40 = vld [vmem:[#allocation18_spill] sm:$0xff] }
 0x222   :  { %2643 = vst [vmem:[%s4531_s6 + $0x58] sm:$0xff] %v2571_v63   ;;  %v1982_v41 = vadd.f32 %v4252_v51, %v1926_v11  ;;  %v1927_v2 = vmax.f32 %v4676_v44, %v1878_v1 }
 0x224   :  { %v1983_v18 = vadd.f32 %v4252_v51, %v1927_v2  ;;  %v2031_v4 = vmax.f32 %v1982_v41, 0.0  ;;  %v4690_v41 = vld [vmem:[#allocation19_spill] sm:$0xff] }
 0x225   :  { %v1281_v22 = vpop.f32.mrb[152].mxu0  ;;  %v1710_v54 = vpop.f32.mrb[152].mxu1  ;;  %v4691_v15 = vmax.f32 %v4689_v40, %v4690_v41 }
 0x226   :  { %v2032_v45 = vmax.f32 %v1983_v18, 0.0  ;;  %v1879_v38 = vmax.f32 %v1281_v22, %v1710_v54  ;;  %v3090_v24 = vpop.f32.mrb[153].mxu0  ;;  %v3206_v25 = vpop.f32.mrb[153].mxu1  ;;  %v4692_v54 = vld [vmem:[#allocation20_spill] sm:$0xff] }
 0x227   :  { %v1284_v7 = vpop.f32.mrb[154].mxu0  ;;  %v1713_v48 = vpop.f32.mrb[154].mxu1 }
 0x228   :  { %v2576_v49 = vpack.c.bf16 %v2032_v45, %v2031_v4  ;;  %v1928_v53 = vmax.f32 %v4679_v52, %v1879_v38  ;;  %v1880_v34 = vmax.f32 %v1284_v7, %v1713_v48  ;;  %v3091_v35 = vpop.f32.mrb[155].mxu0  ;;  %v3207_v39 = vpop.f32.mrb[155].mxu1  ;;  %v4693_v4 = vld [vmem:[#allocation21_spill] sm:$0xff] }
 0x229   :  { %v4694_v45 = vmax.f32 %v4692_v54, %v4693_v4  ;;  %v4695_v39 = vld [vmem:[#allocation22_spill] sm:$0xff] }
 0x22a   :  { %2644 = vst [vmem:[%s4531_s6 + $0x60] sm:$0xff] %v2576_v49   ;;  %v1984_v9 = vadd.f32 %v4252_v51, %v1928_v53  ;;  %v1929_v28 = vmax.f32 %v4682_v27, %v1880_v34 }
 0x22c   :  { %v1985_v14 = vadd.f32 %v4252_v51, %v1929_v28  ;;  %v2033_v46 = vmax.f32 %v1984_v9, 0.0  ;;  %v4696_v9 = vld [vmem:[#allocation23_spill] sm:$0xff] }
 0x22d   :  { %v1289_v12 = vpop.f32.mrb[156].mxu0  ;;  %v1718_v42 = vpop.f32.mrb[156].mxu1  ;;  %v4697_v21 = vmax.f32 %v4695_v39, %v4696_v9 }
 0x22e   :  { %v2034_v31 = vmax.f32 %v1985_v14, 0.0  ;;  %v1881_v55 = vmax.f32 %v1289_v12, %v1718_v42  ;;  %v3094_v56 = vpop.f32.mrb[157].mxu0  ;;  %v3210_v32 = vpop.f32.mrb[157].mxu1  ;;  %v4698_v42 = vld [vmem:[#allocation24_spill] sm:$0xff] }
 0x22f   :  { %v1292_v13 = vpop.f32.mrb[158].mxu0  ;;  %v1721_v0 = vpop.f32.mrb[158].mxu1 }
 0x230   :  { %v2581_v5 = vpack.c.bf16 %v2034_v31, %v2033_v46  ;;  %v1930_v23 = vmax.f32 %v4685_v33, %v1881_v55  ;;  %v1882_v58 = vmax.f32 %v1292_v13, %v1721_v0  ;;  %v3095_v59 = vpop.f32.mrb[159].mxu0  ;;  %v3211_v60 = vpop.f32.mrb[159].mxu1  ;;  %v4699_v46 = vld [vmem:[#allocation25_spill] sm:$0xff] }
 0x231   :  { %v4700_v31 = vmax.f32 %v4698_v42, %v4699_v46  ;;  %v4701_v60 = vld [vmem:[#allocation26_spill] sm:$0xff] }
 0x232   :  { %2645 = vst [vmem:[%s4531_s6 + $0x68] sm:$0xff] %v2581_v5   ;;  %v1986_v61 = vadd.f32 %v4252_v51, %v1930_v23  ;;  %v1931_v57 = vmax.f32 %v4688_v37, %v1882_v58 }
 0x234   :  { %v1987_v6 = vadd.f32 %v4252_v51, %v1931_v57  ;;  %v2035_v50 = vmax.f32 %v1986_v61, 0.0  ;;  %v4702_v61 = vld [vmem:[#allocation27_spill] sm:$0xff] }
 0x235   :  { %v1297_v16 = vpop.f32.mrb[160].mxu0  ;;  %v1726_v62 = vpop.f32.mrb[160].mxu1  ;;  %v4703_v3 = vmax.f32 %v4701_v60, %v4702_v61 }
 0x236   :  { %v2036_v63 = vmax.f32 %v1987_v6, 0.0  ;;  %v1883_v19 = vmax.f32 %v1297_v16, %v1726_v62  ;;  %v3098_v20 = vpop.f32.mrb[161].mxu0  ;;  %v3214_v10 = vpop.f32.mrb[161].mxu1  ;;  %v4704_v62 = vld [vmem:[#allocation28_spill] sm:$0xff] }
 0x237   :  { %v1300_v11 = vpop.f32.mrb[162].mxu0  ;;  %v1729_v1 = vpop.f32.mrb[162].mxu1 }
 0x238   :  { %v2586_v17 = vpack.c.bf16 %v2036_v63, %v2035_v50  ;;  %v1932_v43 = vmax.f32 %v4691_v15, %v1883_v19  ;;  %v1884_v44 = vmax.f32 %v1300_v11, %v1729_v1  ;;  %v3099_v2 = vpop.f32.mrb[163].mxu0  ;;  %v3215_v18 = vpop.f32.mrb[163].mxu1  ;;  %v4705_v50 = vld [vmem:[#allocation29_spill] sm:$0xff] }
 0x239   :  { %v4706_v63 = vmax.f32 %v4704_v62, %v4705_v50  ;;  %v4707_v18 = vld [vmem:[#allocation30_spill] sm:$0xff] }
 0x23a   :  { %2646 = vst [vmem:[%s4531_s6 + $0x70] sm:$0xff] %v2586_v17   ;;  %v1988_v22 = vadd.f32 %v4252_v51, %v1932_v43  ;;  %v1933_v38 = vmax.f32 %v4694_v45, %v1884_v44 }
 0x23c   :  { %v1989_v24 = vadd.f32 %v4252_v51, %v1933_v38  ;;  %v2037_v48 = vmax.f32 %v1988_v22, 0.0  ;;  %v4708_v22 = vld [vmem:[#allocation31_spill] sm:$0xff] }
 0x23d   :  { %v1305_v25 = vpop.f32.mrb[164].mxu0  ;;  %v1734_v7 = vpop.f32.mrb[164].mxu1  ;;  %v4709_v54 = vmax.f32 %v4707_v18, %v4708_v22 }
 0x23e   :  { %v2038_v49 = vmax.f32 %v1989_v24, 0.0  ;;  %v1885_v8 = vmax.f32 %v1305_v25, %v1734_v7  ;;  %v3102_v47 = vpop.f32.mrb[165].mxu0  ;;  %v3218_v52 = vpop.f32.mrb[165].mxu1  ;;  %v4710_v7 = vld [vmem:[#allocation32_spill] sm:$0xff] }
 0x23f   :  { %v1308_v53 = vpop.f32.mrb[166].mxu0  ;;  %v1737_v34 = vpop.f32.mrb[166].mxu1 }
 0x240   :  { %v2591_v35 = vpack.c.bf16 %v2038_v49, %v2037_v48  ;;  %v1934_v26 = vmax.f32 %v4697_v21, %v1885_v8  ;;  %v1886_v27 = vmax.f32 %v1308_v53, %v1737_v34  ;;  %v3103_v28 = vpop.f32.mrb[167].mxu0  ;;  %v3219_v14 = vpop.f32.mrb[167].mxu1  ;;  %v4711_v48 = vld [vmem:[#allocation33_spill] sm:$0xff] }
 0x241   :  { %v4712_v49 = vmax.f32 %v4710_v7, %v4711_v48  ;;  %v4713_v14 = vld [vmem:[#allocation34_spill] sm:$0xff] }
 0x242   :  { %2647 = vst [vmem:[%s4531_s6 + $0x78] sm:$0xff] %v2591_v35   ;;  %v1990_v12 = vadd.f32 %v4252_v51, %v1934_v26  ;;  %v1935_v55 = vmax.f32 %v4700_v31, %v1886_v27 }
 0x244   :  { %v1991_v56 = vadd.f32 %v4252_v51, %v1935_v55  ;;  %v2039_v0 = vmax.f32 %v1990_v12, 0.0  ;;  %v4714_v12 = vld [vmem:[#allocation35_spill] sm:$0xff] }
 0x245   :  { %v1313_v32 = vpop.f32.mrb[168].mxu0  ;;  %v1742_v13 = vpop.f32.mrb[168].mxu1  ;;  %v4715_v42 = vmax.f32 %v4713_v14, %v4714_v12 }
 0x246   :  { %v2040_v5 = vmax.f32 %v1991_v56, 0.0  ;;  %v1887_v29 = vmax.f32 %v1313_v32, %v1742_v13  ;;  %v3106_v30 = vpop.f32.mrb[169].mxu0  ;;  %v3222_v33 = vpop.f32.mrb[169].mxu1  ;;  %v4716_v13 = vld [vmem:[#allocation36_spill] sm:$0xff] }
 0x247   :  { %v1316_v23 = vpop.f32.mrb[170].mxu0  ;;  %v1745_v58 = vpop.f32.mrb[170].mxu1 }
 0x248   :  { %v2596_v59 = vpack.c.bf16 %v2040_v5, %v2039_v0  ;;  %v1936_v36 = vmax.f32 %v4703_v3, %v1887_v29  ;;  %v1888_v37 = vmax.f32 %v1316_v23, %v1745_v58  ;;  %v3107_v57 = vpop.f32.mrb[171].mxu0  ;;  %v3223_v6 = vpop.f32.mrb[171].mxu1  ;;  %v4717_v0 = vld [vmem:[#allocation37_spill] sm:$0xff] }
 0x249   :  { %v4718_v5 = vmax.f32 %v4716_v13, %v4717_v0  ;;  %v4719_v6 = vld [vmem:[#allocation38_spill] sm:$0xff] }
 0x24a   :  { %2648 = vst [vmem:[%s4531_s6 + $0x80] sm:$0xff] %v2596_v59   ;;  %v1992_v16 = vadd.f32 %v4252_v51, %v1936_v36  ;;  %v1937_v19 = vmax.f32 %v4706_v63, %v1888_v37 }
 0x24c   :  { %v1993_v20 = vadd.f32 %v4252_v51, %v1937_v19  ;;  %v2041_v1 = vmax.f32 %v1992_v16, 0.0  ;;  %v4720_v16 = vld [vmem:[#allocation39_spill] sm:$0xff] }
 0x24d   :  { %v1321_v10 = vpop.f32.mrb[172].mxu0  ;;  %v1750_v11 = vpop.f32.mrb[172].mxu1  ;;  %v4721_v62 = vmax.f32 %v4719_v6, %v4720_v16 }
 0x24e   :  { %v2042_v17 = vmax.f32 %v1993_v20, 0.0  ;;  %v1889_v40 = vmax.f32 %v1321_v10, %v1750_v11  ;;  %v3110_v41 = vpop.f32.mrb[173].mxu0  ;;  %v3226_v15 = vpop.f32.mrb[173].mxu1  ;;  %v4722_v11 = vld [vmem:[#allocation40_spill] sm:$0xff] }
 0x24f   :  { %v1324_v43 = vpop.f32.mrb[174].mxu0  ;;  %v1753_v44 = vpop.f32.mrb[174].mxu1 }
 0x250   :  { %v2601_v2 = vpack.c.bf16 %v2042_v17, %v2041_v1  ;;  %v1938_v4 = vmax.f32 %v4709_v54, %v1889_v40  ;;  %v1890_v45 = vmax.f32 %v1324_v43, %v1753_v44  ;;  %v3111_v38 = vpop.f32.mrb[175].mxu0  ;;  %v3227_v24 = vpop.f32.mrb[175].mxu1  ;;  %v4723_v1 = vld [vmem:[#allocation41_spill] sm:$0xff] }
 0x251   :  { %v4724_v17 = vmax.f32 %v4722_v11, %v4723_v1  ;;  %v4725_v24 = vld [vmem:[#allocation42_spill] sm:$0xff] }
 0x252   :  { %2649 = vst [vmem:[%s4531_s6 + $0x88] sm:$0xff] %v2601_v2   ;;  %v1994_v25 = vadd.f32 %v4252_v51, %v1938_v4  ;;  %v1939_v8 = vmax.f32 %v4712_v49, %v1890_v45 }
 0x254   :  { %v1995_v47 = vadd.f32 %v4252_v51, %v1939_v8  ;;  %v2043_v34 = vmax.f32 %v1994_v25, 0.0  ;;  %v4726_v25 = vld [vmem:[#allocation43_spill] sm:$0xff] }
 0x255   :  { %v1329_v52 = vpop.f32.mrb[176].mxu0  ;;  %v1758_v53 = vpop.f32.mrb[176].mxu1  ;;  %v4727_v7 = vmax.f32 %v4725_v24, %v4726_v25 }
 0x256   :  { %v2044_v35 = vmax.f32 %v1995_v47, 0.0  ;;  %v1891_v39 = vmax.f32 %v1329_v52, %v1758_v53  ;;  %v3114_v9 = vpop.f32.mrb[177].mxu0  ;;  %v3230_v21 = vpop.f32.mrb[177].mxu1  ;;  %v4728_v53 = vld [vmem:[#allocation44_spill] sm:$0xff] }
 0x257   :  { %v1332_v26 = vpop.f32.mrb[178].mxu0  ;;  %v1761_v27 = vpop.f32.mrb[178].mxu1 }
 0x258   :  { %v2606_v28 = vpack.c.bf16 %v2044_v35, %v2043_v34  ;;  %v1940_v46 = vmax.f32 %v4715_v42, %v1891_v39  ;;  %v1892_v31 = vmax.f32 %v1332_v26, %v1761_v27  ;;  %v3115_v55 = vpop.f32.mrb[179].mxu0  ;;  %v3231_v56 = vpop.f32.mrb[179].mxu1  ;;  %v4729_v34 = vld [vmem:[#allocation45_spill] sm:$0xff] }
 0x259   :  { %v4730_v35 = vmax.f32 %v4728_v53, %v4729_v34  ;;  %v4731_v56 = vld [vmem:[#allocation46_spill] sm:$0xff] }
 0x25a   :  { %2650 = vst [vmem:[%s4531_s6 + $0x90] sm:$0xff] %v2606_v28   ;;  %v1996_v32 = vadd.f32 %v4252_v51, %v1940_v46  ;;  %v1941_v29 = vmax.f32 %v4718_v5, %v1892_v31 }
 0x25c   :  { %v1997_v30 = vadd.f32 %v4252_v51, %v1941_v29  ;;  %v2045_v58 = vmax.f32 %v1996_v32, 0.0  ;;  %v4732_v32 = vld [vmem:[#allocation47_spill] sm:$0xff] }
 0x25d   :  { %v1337_v33 = vpop.f32.mrb[180].mxu0  ;;  %v1766_v23 = vpop.f32.mrb[180].mxu1  ;;  %v4733_v13 = vmax.f32 %v4731_v56, %v4732_v32 }
 0x25e   :  { %v2046_v59 = vmax.f32 %v1997_v30, 0.0  ;;  %v1893_v60 = vmax.f32 %v1337_v33, %v1766_v23  ;;  %v3118_v61 = vpop.f32.mrb[181].mxu0  ;;  %v3234_v3 = vpop.f32.mrb[181].mxu1  ;;  %v4734_v23 = vld [vmem:[#allocation48_spill] sm:$0xff] }
 0x25f   :  { %v1340_v36 = vpop.f32.mrb[182].mxu0  ;;  %v1769_v37 = vpop.f32.mrb[182].mxu1 }
 0x260   :  { %v2611_v57 = vpack.c.bf16 %v2046_v59, %v2045_v58  ;;  %v1942_v50 = vmax.f32 %v4721_v62, %v1893_v60  ;;  %v1894_v63 = vmax.f32 %v1340_v36, %v1769_v37  ;;  %v3119_v19 = vpop.f32.mrb[183].mxu0  ;;  %v3235_v20 = vpop.f32.mrb[183].mxu1  ;;  %v4735_v58 = vld [vmem:[#allocation49_spill] sm:$0xff] }
 0x261   :  { %v4736_v59 = vmax.f32 %v4734_v23, %v4735_v58  ;;  %v4737_v20 = vld [vmem:[#allocation50_spill] sm:$0xff] }
 0x262   :  { %2651 = vst [vmem:[%s4531_s6 + $0x98] sm:$0xff] %v2611_v57   ;;  %v1998_v10 = vadd.f32 %v4252_v51, %v1942_v50  ;;  %v1943_v40 = vmax.f32 %v4724_v17, %v1894_v63 }
 0x264   :  { %v1999_v41 = vadd.f32 %v4252_v51, %v1943_v40  ;;  %v2047_v44 = vmax.f32 %v1998_v10, 0.0  ;;  %v4738_v10 = vld [vmem:[#allocation51_spill] sm:$0xff] }
 0x265   :  { %v1345_v15 = vpop.f32.mrb[184].mxu0  ;;  %v1774_v43 = vpop.f32.mrb[184].mxu1  ;;  %v4739_v11 = vmax.f32 %v4737_v20, %v4738_v10 }
 0x266   :  { %v2048_v2 = vmax.f32 %v1999_v41, 0.0  ;;  %v1895_v18 = vmax.f32 %v1345_v15, %v1774_v43  ;;  %v3122_v22 = vpop.f32.mrb[185].mxu0  ;;  %v3238_v54 = vpop.f32.mrb[185].mxu1  ;;  %v4740_v43 = vld [vmem:[#allocation52_spill] sm:$0xff] }
 0x267   :  { %v1348_v4 = vpop.f32.mrb[186].mxu0  ;;  %v1777_v45 = vpop.f32.mrb[186].mxu1 }
 0x268   :  { %v2616_v38 = vpack.c.bf16 %v2048_v2, %v2047_v44  ;;  %v1944_v48 = vmax.f32 %v4727_v7, %v1895_v18  ;;  %v1896_v49 = vmax.f32 %v1348_v4, %v1777_v45  ;;  %v3123_v8 = vpop.f32.mrb[187].mxu0  ;;  %v3239_v47 = vpop.f32.mrb[187].mxu1  ;;  %v4741_v44 = vld [vmem:[#allocation53_spill] sm:$0xff] }
 0x269   :  { %v4742_v2 = vmax.f32 %v4740_v43, %v4741_v44  ;;  %v4743_v47 = vld [vmem:[#allocation54_spill] sm:$0xff] }
 0x26a   :  { %2652 = vst [vmem:[%s4531_s6 + $0xa0] sm:$0xff] %v2616_v38   ;;  %v2000_v52 = vadd.f32 %v4252_v51, %v1944_v48  ;;  %v1945_v39 = vmax.f32 %v4730_v35, %v1896_v49 }
 0x26c   :  { %v2001_v9 = vadd.f32 %v4252_v51, %v1945_v39  ;;  %v2049_v27 = vmax.f32 %v2000_v52, 0.0  ;;  %v4744_v52 = vld [vmem:[#allocation55_spill] sm:$0xff] }
 0x26d   :  { %v1353_v21 = vpop.f32.mrb[188].mxu0  ;;  %v1782_v26 = vpop.f32.mrb[188].mxu1  ;;  %v4745_v53 = vmax.f32 %v4743_v47, %v4744_v52 }
 0x26e   :  { %v2050_v28 = vmax.f32 %v2001_v9, 0.0  ;;  %v1897_v14 = vmax.f32 %v1353_v21, %v1782_v26  ;;  %v3126_v12 = vpop.f32.mrb[189].mxu0  ;;  %v3242_v42 = vpop.f32.mrb[189].mxu1 }
 0x26f   :  { %v1356_v46 = vpop.f32.mrb[190].mxu0  ;;  %v1785_v31 = vpop.f32.mrb[190].mxu1 }
 0x270   :  { %v2621_v55 = vpack.c.bf16 %v2050_v28, %v2049_v27  ;;  %v1946_v0 = vmax.f32 %v4733_v13, %v1897_v14  ;;  %v1898_v5 = vmax.f32 %v1356_v46, %v1785_v31  ;;  %v3127_v29 = vpop.f32.mrb[191].mxu0  ;;  %v3243_v30 = vpop.f32.mrb[191].mxu1 }
 0x272   :  { %2653 = vst [vmem:[%s4531_s6 + $0xa8] sm:$0xff] %v2621_v55   ;;  %v2002_v33 = vadd.f32 %v4252_v51, %v1946_v0  ;;  %v1947_v60 = vmax.f32 %v4736_v59, %v1898_v5 }
 0x274   :  { %v2003_v61 = vadd.f32 %v4252_v51, %v1947_v60  ;;  %v2051_v37 = vmax.f32 %v2002_v33, 0.0 }
 0x275   :  { %v1361_v3 = vpop.f32.mrb[192].mxu0  ;;  %v1790_v36 = vpop.f32.mrb[192].mxu1 }
 0x276   :  { %v2052_v57 = vmax.f32 %v2003_v61, 0.0  ;;  %v1899_v6 = vmax.f32 %v1361_v3, %v1790_v36  ;;  %v3130_v16 = vpop.f32.mrb[193].mxu0  ;;  %v3246_v62 = vpop.f32.mrb[193].mxu1 }
 0x277   :  { %v1364_v50 = vpop.f32.mrb[194].mxu0  ;;  %v1793_v63 = vpop.f32.mrb[194].mxu1 }
 0x278   :  { %v2626_v19 = vpack.c.bf16 %v2052_v57, %v2051_v37  ;;  %v1948_v1 = vmax.f32 %v4739_v11, %v1899_v6  ;;  %v1900_v17 = vmax.f32 %v1364_v50, %v1793_v63  ;;  %v3131_v40 = vpop.f32.mrb[195].mxu0  ;;  %v3247_v41 = vpop.f32.mrb[195].mxu1 }
 0x27a   :  { %2654 = vst [vmem:[%s4531_s6 + $0xb0] sm:$0xff] %v2626_v19   ;;  %v2004_v15 = vadd.f32 %v4252_v51, %v1948_v1  ;;  %v1949_v18 = vmax.f32 %v4742_v2, %v1900_v17 }
 0x27c   :  { %v2005_v22 = vadd.f32 %v4252_v51, %v1949_v18  ;;  %v2053_v45 = vmax.f32 %v2004_v15, 0.0 }
 0x27d   :  { %v1369_v54 = vpop.f32.mrb[196].mxu0  ;;  %v1798_v4 = vpop.f32.mrb[196].mxu1 }
 0x27e   :  { %v2054_v38 = vmax.f32 %v2005_v22, 0.0  ;;  %v1901_v24 = vmax.f32 %v1369_v54, %v1798_v4  ;;  %v3134_v25 = vpop.f32.mrb[197].mxu0  ;;  %v3250_v7 = vpop.f32.mrb[197].mxu1 }
 0x27f   :  { %v1372_v48 = vpop.f32.mrb[198].mxu0  ;;  %v1801_v49 = vpop.f32.mrb[198].mxu1 }
 0x280   :  { %v2631_v8 = vpack.c.bf16 %v2054_v38, %v2053_v45  ;;  %v1950_v34 = vmax.f32 %v4745_v53, %v1901_v24  ;;  %v3135_v35 = vpop.f32.mrb[199].mxu0  ;;  %v3251_v39 = vpop.f32.mrb[199].mxu1 }
 0x282   :  { %2655 = vst [vmem:[%s4531_s6 + $0xb8] sm:$0xff] %v2631_v8   ;;  %v2006_v9 = vadd.f32 %v4252_v51, %v1950_v34 }
 0x284   :  { %v2055_v21 = vmax.f32 %v2006_v9, 0.0 }
 0x286   :  { %v2512_v26 = vpack.c.bf16 %v2055_v21, %v2055_v21 }
 0x288   :  { %2301 = vst [vmem:[%s4531_s6 + $0xc0] sm:$0xf] %v2512_v26 }

// kernel: net_forward.4
= control target key start
LH: loop header
LB: loop body
LE: loop exit
PB: predicated region body
PF: predicated region fallthrough
CT: control target
= control target key end

     0   :  { %s1292_s4 = inlined_call_operand.vmem [shape: bf16[256,128], index: 4, kind: input, shape index: {}]   ;;  %s1293_s0 = inlined_call_operand.vmem [shape: bf16[50,256], index: 0, kind: input, shape index: {}]   ;;  %s1294_s1 = inlined_call_operand.vmem [shape: bf16[50,256], index: 1, kind: input, shape index: {}]   ;;  %s1295_s2 = inlined_call_operand.vmem [shape: bf16[50,256], index: 2, kind: input, shape index: {}]   ;;  %s1296_s3 = inlined_call_operand.vmem [shape: bf16[50,256], index: 3, kind: input, shape index: {}]   ;;  %s1297_s5 = inlined_call_operand.vmem [shape: f32[1,128], index: 5, kind: input, shape index: {}]   ;;  %s1298_s6 = inlined_call_operand.vmem [shape: bf16[50,128], index: 6, kind: output, shape index: {}]  }
   0x1   :  { %v906_v0 = vld [vmem:[%s1292_s4 + $0x40] sm:$0xff]   ;;  %v908_v2 = vld [vmem:[%s1292_s4 + $0x48] sm:$0xff]   ;;  %v1022_v4 = vld [vmem:[%s1292_s4 + $0x50] sm:$0xff]  }
   0x2   :  { %v1007_v1 = vld [vmem:[%s1292_s4] sm:$0xff]   ;;  %746 = vmatprep.subr.bf16.mxu0 %v906_v0  ;;  %786 = vmatprep.subr.bf16.mxu1 %v906_v0  ;;  %v1017_v3 = vld [vmem:[%s1292_s4 + $0x8] sm:$0xff]   ;;  %v1029_v5 = vld [vmem:[%s1292_s4 + $0x10] sm:$0xff]  }
   0x3   :  { %747 = vmatpush3.bf16.msra.mxu0 %v1007_v1  ;;  %787 = vmatpush3.bf16.msra.mxu1 %v1007_v1  ;;  %v1036_v6 = vld [vmem:[%s1292_s4 + $0x58] sm:$0xff]   ;;  %v1050_v8 = vld [vmem:[%s1292_s4 + $0x60] sm:$0xff]   ;;  %v1064_v10 = vld [vmem:[%s1292_s4 + $0x68] sm:$0xff]  }
   0x4   :  { %748 = vmatprep.subr.bf16.mxu0 %v908_v2  ;;  %788 = vmatprep.subr.bf16.mxu1 %v908_v2  ;;  %v1043_v7 = vld [vmem:[%s1292_s4 + $0x18] sm:$0xff]   ;;  %v1057_v9 = vld [vmem:[%s1292_s4 + $0x20] sm:$0xff]   ;;  %v1077_v13 = vld [vmem:[%s1292_s4 + $0x28] sm:$0xff]  }
   0x5   :  { %v924_v11 = vld [vmem:[%s1293_s0 + $0x4] ss:$8 sps:$4 sm:$0xff]   ;;  %v1084_v14 = vld [vmem:[%s1292_s4 + $0x70] sm:$0xff]   ;;  %v1098_v16 = vld [vmem:[%s1292_s4 + $0x78] sm:$0xff]  }
   0x6   :  { %v927_v12 = vld [vmem:[%s1294_s1 + $0x4] ss:$8 sps:$4 sm:$0xff]   ;;  %228 = vmatprep.mubr.bf16.mxu0 %v924_v11  ;;  %v1091_v15 = vld [vmem:[%s1292_s4 + $0x30] sm:$0xff]   ;;  %v1105_v17 = vld [vmem:[%s1292_s4 + $0x38] sm:$0xff]  }
   0x7   :  { %749 = vmatpush3.bf16.msra.mxu0 %v1017_v3  ;;  %789 = vmatpush3.bf16.msra.mxu1 %v1017_v3  ;;  %v922_v18 = vld [vmem:[%s1293_s0] ss:$8 sps:$4 sm:$0xff]   ;;  %v928_v20 = vld [vmem:[%s1293_s0 + $0x14] ss:$8 sps:$4 sm:$0xff]   ;;  %v932_v22 = vld [vmem:[%s1293_s0 + $0x10] ss:$8 sps:$4 sm:$0xff]  }
   0x8   :  { %750 = vmatprep.subr.bf16.mxu0 %v1022_v4  ;;  %790 = vmatprep.subr.bf16.mxu1 %v1022_v4  ;;  %v925_v19 = vld [vmem:[%s1294_s1] ss:$8 sps:$4 sm:$0xff]   ;;  %v930_v21 = vld [vmem:[%s1294_s1 + $0x14] ss:$8 sps:$4 sm:$0xff]   ;;  %v933_v23 = vld [vmem:[%s1294_s1 + $0x10] ss:$8 sps:$4 sm:$0xff]  }
   0x9   :  { %336 = vmatprep.mubr.bf16.mxu1 %v927_v12  ;;  %v934_v24 = vld [vmem:[%s1293_s0 + $0x24] ss:$8 sps:$4 sm:$0xff]   ;;  %v938_v26 = vld [vmem:[%s1293_s0 + $0x20] ss:$8 sps:$4 sm:$0xff]   ;;  %v62_v28 = vld [vmem:[%s1293_s0 + $0x30] sm:$0x11] }
   0xa   :  { %v936_v25 = vld [vmem:[%s1294_s1 + $0x24] ss:$8 sps:$4 sm:$0xff]   ;;  %v939_v27 = vld [vmem:[%s1294_s1 + $0x20] ss:$8 sps:$4 sm:$0xff]   ;;  %v266_v29 = vld [vmem:[%s1294_s1 + $0x30] sm:$0x11]  ;;  %v673_v30 = vcombine.high %v62_v28, %v62_v28  ;;  %v672_v32 = vcombine.low %v62_v28, %v62_v28 }
   0xb   :  { %751 = vmatpush3.bf16.msra.mxu0 %v1029_v5  ;;  %791 = vmatpush3.bf16.msra.mxu1 %v1029_v5  ;;  %v697_v31 = vcombine.high %v266_v29, %v266_v29  ;;  %v696_v33 = vcombine.low %v266_v29, %v266_v29  ;;  %v946_v34 = vld [vmem:[%s1295_s2 + $0x4] ss:$8 sps:$4 sm:$0xff]   ;;  %v944_v36 = vld [vmem:[%s1295_s2] ss:$8 sps:$4 sm:$0xff]   ;;  %v950_v38 = vld [vmem:[%s1295_s2 + $0x14] ss:$8 sps:$4 sm:$0xff]  }
   0xc   :  { %752 = vmatprep.subr.bf16.mxu0 %v1036_v6  ;;  %792 = vmatprep.subr.bf16.mxu1 %v1036_v6  ;;  %v949_v35 = vld [vmem:[%s1296_s3 + $0x4] ss:$8 sps:$4 sm:$0xff]   ;;  %v947_v37 = vld [vmem:[%s1296_s3] ss:$8 sps:$4 sm:$0xff]   ;;  %v952_v39 = vld [vmem:[%s1296_s3 + $0x14] ss:$8 sps:$4 sm:$0xff]  }
   0xd   :  { %v954_v40 = vld [vmem:[%s1295_s2 + $0x10] ss:$8 sps:$4 sm:$0xff]   ;;  %v956_v42 = vld [vmem:[%s1295_s2 + $0x24] ss:$8 sps:$4 sm:$0xff]   ;;  %v960_v46 = vld [vmem:[%s1295_s2 + $0x20] ss:$8 sps:$4 sm:$0xff]  }
   0xe   :  { %v955_v41 = vld [vmem:[%s1296_s3 + $0x10] ss:$8 sps:$4 sm:$0xff]   ;;  %v958_v43 = vld [vmem:[%s1296_s3 + $0x24] ss:$8 sps:$4 sm:$0xff]   ;;  %v961_v47 = vld [vmem:[%s1296_s3 + $0x20] ss:$8 sps:$4 sm:$0xff]  }
   0xf   :  { %753 = vmatpush3.bf16.msra.mxu0 %v1043_v7  ;;  %793 = vmatpush3.bf16.msra.mxu1 %v1043_v7  ;;  %v374_v44 = vld [vmem:[%s1295_s2 + $0x30] sm:$0x11] }
  0x10   :  { %754 = vmatprep.subr.bf16.mxu0 %v1050_v8  ;;  %794 = vmatprep.subr.bf16.mxu1 %v1050_v8  ;;  %v482_v45 = vld [vmem:[%s1296_s3 + $0x30] sm:$0x11]  ;;  %v705_v48 = vcombine.high %v374_v44, %v374_v44  ;;  %v704_v50 = vcombine.low %v374_v44, %v374_v44 }
  0x11   :  { %v713_v49 = vcombine.high %v482_v45, %v482_v45  ;;  %v712_v51 = vcombine.low %v482_v45, %v482_v45 }
  0x13   :  { %755 = vmatpush3.bf16.msra.mxu0 %v1057_v9  ;;  %795 = vmatpush3.bf16.msra.mxu1 %v1057_v9 }
  0x14   :  { %756 = vmatprep.subr.bf16.mxu0 %v1064_v10  ;;  %796 = vmatprep.subr.bf16.mxu1 %v1064_v10 }
  0x17   :  { %757 = vmatpush3.bf16.msra.mxu0 %v1077_v13  ;;  %797 = vmatpush3.bf16.msra.mxu1 %v1077_v13 }
  0x18   :  { %758 = vmatprep.subr.bf16.mxu0 %v1084_v14  ;;  %798 = vmatprep.subr.bf16.mxu1 %v1084_v14 }
  0x1b   :  { %759 = vmatpush3.bf16.msra.mxu0 %v1091_v15  ;;  %799 = vmatpush3.bf16.msra.mxu1 %v1091_v15 }
  0x1c   :  { %760 = vmatprep.subr.bf16.mxu0 %v1098_v16  ;;  %800 = vmatprep.subr.bf16.mxu1 %v1098_v16 }
  0x1f   :  { %761 = vmatpush3.bf16.msra.mxu0 %v1105_v17  ;;  %801 = vmatpush3.bf16.msra.mxu1 %v1105_v17 }
  0x20   :  { %826 = vmatprep.subr.bf16.mxu0 %v906_v0  ;;  %866 = vmatprep.subr.bf16.mxu1 %v906_v0 }
  0x22   :  { %229 = vmatmul.mubr.bf16.vlgmr.msra.gmra.mrb[0].mxu0 %v922_v18  ;;  %337 = vmatmul.mubr.bf16.vlgmr.msra.gmra.mrb[0].mxu1 %v925_v19 }
  0x23   :  { %827 = vmatpush3.bf16.msra.mxu0 %v1007_v1  ;;  %867 = vmatpush3.bf16.msra.mxu1 %v1007_v1 }
  0x24   :  { %828 = vmatprep.subr.bf16.mxu0 %v908_v2  ;;  %868 = vmatprep.subr.bf16.mxu1 %v908_v2 }
  0x25   :  { %236 = vmatprep.mubr.bf16.mxu0 %v928_v20  ;;  %344 = vmatprep.mubr.bf16.mxu1 %v930_v21 }
  0x27   :  { %829 = vmatpush3.bf16.msra.mxu0 %v1017_v3  ;;  %869 = vmatpush3.bf16.msra.mxu1 %v1017_v3 }
  0x28   :  { %830 = vmatprep.subr.bf16.mxu0 %v1022_v4  ;;  %870 = vmatprep.subr.bf16.mxu1 %v1022_v4 }
  0x2a   :  { %237 = vmatmul.mubr.bf16.gmra.mrb[4].mxu0 %v932_v22  ;;  %345 = vmatmul.mubr.bf16.gmra.mrb[4].mxu1 %v933_v23 }
  0x2b   :  { %831 = vmatpush3.bf16.msra.mxu0 %v1029_v5  ;;  %871 = vmatpush3.bf16.msra.mxu1 %v1029_v5 }
  0x2c   :  { %832 = vmatprep.subr.bf16.mxu0 %v1036_v6  ;;  %872 = vmatprep.subr.bf16.mxu1 %v1036_v6 }
  0x2d   :  { %244 = vmatprep.mubr.bf16.mxu0 %v934_v24  ;;  %352 = vmatprep.mubr.bf16.mxu1 %v936_v25 }
  0x2f   :  { %833 = vmatpush3.bf16.msra.mxu0 %v1043_v7  ;;  %873 = vmatpush3.bf16.msra.mxu1 %v1043_v7 }
  0x30   :  { %834 = vmatprep.subr.bf16.mxu0 %v1050_v8  ;;  %874 = vmatprep.subr.bf16.mxu1 %v1050_v8 }
  0x32   :  { %245 = vmatmul.mubr.bf16.gmra.mrb[8].mxu0 %v938_v26  ;;  %353 = vmatmul.mubr.bf16.gmra.mrb[8].mxu1 %v939_v27 }
  0x33   :  { %835 = vmatpush3.bf16.msra.mxu0 %v1057_v9  ;;  %875 = vmatpush3.bf16.msra.mxu1 %v1057_v9 }
  0x34   :  { %836 = vmatprep.subr.bf16.mxu0 %v1064_v10  ;;  %876 = vmatprep.subr.bf16.mxu1 %v1064_v10 }
  0x35   :  { %252 = vmatprep.mubr.bf16.mxu0 %v673_v30  ;;  %360 = vmatprep.mubr.bf16.mxu1 %v697_v31 }
  0x37   :  { %837 = vmatpush3.bf16.msra.mxu0 %v1077_v13  ;;  %877 = vmatpush3.bf16.msra.mxu1 %v1077_v13 }
  0x38   :  { %838 = vmatprep.subr.bf16.mxu0 %v1084_v14  ;;  %878 = vmatprep.subr.bf16.mxu1 %v1084_v14 }
  0x3a   :  { %253 = vmatmul.mubr.bf16.gmra.mrb[12].mxu0 %v672_v32  ;;  %361 = vmatmul.mubr.bf16.gmra.mrb[12].mxu1 %v696_v33 }
  0x3b   :  { %839 = vmatpush3.bf16.msra.mxu0 %v1091_v15  ;;  %879 = vmatpush3.bf16.msra.mxu1 %v1091_v15 }
  0x3c   :  { %840 = vmatprep.subr.bf16.mxu0 %v1098_v16  ;;  %880 = vmatprep.subr.bf16.mxu1 %v1098_v16 }
  0x3d   :  { %444 = vmatprep.mubr.bf16.mxu0 %v946_v34  ;;  %552 = vmatprep.mubr.bf16.mxu1 %v949_v35 }
  0x3f   :  { %841 = vmatpush3.bf16.msra.mxu0 %v1105_v17  ;;  %881 = vmatpush3.bf16.msra.mxu1 %v1105_v17 }
  0x42   :  { %445 = vmatmul.mubr.bf16.vlgmr.msra.gmra.mrb[16].mxu0 %v944_v36  ;;  %553 = vmatmul.mubr.bf16.vlgmr.msra.gmra.mrb[16].mxu1 %v947_v37 }
  0x43   :  { %452 = vmatprep.mubr.bf16.mxu0 %v950_v38  ;;  %560 = vmatprep.mubr.bf16.mxu1 %v952_v39 }
  0x4a   :  { %453 = vmatmul.mubr.bf16.gmra.mrb[20].mxu0 %v954_v40  ;;  %561 = vmatmul.mubr.bf16.gmra.mrb[20].mxu1 %v955_v41 }
  0x4b   :  { %460 = vmatprep.mubr.bf16.mxu0 %v956_v42  ;;  %568 = vmatprep.mubr.bf16.mxu1 %v958_v43 }
  0x52   :  { %461 = vmatmul.mubr.bf16.gmra.mrb[24].mxu0 %v960_v46  ;;  %569 = vmatmul.mubr.bf16.gmra.mrb[24].mxu1 %v961_v47 }
  0x53   :  { %468 = vmatprep.mubr.bf16.mxu0 %v705_v48  ;;  %576 = vmatprep.mubr.bf16.mxu1 %v713_v49 }
  0x5a   :  { %469 = vmatmul.mubr.bf16.gmra.mrb[28].mxu0 %v704_v50  ;;  %577 = vmatmul.mubr.bf16.gmra.mrb[28].mxu1 %v712_v51 }
  0xf5   :  { %v762_v52 = vpop.f32.mrb[0].mxu0  ;;  %v802_v53 = vpop.f32.mrb[0].mxu1 }
  0xf6   :  { %v763_v54 = vpop.f32.mrb[1].mxu0  ;;  %v803_v55 = vpop.f32.mrb[1].mxu1 }
  0xf7   :  { %v1217_v56 = vadd.f32 %v763_v54, %v762_v52  ;;  %v1219_v57 = vadd.f32 %v803_v55, %v802_v53  ;;  %v765_v58 = vpop.f32.mrb[2].mxu0  ;;  %v805_v59 = vpop.f32.mrb[2].mxu1  ;;  %v1256_v54 = vld [vmem:[%s1297_s5] ss:$0 sm:$0xff] }
  0xf8   :  { %v766_v60 = vpop.f32.mrb[3].mxu0  ;;  %v806_v61 = vpop.f32.mrb[3].mxu1 }
  0xf9   :  { %v584_v62 = vmax.f32 %v1217_v56, %v1219_v57  ;;  %v767_v63 = vadd.f32 %v766_v60, %v765_v58  ;;  %v807_v0 = vadd.f32 %v806_v61, %v805_v59 }
  0xfb   :  { %v585_v1 = vmax.f32 %v767_v63, %v807_v0 }
  0xfd   :  { %v768_v2 = vpop.f32.mrb[4].mxu0  ;;  %v808_v3 = vpop.f32.mrb[4].mxu1 }
  0xfe   :  { %v769_v4 = vpop.f32.mrb[5].mxu0  ;;  %v809_v5 = vpop.f32.mrb[5].mxu1 }
  0xff   :  { %v1223_v6 = vadd.f32 %v769_v4, %v768_v2  ;;  %v1225_v7 = vadd.f32 %v809_v5, %v808_v3  ;;  %v771_v8 = vpop.f32.mrb[6].mxu0  ;;  %v811_v9 = vpop.f32.mrb[6].mxu1 }
 0x100   :  { %v772_v10 = vpop.f32.mrb[7].mxu0  ;;  %v812_v11 = vpop.f32.mrb[7].mxu1 }
 0x101   :  { %v586_v12 = vmax.f32 %v1223_v6, %v1225_v7  ;;  %v1229_v13 = vadd.f32 %v772_v10, %v771_v8  ;;  %v1231_v14 = vadd.f32 %v812_v11, %v811_v9 }
 0x103   :  { %v587_v15 = vmax.f32 %v1229_v13, %v1231_v14 }
 0x105   :  { %v774_v16 = vpop.f32.mrb[8].mxu0  ;;  %v814_v17 = vpop.f32.mrb[8].mxu1 }
 0x106   :  { %v775_v18 = vpop.f32.mrb[9].mxu0  ;;  %v815_v19 = vpop.f32.mrb[9].mxu1 }
 0x107   :  { %v1235_v20 = vadd.f32 %v775_v18, %v774_v16  ;;  %v1237_v21 = vadd.f32 %v815_v19, %v814_v17  ;;  %v777_v22 = vpop.f32.mrb[10].mxu0  ;;  %v817_v23 = vpop.f32.mrb[10].mxu1 }
 0x108   :  { %v778_v24 = vpop.f32.mrb[11].mxu0  ;;  %v818_v25 = vpop.f32.mrb[11].mxu1 }
 0x109   :  { %v588_v26 = vmax.f32 %v1235_v20, %v1237_v21  ;;  %v1241_v27 = vadd.f32 %v778_v24, %v777_v22  ;;  %v1243_v28 = vadd.f32 %v818_v25, %v817_v23 }
 0x10b   :  { %v589_v29 = vmax.f32 %v1241_v27, %v1243_v28 }
 0x10d   :  { %v780_v30 = vpop.f32.mrb[12].mxu0  ;;  %v820_v31 = vpop.f32.mrb[12].mxu1 }
 0x10e   :  { %v781_v32 = vpop.f32.mrb[13].mxu0  ;;  %v821_v33 = vpop.f32.mrb[13].mxu1 }
 0x10f   :  { %v1247_v34 = vadd.f32 %v781_v32, %v780_v30  ;;  %v1249_v35 = vadd.f32 %v821_v33, %v820_v31  ;;  %v783_v36 = vpop.f32.mrb[14].mxu0  ;;  %v823_v37 = vpop.f32.mrb[14].mxu1 }
 0x110   :  { %v784_v38 = vpop.f32.mrb[15].mxu0  ;;  %v824_v39 = vpop.f32.mrb[15].mxu1 }
 0x111   :  { %v590_v40 = vmax.f32 %v1247_v34, %v1249_v35 }
 0x115   :  { %v842_v41 = vpop.f32.mrb[16].mxu0  ;;  %v882_v42 = vpop.f32.mrb[16].mxu1 }
 0x116   :  { %v843_v43 = vpop.f32.mrb[17].mxu0  ;;  %v883_v44 = vpop.f32.mrb[17].mxu1 }
 0x117   :  { %v844_v45 = vadd.f32 %v843_v43, %v842_v41  ;;  %v884_v46 = vadd.f32 %v883_v44, %v882_v42  ;;  %v845_v47 = vpop.f32.mrb[18].mxu0  ;;  %v885_v48 = vpop.f32.mrb[18].mxu1 }
 0x118   :  { %v846_v49 = vpop.f32.mrb[19].mxu0  ;;  %v886_v50 = vpop.f32.mrb[19].mxu1 }
 0x119   :  { %v591_v51 = vmax.f32 %v844_v45, %v884_v46  ;;  %v847_v52 = vadd.f32 %v846_v49, %v845_v47  ;;  %v887_v53 = vadd.f32 %v886_v50, %v885_v48 }
 0x11b   :  { %v598_v55 = vmax.f32 %v584_v62, %v591_v51  ;;  %v592_v56 = vmax.f32 %v847_v52, %v887_v53 }
 0x11d   :  { %v612_v57 = vadd.f32 %v1256_v54, %v598_v55  ;;  %v599_v58 = vmax.f32 %v585_v1, %v592_v56  ;;  %v848_v59 = vpop.f32.mrb[20].mxu0  ;;  %v888_v60 = vpop.f32.mrb[20].mxu1 }
 0x11e   :  { %v849_v61 = vpop.f32.mrb[21].mxu0  ;;  %v889_v63 = vpop.f32.mrb[21].mxu1 }
 0x11f   :  { %v613_v0 = vadd.f32 %v1256_v54, %v599_v58  ;;  %v850_v2 = vadd.f32 %v849_v61, %v848_v59  ;;  %v890_v3 = vadd.f32 %v889_v63, %v888_v60  ;;  %v851_v4 = vpop.f32.mrb[22].mxu0  ;;  %v891_v5 = vpop.f32.mrb[22].mxu1  ;;  %v619_v8 = vmax.f32 %v612_v57, 0.0 }
 0x120   :  { %v852_v9 = vpop.f32.mrb[23].mxu0  ;;  %v892_v10 = vpop.f32.mrb[23].mxu1 }
 0x121   :  { %v620_v11 = vmax.f32 %v613_v0, 0.0  ;;  %v593_v16 = vmax.f32 %v850_v2, %v890_v3  ;;  %v853_v62 = vadd.f32 %v852_v9, %v851_v4  ;;  %v893_v17 = vadd.f32 %v892_v10, %v891_v5 }
 0x123   :  { %v732_v18 = vpack.c.bf16 %v620_v11, %v619_v8  ;;  %v600_v1 = vmax.f32 %v586_v12, %v593_v16  ;;  %v594_v19 = vmax.f32 %v853_v62, %v893_v17 }
 0x125   :  { %733 = vst [vmem:[%s1298_s6] sm:$0xff] %v732_v18   ;;  %v614_v22 = vadd.f32 %v1256_v54, %v600_v1  ;;  %v601_v23 = vmax.f32 %v587_v15, %v594_v19  ;;  %v854_v24 = vpop.f32.mrb[24].mxu0  ;;  %v894_v25 = vpop.f32.mrb[24].mxu1 }
 0x126   :  { %v855_v30 = vpop.f32.mrb[25].mxu0  ;;  %v895_v31 = vpop.f32.mrb[25].mxu1 }
 0x127   :  { %v615_v32 = vadd.f32 %v1256_v54, %v601_v23  ;;  %v856_v33 = vadd.f32 %v855_v30, %v854_v24  ;;  %v896_v6 = vadd.f32 %v895_v31, %v894_v25  ;;  %v857_v7 = vpop.f32.mrb[26].mxu0  ;;  %v897_v12 = vpop.f32.mrb[26].mxu1  ;;  %v621_v36 = vmax.f32 %v614_v22, 0.0 }
 0x128   :  { %v858_v37 = vpop.f32.mrb[27].mxu0  ;;  %v898_v38 = vpop.f32.mrb[27].mxu1 }
 0x129   :  { %v622_v39 = vmax.f32 %v615_v32, 0.0  ;;  %v595_v41 = vmax.f32 %v856_v33, %v896_v6  ;;  %v859_v42 = vadd.f32 %v858_v37, %v857_v7  ;;  %v899_v43 = vadd.f32 %v898_v38, %v897_v12 }
 0x12b   :  { %v737_v44 = vpack.c.bf16 %v622_v39, %v621_v36  ;;  %v602_v13 = vmax.f32 %v588_v26, %v595_v41  ;;  %v596_v14 = vmax.f32 %v859_v42, %v899_v43 }
 0x12d   :  { %744 = vst [vmem:[%s1298_s6 + $0x8] sm:$0xff] %v737_v44   ;;  %v616_v15 = vadd.f32 %v1256_v54, %v602_v13  ;;  %v603_v45 = vmax.f32 %v589_v29, %v596_v14  ;;  %v860_v46 = vpop.f32.mrb[28].mxu0  ;;  %v900_v47 = vpop.f32.mrb[28].mxu1 }
 0x12e   :  { %v861_v48 = vpop.f32.mrb[29].mxu0  ;;  %v901_v49 = vpop.f32.mrb[29].mxu1 }
 0x12f   :  { %v617_v50 = vadd.f32 %v1256_v54, %v603_v45  ;;  %v862_v51 = vadd.f32 %v861_v48, %v860_v46  ;;  %v902_v20 = vadd.f32 %v901_v49, %v900_v47  ;;  %v863_v21 = vpop.f32.mrb[30].mxu0  ;;  %v903_v26 = vpop.f32.mrb[30].mxu1  ;;  %v623_v55 = vmax.f32 %v616_v15, 0.0 }
 0x130   :  { %v864_v52 = vpop.f32.mrb[31].mxu0  ;;  %v904_v53 = vpop.f32.mrb[31].mxu1 }
 0x131   :  { %v624_v56 = vmax.f32 %v617_v50, 0.0  ;;  %v597_v57 = vmax.f32 %v862_v51, %v902_v20 }
 0x133   :  { %v742_v58 = vpack.c.bf16 %v624_v56, %v623_v55  ;;  %v604_v27 = vmax.f32 %v590_v40, %v597_v57 }
 0x135   :  { %745 = vst [vmem:[%s1298_s6 + $0x10] sm:$0xff] %v742_v58   ;;  %v618_v28 = vadd.f32 %v1256_v54, %v604_v27 }
 0x137   :  { %v625_v29 = vmax.f32 %v618_v28, 0.0 }
 0x139   :  { %v728_v59 = vpack.c.bf16 %v625_v29, %v625_v29 }
 0x13b   :  { %661 = vst [vmem:[%s1298_s6 + $0x18] sm:$0x1] %v728_v59 }

// kernel: net_forward.5
= control target key start
LH: loop header
LB: loop body
LE: loop exit
PB: predicated region body
PF: predicated region fallthrough
CT: control target
= control target key end

     0   :  { %v447_v27 = vlaneseq  ;;  %v3408_v35 = vmov 1966171168   ;;  %vm3410_vm0 = vmmov 0   ;;  %s4199_s0 = inlined_call_operand.vmem [shape: bf16[2,3200], index: 0, kind: input, shape index: {}]   ;;  %s4200_s1 = inlined_call_operand.vmem [shape: bf16[3200,128], index: 1, kind: input, shape index: {}]   ;;  %s4201_s2 = inlined_call_operand.vmem [shape: f32[1,128], index: 2, kind: input, shape index: {}]   ;;  %s4202_s3 = inlined_call_operand.vmem [shape: bf16[128,128], index: 3, kind: input, shape index: {}]   ;;  %s4203_s4 = inlined_call_operand.vmem [shape: f32[1,128], index: 4, kind: input, shape index: {}]   ;;  %s4204_s5 = inlined_call_operand.vmem [shape: bf16[128,128], index: 5, kind: input, shape index: {}]   ;;  %s4205_s6 = inlined_call_operand.vmem [shape: f32[1,128], index: 6, kind: input, shape index: {}]   ;;  %s4206_s7 = inlined_call_operand.hbm [shape: f32[2,128], index: 7, kind: output, shape index: {}]  }
   0x1   :  { %v3165_v0 = vld [vmem:[%s4200_s1 + $0x40] sm:$0xff]   ;;  %v3169_v4 = vld [vmem:[%s4200_s1 + $0x48] sm:$0xff]   ;;  %v3173_v8 = vld [vmem:[%s4200_s1 + $0x50] sm:$0xff]   ;;  %v445_v36 = vunpack.c.l.s4 %v3408_v35 }
   0x2   :  { %v3166_v1 = vld [vmem:[%s4200_s1] sm:$0xff]   ;;  %2810 = vmatprep.subr.bf16.mxu0 %v3165_v0  ;;  %v3170_v5 = vld [vmem:[%s4200_s1 + $0x8] sm:$0xff]   ;;  %v3174_v9 = vld [vmem:[%s4200_s1 + $0x10] sm:$0xff]   ;;  %v448_v32 = vshrl.u32 %v447_v27, 7 }
   0x3   :  { %v3167_v2 = vld [vmem:[%s4200_s1 + $0xc0] sm:$0xff]   ;;  %2811 = vmatpush3.bf16.msra.mxu0 %v3166_v1  ;;  %v3171_v6 = vld [vmem:[%s4200_s1 + $0xc8] sm:$0xff]   ;;  %v3175_v10 = vld [vmem:[%s4200_s1 + $0xd0] sm:$0xff]   ;;  %v446_v39 = vunpack.c.0.s8 %v445_v36 }
   0x4   :  { %v3168_v3 = vld [vmem:[%s4200_s1 + $0x80] sm:$0xff]   ;;  %2832 = vmatprep.subr.bf16.mxu1 %v3167_v2  ;;  %2812 = vmatprep.subr.bf16.mxu0 %v3169_v4  ;;  %v3172_v7 = vld [vmem:[%s4200_s1 + $0x88] sm:$0xff]   ;;  %v3176_v11 = vld [vmem:[%s4200_s1 + $0x90] sm:$0xff]  }
   0x5   :  { %2833 = vmatpush3.bf16.msra.mxu1 %v3168_v3  ;;  %v3177_v12 = vld [vmem:[%s4200_s1 + $0x58] sm:$0xff]   ;;  %v3181_v16 = vld [vmem:[%s4200_s1 + $0x60] sm:$0xff]   ;;  %v3185_v20 = vld [vmem:[%s4200_s1 + $0x68] sm:$0xff]   ;;  %v3557_v41 = vsub.s32 %v446_v39, %v448_v32 }
   0x6   :  { %2834 = vmatprep.subr.bf16.mxu1 %v3171_v6  ;;  %v3178_v13 = vld [vmem:[%s4200_s1 + $0x18] sm:$0xff]   ;;  %v3182_v17 = vld [vmem:[%s4200_s1 + $0x20] sm:$0xff]   ;;  %v3186_v21 = vld [vmem:[%s4200_s1 + $0x28] sm:$0xff]  }
   0x7   :  { %2813 = vmatpush3.bf16.msra.mxu0 %v3170_v5  ;;  %v3179_v14 = vld [vmem:[%s4200_s1 + $0xd8] sm:$0xff]   ;;  %v3183_v18 = vld [vmem:[%s4200_s1 + $0xe0] sm:$0xff]   ;;  %v3187_v22 = vld [vmem:[%s4200_s1 + $0xe8] sm:$0xff]  }
   0x8   :  { %2814 = vmatprep.subr.bf16.mxu0 %v3173_v8  ;;  %v3180_v15 = vld [vmem:[%s4200_s1 + $0x98] sm:$0xff]   ;;  %v3184_v19 = vld [vmem:[%s4200_s1 + $0xa0] sm:$0xff]   ;;  %v3188_v23 = vld [vmem:[%s4200_s1 + $0xa8] sm:$0xff]  }
   0x9   :  { %2835 = vmatpush3.bf16.msra.mxu1 %v3172_v7  ;;  %v3189_v24 = vld [vmem:[%s4200_s1 + $0x70] sm:$0xff]   ;;  %v3193_v29 = vld [vmem:[%s4200_s1 + $0x78] sm:$0xff]   ;;  %v28_v33 = vld [vmem:[%s4199_s0] sm:$0xff] }
   0xa   :  { %2836 = vmatprep.subr.bf16.mxu1 %v3175_v10  ;;  %v3190_v25 = vld [vmem:[%s4200_s1 + $0x30] sm:$0xff]   ;;  %v3194_v30 = vld [vmem:[%s4200_s1 + $0x38] sm:$0xff]   ;;  %v3198_v37 = vld [vmem:[%s4200_s1 + $0x140] sm:$0xff]   ;;  %v443_v38 = vcombine.high %v28_v33, %v28_v33  ;;  %v450_v42 = vrot.slane %v28_v33, %v3557_v41 }
   0xb   :  { %2815 = vmatpush3.bf16.msra.mxu0 %v3174_v9  ;;  %v3191_v26 = vld [vmem:[%s4200_s1 + $0xf0] sm:$0xff]   ;;  %v3195_v31 = vld [vmem:[%s4200_s1 + $0xf8] sm:$0xff]   ;;  %v3200_v40 = vld [vmem:[%s4200_s1 + $0x1c0] sm:$0xff]  }
   0xc   :  { %2816 = vmatprep.subr.bf16.mxu0 %v3177_v12  ;;  %v3192_v28 = vld [vmem:[%s4200_s1 + $0xb0] sm:$0xff]   ;;  %v3197_v34 = vld [vmem:[%s4200_s1 + $0xb8] sm:$0xff]   ;;  %v3561_v43 = vrot.slane %v443_v38, %v3557_v41  ;;  %v458_v44 = vcombine.high %v450_v42, %v450_v42  ;;  %v466_v45 = vrot.slane %v450_v42, %v3557_v41  ;;  %v3199_v48 = vld [vmem:[%s4200_s1 + $0x100] sm:$0xff]  }
   0xd   :  { %2837 = vmatpush3.bf16.msra.mxu1 %v3176_v11  ;;  %v3202_v51 = vld [vmem:[%s4200_s1 + $0x148] sm:$0xff]   ;;  %v3201_v53 = vld [vmem:[%s4200_s1 + $0x180] sm:$0xff]   ;;  %v3206_v57 = vld [vmem:[%s4200_s1 + $0x150] sm:$0xff]  }
   0xe   :  { %2838 = vmatprep.subr.bf16.mxu1 %v3179_v14  ;;  %v459_v46 = vcombine.high %v3561_v43, %v3561_v43  ;;  %v480_v47 = vrot.slane %v458_v44, %v3557_v41  ;;  %v488_v50 = vcombine.high %v466_v45, %v466_v45  ;;  %v3204_v54 = vld [vmem:[%s4200_s1 + $0x1c8] sm:$0xff]   ;;  %v3208_v59 = vld [vmem:[%s4200_s1 + $0x1d0] sm:$0xff]   ;;  %v3210_v61 = vld [vmem:[%s4200_s1 + $0x158] sm:$0xff]  }
   0xf   :  { %2817 = vmatpush3.bf16.msra.mxu0 %v3178_v13  ;;  %v3203_v56 = vld [vmem:[%s4200_s1 + $0x108] sm:$0xff]   ;;  %v3207_v60 = vld [vmem:[%s4200_s1 + $0x110] sm:$0xff]   ;;  %v3212_v63 = vld [vmem:[%s4200_s1 + $0x1d8] sm:$0xff]  }
  0x10   :  { %2818 = vmatprep.subr.bf16.mxu0 %v3181_v16  ;;  %v487_v49 = vrot.slane %v459_v46, %v3557_v41  ;;  %1861 = vmatprep.mubr.bf16.mxu0 %v480_v47  ;;  %v490_v52 = vcombine.high %v480_v47, %v480_v47  ;;  %v3205_v58 = vld [vmem:[%s4200_s1 + $0x188] sm:$0xff]   ;;  %v3209_v62 = vld [vmem:[%s4200_s1 + $0x190] sm:$0xff]   ;;  %v3211_v0 = vld [vmem:[%s4200_s1 + $0x118] sm:$0xff]  }
  0x11   :  { %2839 = vmatpush3.bf16.msra.mxu1 %v3180_v15  ;;  %v3214_v1 = vld [vmem:[%s4200_s1 + $0x160] sm:$0xff]   ;;  %v3213_v2 = vld [vmem:[%s4200_s1 + $0x198] sm:$0xff]   ;;  %v3218_v5 = vld [vmem:[%s4200_s1 + $0x168] sm:$0xff]  }
  0x12   :  { %2840 = vmatprep.subr.bf16.mxu1 %v3183_v18  ;;  %v491_v55 = vcombine.high %v487_v49, %v487_v49  ;;  %1901 = vmatprep.mubr.bf16.mxu1 %v490_v52  ;;  %v3216_v3 = vld [vmem:[%s4200_s1 + $0x1e0] sm:$0xff]   ;;  %v3220_v7 = vld [vmem:[%s4200_s1 + $0x1e8] sm:$0xff]   ;;  %v3222_v9 = vld [vmem:[%s4200_s1 + $0x170] sm:$0xff]  }
  0x13   :  { %2819 = vmatpush3.bf16.msra.mxu0 %v3182_v17  ;;  %v3215_v4 = vld [vmem:[%s4200_s1 + $0x120] sm:$0xff]   ;;  %v3219_v8 = vld [vmem:[%s4200_s1 + $0x128] sm:$0xff]   ;;  %v3224_v11 = vld [vmem:[%s4200_s1 + $0x1f0] sm:$0xff]   ;;  %v473_v17 = vrot.slane %v3561_v43, %v3557_v41 }
  0x14   :  { %2820 = vmatprep.subr.bf16.mxu0 %v3185_v20  ;;  %v3217_v6 = vld [vmem:[%s4200_s1 + $0x1a0] sm:$0xff]   ;;  %v3221_v10 = vld [vmem:[%s4200_s1 + $0x1a8] sm:$0xff]   ;;  %v3223_v12 = vld [vmem:[%s4200_s1 + $0x130] sm:$0xff]  }
  0x15   :  { %2841 = vmatpush3.bf16.msra.mxu1 %v3184_v19  ;;  %v3226_v13 = vld [vmem:[%s4200_s1 + $0x178] sm:$0xff]   ;;  %v3225_v14 = vld [vmem:[%s4200_s1 + $0x1b0] sm:$0xff]   ;;  %v3230_v18 = vld [vmem:[%s4200_s1 + $0x240] sm:$0xff]  }
  0x16   :  { %2842 = vmatprep.subr.bf16.mxu1 %v3187_v22  ;;  %v3228_v15 = vld [vmem:[%s4200_s1 + $0x1f8] sm:$0xff]   ;;  %v3232_v20 = vld [vmem:[%s4200_s1 + $0x2c0] sm:$0xff]   ;;  %v489_v22 = vcombine.high %v473_v17, %v473_v17  ;;  %v3238_v27 = vld [vmem:[%s4200_s1 + $0x250] sm:$0xff]  }
  0x17   :  { %2821 = vmatpush3.bf16.msra.mxu0 %v3186_v21  ;;  %v3227_v16 = vld [vmem:[%s4200_s1 + $0x138] sm:$0xff]   ;;  %v3231_v21 = vld [vmem:[%s4200_s1 + $0x200] sm:$0xff]   ;;  %v3241_v32 = vld [vmem:[%s4200_s1 + $0x290] sm:$0xff]  }
  0x18   :  { %2822 = vmatprep.subr.bf16.mxu0 %v3189_v24  ;;  %v3229_v19 = vld [vmem:[%s4200_s1 + $0x1b8] sm:$0xff]   ;;  %v3233_v24 = vld [vmem:[%s4200_s1 + $0x280] sm:$0xff]   ;;  %v3250_v39 = vld [vmem:[%s4200_s1 + $0x268] sm:$0xff]  }
  0x19   :  { %2843 = vmatpush3.bf16.msra.mxu1 %v3188_v23  ;;  %v3234_v23 = vld [vmem:[%s4200_s1 + $0x248] sm:$0xff]   ;;  %v3244_v33 = vld [vmem:[%s4200_s1 + $0x2d8] sm:$0xff]   ;;  %v3246_v35 = vld [vmem:[%s4200_s1 + $0x260] sm:$0xff]  }
  0x1a   :  { %2844 = vmatprep.subr.bf16.mxu1 %v3191_v26  ;;  %v3235_v26 = vld [vmem:[%s4200_s1 + $0x208] sm:$0xff]   ;;  %v3245_v36 = vld [vmem:[%s4200_s1 + $0x298] sm:$0xff]   ;;  %v3247_v38 = vld [vmem:[%s4200_s1 + $0x220] sm:$0xff]  }
  0x1b   :  { %2823 = vmatpush3.bf16.msra.mxu0 %v3190_v25  ;;  %v3236_v25 = vld [vmem:[%s4200_s1 + $0x2c8] sm:$0xff]   ;;  %v3254_v44 = vld [vmem:[%s4200_s1 + $0x270] sm:$0xff]  }
  0x1c   :  { %2824 = vmatprep.subr.bf16.mxu0 %v3193_v29  ;;  %v3240_v29 = vld [vmem:[%s4200_s1 + $0x2d0] sm:$0xff]   ;;  %v3252_v42 = vld [vmem:[%s4200_s1 + $0x2e8] sm:$0xff]  }
  0x1d   :  { %2845 = vmatpush3.bf16.msra.mxu1 %v3192_v28  ;;  %v3237_v28 = vld [vmem:[%s4200_s1 + $0x288] sm:$0xff]  }
  0x1e   :  { %2846 = vmatprep.subr.bf16.mxu1 %v3195_v31  ;;  %v3242_v31 = vld [vmem:[%s4200_s1 + $0x258] sm:$0xff]   ;;  %v3251_v43 = vld [vmem:[%s4200_s1 + $0x228] sm:$0xff]  }
  0x1f   :  { %2825 = vmatpush3.bf16.msra.mxu0 %v3194_v30  ;;  %v3239_v30 = vld [vmem:[%s4200_s1 + $0x210] sm:$0xff]   ;;  %v3253_v46 = vld [vmem:[%s4200_s1 + $0x2a8] sm:$0xff]  }
  0x20   :  { %2854 = vmatprep.subr.bf16.mxu0 %v3198_v37  ;;  %v3248_v37 = vld [vmem:[%s4200_s1 + $0x2e0] sm:$0xff]  }
  0x21   :  { %2847 = vmatpush3.bf16.msra.mxu1 %v3197_v34  ;;  %v3243_v34 = vld [vmem:[%s4200_s1 + $0x218] sm:$0xff]  }
  0x22   :  { %2876 = vmatprep.subr.bf16.mxu1 %v3200_v40  ;;  %1862 = vmatmul.mubr.bf16.vlgmr.msra.gmra.mrb[0].mxu0 %v466_v45  ;;  %v3249_v40 = vld [vmem:[%s4200_s1 + $0x2a0] sm:$0xff]   ;;  %v29_v45 = vld [vmem:[%s4199_s0 + $0x8] sm:$0xff] }
  0x23   :  { %2855 = vmatpush3.bf16.msra.mxu0 %v3199_v48  ;;  %1941 = vmatprep.mubr.bf16.mxu0 %v487_v49  ;;  %v499_v47 = vrot.slane %v29_v45, %v3557_v41  ;;  %v492_v48 = vcombine.high %v29_v45, %v29_v45  ;;  %v3256_v49 = vld [vmem:[%s4200_s1 + $0x2f0] sm:$0xff]  }
  0x24   :  { %1902 = vmatmul.mubr.bf16.vlgmr.msra.gmra.mrb[0].mxu1 %v488_v50  ;;  %2856 = vmatprep.subr.bf16.mxu0 %v3202_v51  ;;  %v3255_v50 = vld [vmem:[%s4200_s1 + $0x230] sm:$0xff]  }
  0x25   :  { %2877 = vmatpush3.bf16.msra.mxu1 %v3201_v53  ;;  %1981 = vmatprep.mubr.bf16.mxu1 %v491_v55  ;;  %v507_v51 = vcombine.high %v499_v47, %v499_v47  ;;  %v3746_v52 = vrot.slane %v492_v48, %v3557_v41  ;;  %v3258_v53 = vld [vmem:[%s4200_s1 + $0x278] sm:$0xff]   ;;  %v3305_v45 = vld [vmem:[%s4200_s1 + $0x4d0] sm:$0xff]  }
  0x26   :  { %2878 = vmatprep.subr.bf16.mxu1 %v3204_v54  ;;  %v3257_v54 = vld [vmem:[%s4200_s1 + $0x2b0] sm:$0xff]  }
  0x27   :  { %2857 = vmatpush3.bf16.msra.mxu0 %v3203_v56  ;;  %v529_v55 = vrot.slane %v507_v51, %v3557_v41  ;;  %v508_v56 = vcombine.high %v3746_v52, %v3746_v52  ;;  %v3306_v48 = vld [vmem:[%s4200_s1 + $0x490] sm:$0xff]   ;;  %v3311_v51 = vld [vmem:[%s4200_s1 + $0x460] sm:$0xff]  }
  0x28   :  { %2858 = vmatprep.subr.bf16.mxu0 %v3206_v57  ;;  %v3260_v57 = vld [vmem:[%s4200_s1 + $0x2f8] sm:$0xff]  }
  0x29   :  { %2879 = vmatpush3.bf16.msra.mxu1 %v3205_v58  ;;  %v3259_v58 = vld [vmem:[%s4200_s1 + $0x238] sm:$0xff]  }
  0x2a   :  { %2880 = vmatprep.subr.bf16.mxu1 %v3208_v59  ;;  %v539_v59 = vcombine.high %v529_v55, %v529_v55 }
  0x2b   :  { %2859 = vmatpush3.bf16.msra.mxu0 %v3207_v60  ;;  %v515_v60 = vrot.slane %v499_v47, %v3557_v41  ;;  %v3307_v47 = vld [vmem:[%s4200_s1 + $0x458] sm:$0xff]  }
  0x2c   :  { %2860 = vmatprep.subr.bf16.mxu0 %v3210_v61  ;;  %v3262_v61 = vld [vmem:[%s4200_s1 + $0x340] sm:$0xff]  }
  0x2d   :  { %2881 = vmatpush3.bf16.msra.mxu1 %v3209_v62  ;;  %v3261_v62 = vld [vmem:[%s4200_s1 + $0x2b8] sm:$0xff]  }
  0x2e   :  { %2882 = vmatprep.subr.bf16.mxu1 %v3212_v63  ;;  %v536_v63 = vrot.slane %v508_v56, %v3557_v41  ;;  %v3314_v56 = vld [vmem:[%s4200_s1 + $0x4a0] sm:$0xff]  }
  0x2f   :  { %2861 = vmatpush3.bf16.msra.mxu0 %v3211_v0  ;;  %v3264_v0 = vld [vmem:[%s4200_s1 + $0x3c0] sm:$0xff]  }
  0x30   :  { %2862 = vmatprep.subr.bf16.mxu0 %v3214_v1  ;;  %v3263_v1 = vld [vmem:[%s4200_s1 + $0x300] sm:$0xff]  }
  0x31   :  { %2883 = vmatpush3.bf16.msra.mxu1 %v3213_v2  ;;  %v537_v2 = vcombine.high %v515_v60, %v515_v60 }
  0x32   :  { %2884 = vmatprep.subr.bf16.mxu1 %v3216_v3  ;;  %v3266_v3 = vld [vmem:[%s4200_s1 + $0x348] sm:$0xff]  }
  0x33   :  { %2863 = vmatpush3.bf16.msra.mxu0 %v3215_v4  ;;  %v3265_v4 = vld [vmem:[%s4200_s1 + $0x380] sm:$0xff]  }
  0x34   :  { %2864 = vmatprep.subr.bf16.mxu0 %v3218_v5  ;;  %v540_v5 = vcombine.high %v536_v63, %v536_v63 }
  0x35   :  { %2885 = vmatpush3.bf16.msra.mxu1 %v3217_v6  ;;  %v3268_v6 = vld [vmem:[%s4200_s1 + $0x3c8] sm:$0xff]  }
  0x36   :  { %2886 = vmatprep.subr.bf16.mxu1 %v3220_v7  ;;  %v3267_v7 = vld [vmem:[%s4200_s1 + $0x308] sm:$0xff]  }
  0x37   :  { %2865 = vmatpush3.bf16.msra.mxu0 %v3219_v8  ;;  %v3270_v8 = vld [vmem:[%s4200_s1 + $0x350] sm:$0xff]  }
  0x38   :  { %2866 = vmatprep.subr.bf16.mxu0 %v3222_v9  ;;  %v3269_v9 = vld [vmem:[%s4200_s1 + $0x388] sm:$0xff]  }
  0x39   :  { %2887 = vmatpush3.bf16.msra.mxu1 %v3221_v10  ;;  %v3272_v10 = vld [vmem:[%s4200_s1 + $0x3d0] sm:$0xff]  }
  0x3a   :  { %2888 = vmatprep.subr.bf16.mxu1 %v3224_v11  ;;  %v3271_v11 = vld [vmem:[%s4200_s1 + $0x310] sm:$0xff]  }
  0x3b   :  { %2867 = vmatpush3.bf16.msra.mxu0 %v3223_v12  ;;  %v3274_v12 = vld [vmem:[%s4200_s1 + $0x358] sm:$0xff]  }
  0x3c   :  { %2868 = vmatprep.subr.bf16.mxu0 %v3226_v13  ;;  %v3273_v13 = vld [vmem:[%s4200_s1 + $0x390] sm:$0xff]  }
  0x3d   :  { %2889 = vmatpush3.bf16.msra.mxu1 %v3225_v14  ;;  %v3276_v14 = vld [vmem:[%s4200_s1 + $0x3d8] sm:$0xff]  }
  0x3e   :  { %2890 = vmatprep.subr.bf16.mxu1 %v3228_v15  ;;  %v3275_v15 = vld [vmem:[%s4200_s1 + $0x318] sm:$0xff]  }
  0x3f   :  { %2869 = vmatpush3.bf16.msra.mxu0 %v3227_v16  ;;  %v3278_v16 = vld [vmem:[%s4200_s1 + $0x360] sm:$0xff]  }
  0x40   :  { %2898 = vmatprep.subr.bf16.mxu0 %v3230_v18  ;;  %v3280_v18 = vld [vmem:[%s4200_s1 + $0x3e0] sm:$0xff]  }
  0x41   :  { %2891 = vmatpush3.bf16.msra.mxu1 %v3229_v19  ;;  %v3279_v19 = vld [vmem:[%s4200_s1 + $0x320] sm:$0xff]  }
  0x42   :  { %1942 = vmatmul.mubr.bf16.vlgmr.msra.gmra.mrb[4].mxu0 %v473_v17  ;;  %2920 = vmatprep.subr.bf16.mxu1 %v3232_v20  ;;  %v3277_v17 = vld [vmem:[%s4200_s1 + $0x398] sm:$0xff]   ;;  %v3282_v20 = vld [vmem:[%s4200_s1 + $0x368] sm:$0xff]  }
  0x43   :  { %2899 = vmatpush3.bf16.msra.mxu0 %v3231_v21  ;;  %2021 = vmatprep.mubr.bf16.mxu0 %v529_v55  ;;  %v3281_v21 = vld [vmem:[%s4200_s1 + $0x3a0] sm:$0xff]   ;;  %v3315_v55 = vld [vmem:[%s4200_s1 + $0x468] sm:$0xff]  }
  0x44   :  { %1982 = vmatmul.mubr.bf16.vlgmr.msra.gmra.mrb[4].mxu1 %v489_v22  ;;  %2900 = vmatprep.subr.bf16.mxu0 %v3234_v23  ;;  %v3284_v22 = vld [vmem:[%s4200_s1 + $0x3e8] sm:$0xff]  }
  0x45   :  { %2921 = vmatpush3.bf16.msra.mxu1 %v3233_v24  ;;  %2061 = vmatprep.mubr.bf16.mxu1 %v539_v59  ;;  %v3283_v23 = vld [vmem:[%s4200_s1 + $0x328] sm:$0xff]   ;;  %v3286_v24 = vld [vmem:[%s4200_s1 + $0x370] sm:$0xff]  }
  0x46   :  { %2922 = vmatprep.subr.bf16.mxu1 %v3236_v25  ;;  %v3285_v25 = vld [vmem:[%s4200_s1 + $0x3a8] sm:$0xff]   ;;  %v3319_v59 = vld [vmem:[%s4200_s1 + $0x470] sm:$0xff]  }
  0x47   :  { %2901 = vmatpush3.bf16.msra.mxu0 %v3235_v26  ;;  %v3288_v26 = vld [vmem:[%s4200_s1 + $0x3f0] sm:$0xff]  }
  0x48   :  { %2902 = vmatprep.subr.bf16.mxu0 %v3238_v27  ;;  %v3287_v27 = vld [vmem:[%s4200_s1 + $0x330] sm:$0xff]  }
  0x49   :  { %2923 = vmatpush3.bf16.msra.mxu1 %v3237_v28  ;;  %v3290_v28 = vld [vmem:[%s4200_s1 + $0x378] sm:$0xff]  }
  0x4a   :  { %2924 = vmatprep.subr.bf16.mxu1 %v3240_v29  ;;  %v3289_v29 = vld [vmem:[%s4200_s1 + $0x3b0] sm:$0xff]  }
  0x4b   :  { %2903 = vmatpush3.bf16.msra.mxu0 %v3239_v30  ;;  %v3292_v30 = vld [vmem:[%s4200_s1 + $0x3f8] sm:$0xff]  }
  0x4c   :  { %2904 = vmatprep.subr.bf16.mxu0 %v3242_v31  ;;  %v3291_v31 = vld [vmem:[%s4200_s1 + $0x338] sm:$0xff]  }
  0x4d   :  { %2925 = vmatpush3.bf16.msra.mxu1 %v3241_v32  ;;  %v522_v32 = vrot.slane %v3746_v52, %v3557_v41  ;;  %v3310_v52 = vld [vmem:[%s4200_s1 + $0x498] sm:$0xff]  }
  0x4e   :  { %2926 = vmatprep.subr.bf16.mxu1 %v3244_v33  ;;  %v3295_v33 = vld [vmem:[%s4200_s1 + $0x440] sm:$0xff]  }
  0x4f   :  { %2905 = vmatpush3.bf16.msra.mxu0 %v3243_v34  ;;  %v3294_v34 = vld [vmem:[%s4200_s1 + $0x3b8] sm:$0xff]  }
  0x50   :  { %2906 = vmatprep.subr.bf16.mxu0 %v3246_v35  ;;  %v3297_v35 = vld [vmem:[%s4200_s1 + $0x4c0] sm:$0xff]  }
  0x51   :  { %2927 = vmatpush3.bf16.msra.mxu1 %v3245_v36  ;;  %v3296_v36 = vld [vmem:[%s4200_s1 + $0x400] sm:$0xff]  }
  0x52   :  { %2928 = vmatprep.subr.bf16.mxu1 %v3248_v37  ;;  %v538_v37 = vcombine.high %v522_v32, %v522_v32 }
  0x53   :  { %2907 = vmatpush3.bf16.msra.mxu0 %v3247_v38  ;;  %v3299_v38 = vld [vmem:[%s4200_s1 + $0x448] sm:$0xff]  }
  0x54   :  { %2908 = vmatprep.subr.bf16.mxu0 %v3250_v39  ;;  %v3298_v39 = vld [vmem:[%s4200_s1 + $0x480] sm:$0xff]  }
  0x55   :  { %2929 = vmatpush3.bf16.msra.mxu1 %v3249_v40  ;;  %v3301_v40 = vld [vmem:[%s4200_s1 + $0x4c8] sm:$0xff]  }
  0x56   :  { %2930 = vmatprep.subr.bf16.mxu1 %v3252_v42  ;;  %v3300_v42 = vld [vmem:[%s4200_s1 + $0x408] sm:$0xff]  }
  0x57   :  { %2909 = vmatpush3.bf16.msra.mxu0 %v3251_v43  ;;  %v3303_v43 = vld [vmem:[%s4200_s1 + $0x450] sm:$0xff]  }
  0x58   :  { %2910 = vmatprep.subr.bf16.mxu0 %v3254_v44  ;;  %v3302_v44 = vld [vmem:[%s4200_s1 + $0x488] sm:$0xff]  }
  0x59   :  { %2931 = vmatpush3.bf16.msra.mxu1 %v3253_v46  ;;  %v3304_v46 = vld [vmem:[%s4200_s1 + $0x410] sm:$0xff]  }
  0x5a   :  { %2932 = vmatprep.subr.bf16.mxu1 %v3256_v49  ;;  %v3309_v49 = vld [vmem:[%s4200_s1 + $0x4d8] sm:$0xff]  }
  0x5b   :  { %2911 = vmatpush3.bf16.msra.mxu0 %v3255_v50  ;;  %v3308_v50 = vld [vmem:[%s4200_s1 + $0x418] sm:$0xff]  }
  0x5c   :  { %2912 = vmatprep.subr.bf16.mxu0 %v3258_v53  ;;  %v3313_v53 = vld [vmem:[%s4200_s1 + $0x4e0] sm:$0xff]  }
  0x5d   :  { %2933 = vmatpush3.bf16.msra.mxu1 %v3257_v54  ;;  %v3312_v54 = vld [vmem:[%s4200_s1 + $0x420] sm:$0xff]  }
  0x5e   :  { %2934 = vmatprep.subr.bf16.mxu1 %v3260_v57  ;;  %v3317_v57 = vld [vmem:[%s4200_s1 + $0x4e8] sm:$0xff]  }
  0x5f   :  { %2913 = vmatpush3.bf16.msra.mxu0 %v3259_v58  ;;  %v3316_v58 = vld [vmem:[%s4200_s1 + $0x428] sm:$0xff]  }
  0x60   :  { %2942 = vmatprep.subr.bf16.mxu0 %v3262_v61  ;;  %v3318_v61 = vld [vmem:[%s4200_s1 + $0x4a8] sm:$0xff]  }
  0x61   :  { %2935 = vmatpush3.bf16.msra.mxu1 %v3261_v62 }
  0x62   :  { %2022 = vmatmul.mubr.bf16.vlgmr.msra.gmra.mrb[8].mxu0 %v515_v60  ;;  %2964 = vmatprep.subr.bf16.mxu1 %v3264_v0  ;;  %v30_v60 = vld [vmem:[%s4199_s0 + $0x10] sm:$0xff] }
  0x63   :  { %2943 = vmatpush3.bf16.msra.mxu0 %v3263_v1  ;;  %2101 = vmatprep.mubr.bf16.mxu0 %v536_v63  ;;  %v548_v62 = vrot.slane %v30_v60, %v3557_v41  ;;  %v541_v63 = vcombine.high %v30_v60, %v30_v60  ;;  %v3321_v0 = vld [vmem:[%s4200_s1 + $0x4f0] sm:$0xff]  }
  0x64   :  { %2062 = vmatmul.mubr.bf16.vlgmr.msra.gmra.mrb[8].mxu1 %v537_v2  ;;  %2944 = vmatprep.subr.bf16.mxu0 %v3266_v3  ;;  %v3320_v1 = vld [vmem:[%s4200_s1 + $0x430] sm:$0xff]  }
  0x65   :  { %2965 = vmatpush3.bf16.msra.mxu1 %v3265_v4  ;;  %2141 = vmatprep.mubr.bf16.mxu1 %v540_v5  ;;  %v556_v2 = vcombine.high %v548_v62, %v548_v62  ;;  %v3952_v3 = vrot.slane %v541_v63, %v3557_v41  ;;  %v3323_v4 = vld [vmem:[%s4200_s1 + $0x478] sm:$0xff]   ;;  %v3322_v5 = vld [vmem:[%s4200_s1 + $0x4b0] sm:$0xff]  }
  0x66   :  { %2966 = vmatprep.subr.bf16.mxu1 %v3268_v6 }
  0x67   :  { %2945 = vmatpush3.bf16.msra.mxu0 %v3267_v7  ;;  %v578_v6 = vrot.slane %v556_v2, %v3557_v41  ;;  %v557_v7 = vcombine.high %v3952_v3, %v3952_v3 }
  0x68   :  { %2946 = vmatprep.subr.bf16.mxu0 %v3270_v8  ;;  %v3325_v8 = vld [vmem:[%s4200_s1 + $0x4f8] sm:$0xff]  }
  0x69   :  { %2967 = vmatpush3.bf16.msra.mxu1 %v3269_v9  ;;  %v3324_v9 = vld [vmem:[%s4200_s1 + $0x438] sm:$0xff]  }
  0x6a   :  { %2968 = vmatprep.subr.bf16.mxu1 %v3272_v10  ;;  %v588_v10 = vcombine.high %v578_v6, %v578_v6 }
  0x6b   :  { %2947 = vmatpush3.bf16.msra.mxu0 %v3271_v11  ;;  %v564_v11 = vrot.slane %v548_v62, %v3557_v41 }
  0x6c   :  { %2948 = vmatprep.subr.bf16.mxu0 %v3274_v12  ;;  %v3327_v12 = vld [vmem:[%s4200_s1 + $0x540] sm:$0xff]  }
  0x6d   :  { %2969 = vmatpush3.bf16.msra.mxu1 %v3273_v13  ;;  %v3326_v13 = vld [vmem:[%s4200_s1 + $0x4b8] sm:$0xff]  }
  0x6e   :  { %2970 = vmatprep.subr.bf16.mxu1 %v3276_v14  ;;  %v585_v14 = vrot.slane %v557_v7, %v3557_v41 }
  0x6f   :  { %2949 = vmatpush3.bf16.msra.mxu0 %v3275_v15  ;;  %v3329_v15 = vld [vmem:[%s4200_s1 + $0x5c0] sm:$0xff]  }
  0x70   :  { %2950 = vmatprep.subr.bf16.mxu0 %v3278_v16  ;;  %v3328_v16 = vld [vmem:[%s4200_s1 + $0x500] sm:$0xff]  }
  0x71   :  { %2971 = vmatpush3.bf16.msra.mxu1 %v3277_v17  ;;  %v586_v17 = vcombine.high %v564_v11, %v564_v11 }
  0x72   :  { %2972 = vmatprep.subr.bf16.mxu1 %v3280_v18  ;;  %v3331_v18 = vld [vmem:[%s4200_s1 + $0x548] sm:$0xff]  }
  0x73   :  { %2951 = vmatpush3.bf16.msra.mxu0 %v3279_v19  ;;  %v3330_v19 = vld [vmem:[%s4200_s1 + $0x580] sm:$0xff]  }
  0x74   :  { %2952 = vmatprep.subr.bf16.mxu0 %v3282_v20  ;;  %v589_v20 = vcombine.high %v585_v14, %v585_v14 }
  0x75   :  { %2973 = vmatpush3.bf16.msra.mxu1 %v3281_v21  ;;  %v3333_v21 = vld [vmem:[%s4200_s1 + $0x5c8] sm:$0xff]  }
  0x76   :  { %2974 = vmatprep.subr.bf16.mxu1 %v3284_v22  ;;  %v3332_v22 = vld [vmem:[%s4200_s1 + $0x508] sm:$0xff]  }
  0x77   :  { %2953 = vmatpush3.bf16.msra.mxu0 %v3283_v23  ;;  %v3335_v23 = vld [vmem:[%s4200_s1 + $0x550] sm:$0xff]  }
  0x78   :  { %2954 = vmatprep.subr.bf16.mxu0 %v3286_v24  ;;  %v3334_v24 = vld [vmem:[%s4200_s1 + $0x588] sm:$0xff]  }
  0x79   :  { %2975 = vmatpush3.bf16.msra.mxu1 %v3285_v25  ;;  %v3337_v25 = vld [vmem:[%s4200_s1 + $0x5d0] sm:$0xff]  }
  0x7a   :  { %2976 = vmatprep.subr.bf16.mxu1 %v3288_v26  ;;  %v3336_v26 = vld [vmem:[%s4200_s1 + $0x510] sm:$0xff]  }
  0x7b   :  { %2955 = vmatpush3.bf16.msra.mxu0 %v3287_v27  ;;  %v3339_v27 = vld [vmem:[%s4200_s1 + $0x558] sm:$0xff]  }
  0x7c   :  { %2956 = vmatprep.subr.bf16.mxu0 %v3290_v28  ;;  %v3338_v28 = vld [vmem:[%s4200_s1 + $0x590] sm:$0xff]  }
  0x7d   :  { %2977 = vmatpush3.bf16.msra.mxu1 %v3289_v29  ;;  %v3341_v29 = vld [vmem:[%s4200_s1 + $0x5d8] sm:$0xff]  }
  0x7e   :  { %2978 = vmatprep.subr.bf16.mxu1 %v3292_v30  ;;  %v3340_v30 = vld [vmem:[%s4200_s1 + $0x518] sm:$0xff]  }
  0x7f   :  { %2957 = vmatpush3.bf16.msra.mxu0 %v3291_v31  ;;  %v3343_v31 = vld [vmem:[%s4200_s1 + $0x560] sm:$0xff]  }
  0x80   :  { %2986 = vmatprep.subr.bf16.mxu0 %v3295_v33  ;;  %v3345_v33 = vld [vmem:[%s4200_s1 + $0x5e0] sm:$0xff]  }
  0x81   :  { %2979 = vmatpush3.bf16.msra.mxu1 %v3294_v34  ;;  %v3344_v34 = vld [vmem:[%s4200_s1 + $0x520] sm:$0xff]  }
  0x82   :  { %2102 = vmatmul.mubr.bf16.vlgmr.msra.gmra.mrb[12].mxu0 %v522_v32  ;;  %3008 = vmatprep.subr.bf16.mxu1 %v3297_v35  ;;  %v3342_v32 = vld [vmem:[%s4200_s1 + $0x598] sm:$0xff]   ;;  %v3347_v35 = vld [vmem:[%s4200_s1 + $0x568] sm:$0xff]  }
  0x83   :  { %2987 = vmatpush3.bf16.msra.mxu0 %v3296_v36  ;;  %2181 = vmatprep.mubr.bf16.mxu0 %v578_v6  ;;  %v3346_v36 = vld [vmem:[%s4200_s1 + $0x5a0] sm:$0xff]  }
  0x84   :  { %2142 = vmatmul.mubr.bf16.vlgmr.msra.gmra.mrb[12].mxu1 %v538_v37  ;;  %2988 = vmatprep.subr.bf16.mxu0 %v3299_v38  ;;  %v3349_v37 = vld [vmem:[%s4200_s1 + $0x5e8] sm:$0xff]  }
  0x85   :  { %3009 = vmatpush3.bf16.msra.mxu1 %v3298_v39  ;;  %2221 = vmatprep.mubr.bf16.mxu1 %v588_v10  ;;  %v3348_v38 = vld [vmem:[%s4200_s1 + $0x528] sm:$0xff]   ;;  %v3351_v39 = vld [vmem:[%s4200_s1 + $0x570] sm:$0xff]  }
  0x86   :  { %3010 = vmatprep.subr.bf16.mxu1 %v3301_v40  ;;  %v3350_v40 = vld [vmem:[%s4200_s1 + $0x5a8] sm:$0xff]  }
  0x87   :  { %2989 = vmatpush3.bf16.msra.mxu0 %v3300_v42  ;;  %v3353_v42 = vld [vmem:[%s4200_s1 + $0x5f0] sm:$0xff]  }
  0x88   :  { %2990 = vmatprep.subr.bf16.mxu0 %v3303_v43  ;;  %v3352_v43 = vld [vmem:[%s4200_s1 + $0x530] sm:$0xff]  }
  0x89   :  { %3011 = vmatpush3.bf16.msra.mxu1 %v3302_v44  ;;  %v3355_v44 = vld [vmem:[%s4200_s1 + $0x578] sm:$0xff]  }
  0x8a   :  { %3012 = vmatprep.subr.bf16.mxu1 %v3305_v45  ;;  %v3354_v45 = vld [vmem:[%s4200_s1 + $0x5b0] sm:$0xff]  }
  0x8b   :  { %2991 = vmatpush3.bf16.msra.mxu0 %v3304_v46  ;;  %v3357_v46 = vld [vmem:[%s4200_s1 + $0x5f8] sm:$0xff]  }
  0x8c   :  { %2992 = vmatprep.subr.bf16.mxu0 %v3307_v47  ;;  %v3356_v47 = vld [vmem:[%s4200_s1 + $0x538] sm:$0xff]  }
  0x8d   :  { %3013 = vmatpush3.bf16.msra.mxu1 %v3306_v48  ;;  %v571_v48 = vrot.slane %v3952_v3, %v3557_v41 }
  0x8e   :  { %3014 = vmatprep.subr.bf16.mxu1 %v3309_v49  ;;  %v3359_v49 = vld [vmem:[%s4200_s1 + $0x5b8] sm:$0xff]  }
  0x8f   :  { %2993 = vmatpush3.bf16.msra.mxu0 %v3308_v50  ;;  %v3360_v50 = vld [vmem:[%s4200_s1 + $0x600] sm:$0xff]  }
  0x90   :  { %2994 = vmatprep.subr.bf16.mxu0 %v3311_v51  ;;  %v3409_v51 = vmov 0.0  }
  0x91   :  { %3015 = vmatpush3.bf16.msra.mxu1 %v3310_v52  ;;  %v587_v52 = vcombine.high %v571_v48, %v571_v48 }
  0x92   :  { %3016 = vmatprep.subr.bf16.mxu1 %v3313_v53  ;;  %v3361_v53 = vld [vmem:[%s4200_s1 + $0x608] sm:$0xff]  }
  0x93   :  { %2995 = vmatpush3.bf16.msra.mxu0 %v3312_v54  ;;  %v3362_v54 = vld [vmem:[%s4200_s1 + $0x610] sm:$0xff]  }
  0x94   :  { %2996 = vmatprep.subr.bf16.mxu0 %v3315_v55 }
  0x95   :  { %3017 = vmatpush3.bf16.msra.mxu1 %v3314_v56 }
  0x96   :  { %3018 = vmatprep.subr.bf16.mxu1 %v3317_v57 }
  0x97   :  { %2997 = vmatpush3.bf16.msra.mxu0 %v3316_v58 }
  0x98   :  { %2998 = vmatprep.subr.bf16.mxu0 %v3319_v59 }
  0x99   :  { %3019 = vmatpush3.bf16.msra.mxu1 %v3318_v61 }
  0x9a   :  { %3020 = vmatprep.subr.bf16.mxu1 %v3321_v0 }
  0x9b   :  { %2999 = vmatpush3.bf16.msra.mxu0 %v3320_v1 }
  0x9c   :  { %3000 = vmatprep.subr.bf16.mxu0 %v3323_v4 }
  0x9d   :  { %3021 = vmatpush3.bf16.msra.mxu1 %v3322_v5 }
  0x9e   :  { %3022 = vmatprep.subr.bf16.mxu1 %v3325_v8 }
  0x9f   :  { %3001 = vmatpush3.bf16.msra.mxu0 %v3324_v9 }
  0xa0   :  { %3030 = vmatprep.subr.bf16.mxu0 %v3327_v12 }
  0xa1   :  { %3023 = vmatpush3.bf16.msra.mxu1 %v3326_v13 }
  0xa2   :  { %2182 = vmatmul.mubr.bf16.vlgmr.msra.gmra.mrb[16].mxu0 %v564_v11  ;;  %3052 = vmatprep.subr.bf16.mxu1 %v3329_v15 }
  0xa3   :  { %3031 = vmatpush3.bf16.msra.mxu0 %v3328_v16  ;;  %2261 = vmatprep.mubr.bf16.mxu0 %v585_v14 }
  0xa4   :  { %2222 = vmatmul.mubr.bf16.vlgmr.msra.gmra.mrb[16].mxu1 %v586_v17  ;;  %3032 = vmatprep.subr.bf16.mxu0 %v3331_v18 }
  0xa5   :  { %3053 = vmatpush3.bf16.msra.mxu1 %v3330_v19  ;;  %2301 = vmatprep.mubr.bf16.mxu1 %v589_v20 }
  0xa6   :  { %3054 = vmatprep.subr.bf16.mxu1 %v3333_v21 }
  0xa7   :  { %3033 = vmatpush3.bf16.msra.mxu0 %v3332_v22 }
  0xa8   :  { %3034 = vmatprep.subr.bf16.mxu0 %v3335_v23 }
  0xa9   :  { %3055 = vmatpush3.bf16.msra.mxu1 %v3334_v24 }
  0xaa   :  { %3056 = vmatprep.subr.bf16.mxu1 %v3337_v25 }
  0xab   :  { %3035 = vmatpush3.bf16.msra.mxu0 %v3336_v26 }
  0xac   :  { %3036 = vmatprep.subr.bf16.mxu0 %v3339_v27 }
  0xad   :  { %3057 = vmatpush3.bf16.msra.mxu1 %v3338_v28 }
  0xae   :  { %3058 = vmatprep.subr.bf16.mxu1 %v3341_v29 }
  0xaf   :  { %3037 = vmatpush3.bf16.msra.mxu0 %v3340_v30 }
  0xb0   :  { %3038 = vmatprep.subr.bf16.mxu0 %v3343_v31 }
  0xb1   :  { %3059 = vmatpush3.bf16.msra.mxu1 %v3342_v32 }
  0xb2   :  { %3060 = vmatprep.subr.bf16.mxu1 %v3345_v33 }
  0xb3   :  { %3039 = vmatpush3.bf16.msra.mxu0 %v3344_v34 }
  0xb4   :  { %3040 = vmatprep.subr.bf16.mxu0 %v3347_v35 }
  0xb5   :  { %3061 = vmatpush3.bf16.msra.mxu1 %v3346_v36 }
  0xb6   :  { %3062 = vmatprep.subr.bf16.mxu1 %v3349_v37 }
  0xb7   :  { %3041 = vmatpush3.bf16.msra.mxu0 %v3348_v38 }
  0xb8   :  { %3042 = vmatprep.subr.bf16.mxu0 %v3351_v39 }
  0xb9   :  { %3063 = vmatpush3.bf16.msra.mxu1 %v3350_v40 }
  0xba   :  { %3064 = vmatprep.subr.bf16.mxu1 %v3353_v42 }
  0xbb   :  { %3043 = vmatpush3.bf16.msra.mxu0 %v3352_v43 }
  0xbc   :  { %3044 = vmatprep.subr.bf16.mxu0 %v3355_v44 }
  0xbd   :  { %3065 = vmatpush3.bf16.msra.mxu1 %v3354_v45 }
  0xbe   :  { %3066 = vmatprep.subr.bf16.mxu1 %v3357_v46 }
  0xbf   :  { %3045 = vmatpush3.bf16.msra.mxu0 %v3356_v47 }
  0xc0   :  { %3101 = vmatprep.subr.bf16.mxu0 %v3409_v51 }
  0xc1   :  { %3067 = vmatpush3.bf16.msra.mxu1 %v3359_v49 }
  0xc2   :  { %2262 = vmatmul.mubr.bf16.vlgmr.msra.gmra.mrb[20].mxu0 %v571_v48  ;;  %3121 = vmatprep.subr.bf16.mxu1 %v3409_v51 }
  0xc3   :  { %3102 = vmatpush3.bf16.msra.mxu0 %v3360_v50  ;;  %3117 = vmatprep.mubr.msk.bf16.mxu0 %vm3410_vm0, %v3409_v51 }
  0xc4   :  { %2302 = vmatmul.mubr.bf16.vlgmr.msra.gmra.mrb[20].mxu1 %v587_v52  ;;  %3103 = vmatprep.subr.bf16.mxu0 %v3409_v51 }
  0xc5   :  { %3137 = vmatprep.mubr.msk.bf16.mxu1 %vm3410_vm0, %v3409_v51 }
  0xc7   :  { %3104 = vmatpush3.bf16.msra.mxu0 %v3361_v53 }
  0xc8   :  { %3105 = vmatprep.subr.bf16.mxu0 %v3409_v51 }
  0xc9   :  { %12 = vsyncpa [#allocation3], 0  ;;  %v3363_v55 = vld [vmem:[%s4200_s1 + $0x618] sm:$0xff]   ;;  %v3364_v56 = vld [vmem:[%s4200_s1 + $0x620] sm:$0xff]   ;;  %s3411_s26 = smov [#allocation2]  }
  0xca   :  { %v3365_v57 = vld [vmem:[%s4200_s1 + $0x628] sm:$0xff]   ;;  %v3366_v58 = vld [vmem:[%s4200_s1 + $0x630] sm:$0xff]   ;;  %v3367_v59 = vld [vmem:[%s4200_s1 + $0x638] sm:$0xff]   ;;  %s2582_s27 = sshll.u32 %s3411_s26, 4  ;;  %s2583_s27 = int_to_ptr.vmem [resolvable:$true] %s2582_s27 }
  0xcb   :  { %3106 = vmatpush3.bf16.msra.mxu0 %v3362_v54  ;;  %v2591_v60 = vld.sshfl [vmem:[%s4199_s0 + $0x18] sm:$0x1 pattern:$0x75316420]  ;;  %v2590_v63 = vld [vmem:[%s4201_s2] ss:$0 sm:$0xff]  ;;  %p3389_p1 = scmp.lt.s32.totalorder %s2583_s27, %s2583_s27 }
  0xcc   :  { %3107 = vmatprep.subr.bf16.mxu0 %v3409_v51  ;;  %v603_v61 = vrot.slane %v2591_v60, %v3557_v41  ;;  %v3368_v20 = vld [vmem:[%s4202_s3] sm:$0xff]   ;;  %v3369_v23 = vld [vmem:[%s4202_s3 + $0x8] sm:$0xff]   ;;  %v3370_v24 = vld [vmem:[%s4202_s3 + $0x10] sm:$0xff]  }
  0xcd   :  { %3122 = vmatpush3.bf16.msra.mxu1 %v3368_v20  ;;  %v3371_v25 = vld [vmem:[%s4202_s3 + $0x18] sm:$0xff]   ;;  %v3372_v26 = vld [vmem:[%s4202_s3 + $0x20] sm:$0xff]   ;;  %v3373_v27 = vld [vmem:[%s4202_s3 + $0x28] sm:$0xff]  }
  0xce   :  { %3123 = vmatprep.subr.bf16.mxu1 %v3409_v51  ;;  %v3374_v28 = vld [vmem:[%s4202_s3 + $0x30] sm:$0xff]   ;;  %v3375_v34 = vld [vmem:[%s4202_s3 + $0x38] sm:$0xff]   ;;  %v3376_v43 = vld [vmem:[%s4204_s5] sm:$0xff]  }
  0xcf   :  { %3108 = vmatpush3.bf16.msra.mxu0 %v3363_v55  ;;  %v3377_v44 = vld [vmem:[%s4204_s5 + $0x8] sm:$0xff]   ;;  %v3378_v45 = vld [vmem:[%s4204_s5 + $0x10] sm:$0xff]   ;;  %v3379_v46 = vld [vmem:[%s4204_s5 + $0x18] sm:$0xff]  }
  0xd0   :  { %3109 = vmatprep.subr.bf16.mxu0 %v3409_v51  ;;  %v3380_v47 = vld [vmem:[%s4204_s5 + $0x20] sm:$0xff]   ;;  %v3381_v48 = vld [vmem:[%s4204_s5 + $0x28] sm:$0xff]  }
  0xd1   :  { %3124 = vmatpush3.bf16.msra.mxu1 %v3369_v23 }
  0xd2   :  { %3125 = vmatprep.subr.bf16.mxu1 %v3409_v51 }
  0xd3   :  { %3110 = vmatpush3.bf16.msra.mxu0 %v3364_v56 }
  0xd4   :  { %3111 = vmatprep.subr.bf16.mxu0 %v3409_v51 }
  0xd5   :  { %3126 = vmatpush3.bf16.msra.mxu1 %v3370_v24 }
  0xd6   :  { %3127 = vmatprep.subr.bf16.mxu1 %v3409_v51 }
  0xd7   :  { %3112 = vmatpush3.bf16.msra.mxu0 %v3365_v57 }
  0xd8   :  { %3113 = vmatprep.subr.bf16.mxu0 %v3409_v51 }
  0xd9   :  { %3128 = vmatpush3.bf16.msra.mxu1 %v3371_v25 }
  0xda   :  { %3129 = vmatprep.subr.bf16.mxu1 %v3409_v51 }
  0xdb   :  { %3114 = vmatpush3.bf16.msra.mxu0 %v3366_v58 }
  0xdc   :  { %3115 = vmatprep.subr.bf16.mxu0 %v3409_v51 }
  0xdd   :  { %3130 = vmatpush3.bf16.msra.mxu1 %v3372_v26 }
  0xde   :  { %3131 = vmatprep.subr.bf16.mxu1 %v3409_v51 }
  0xdf   :  { %3116 = vmatpush3.bf16.msra.mxu0 %v3367_v59 }
  0xe0   :  { %3141 = vmatprep.subr.bf16.mxu0 %v3409_v51 }
  0xe1   :  { %3132 = vmatpush3.bf16.msra.mxu1 %v3373_v27 }
  0xe2   :  { %3118 = vmatmul.mubr.bf16.vlgmr.msra.gmra.mrb[24].mxu0 %v603_v61  ;;  %3133 = vmatprep.subr.bf16.mxu1 %v3409_v51 }
  0xe3   :  { %3157 = vmatprep.mubr.msk.bf16.mxu0 %vm3410_vm0, %v3409_v51  ;;  %3142 = vmatpush3.bf16.msra.mxu0 %v3376_v43 }
  0xe4   :  { %3143 = vmatprep.subr.bf16.mxu0 %v3409_v51 }
  0xe5   :  { %3134 = vmatpush3.bf16.msra.mxu1 %v3374_v28  ;;  %v3382_v28 = vld [vmem:[%s4204_s5 + $0x30] sm:$0xff]  }
  0xe6   :  { %3135 = vmatprep.subr.bf16.mxu1 %v3409_v51 }
  0xe7   :  { %3144 = vmatpush3.bf16.msra.mxu0 %v3377_v44 }
  0xe8   :  { %3145 = vmatprep.subr.bf16.mxu0 %v3409_v51 }
  0xe9   :  { %3136 = vmatpush3.bf16.msra.mxu1 %v3375_v34 }
  0xeb   :  { %3146 = vmatpush3.bf16.msra.mxu0 %v3378_v45 }
  0xec   :  { %3147 = vmatprep.subr.bf16.mxu0 %v3409_v51 }
  0xef   :  { %3148 = vmatpush3.bf16.msra.mxu0 %v3379_v46 }
  0xf0   :  { %3149 = vmatprep.subr.bf16.mxu0 %v3409_v51 }
  0xf3   :  { %3150 = vmatpush3.bf16.msra.mxu0 %v3380_v47 }
  0xf4   :  { %3151 = vmatprep.subr.bf16.mxu0 %v3409_v51 }
  0xf5   :  { %v2826_v62 = vpop.f32.mrb[0].mxu0 }
  0xf6   :  { %v2827_v0 = vpop.f32.mrb[1].mxu0 }
  0xf7   :  { %v2828_v1 = vadd.f32 %v2827_v0, %v2826_v62  ;;  %v2829_v2 = vpop.f32.mrb[2].mxu0  ;;  %v2848_v3 = vpop.f32.mrb[0].mxu1  ;;  %3152 = vmatpush3.bf16.msra.mxu0 %v3381_v48 }
  0xf8   :  { %v2830_v4 = vpop.f32.mrb[3].mxu0  ;;  %v2849_v5 = vpop.f32.mrb[1].mxu1  ;;  %3153 = vmatprep.subr.bf16.mxu0 %v3409_v51 }
  0xf9   :  { %v1864_v6 = vadd.f32 %v2828_v1, %v2590_v63  ;;  %v2850_v41 = vadd.f32 %v2849_v5, %v2848_v3  ;;  %v2851_v7 = vpop.f32.mrb[2].mxu1 }
  0xfa   :  { %v2852_v8 = vpop.f32.mrb[3].mxu1 }
  0xfb   :  { %v1904_v9 = vadd.f32 %v2850_v41, %v1864_v6  ;;  %3154 = vmatpush3.bf16.msra.mxu0 %v3382_v28 }
  0xfc   :  { %3155 = vmatprep.subr.bf16.mxu0 %v3409_v51  ;;  %v2801_v51 = vld [vmem:[%s4205_s6] ss:$0 sm:$0xff] }
 0x115   :  { %v2870_v10 = vpop.f32.mrb[4].mxu0 }
 0x116   :  { %v2871_v11 = vpop.f32.mrb[5].mxu0 }
 0x117   :  { %v2872_v12 = vadd.f32 %v2871_v11, %v2870_v10  ;;  %v2873_v13 = vpop.f32.mrb[6].mxu0  ;;  %v2892_v14 = vpop.f32.mrb[4].mxu1 }
 0x118   :  { %v2874_v15 = vpop.f32.mrb[7].mxu0  ;;  %v2893_v16 = vpop.f32.mrb[5].mxu1 }
 0x119   :  { %v1944_v17 = vadd.f32 %v2872_v12, %v1904_v9  ;;  %v2894_v18 = vadd.f32 %v2893_v16, %v2892_v14  ;;  %v2895_v19 = vpop.f32.mrb[6].mxu1 }
 0x11a   :  { %v2896_v21 = vpop.f32.mrb[7].mxu1 }
 0x11b   :  { %v1984_v22 = vadd.f32 %v2894_v18, %v1944_v17 }
 0x135   :  { %v2914_v29 = vpop.f32.mrb[8].mxu0 }
 0x136   :  { %v2915_v30 = vpop.f32.mrb[9].mxu0 }
 0x137   :  { %v2916_v31 = vadd.f32 %v2915_v30, %v2914_v29  ;;  %v2917_v32 = vpop.f32.mrb[10].mxu0  ;;  %v2936_v33 = vpop.f32.mrb[8].mxu1  ;;  %v3383_v29 = vld [vmem:[%s4204_s5 + $0x38] sm:$0xff]   ;;  %v2792_v30 = vld [vmem:[%s4203_s4] ss:$0 sm:$0xff]  ;;  %s3384_s4 = scalar_lea.vmem %s2583_s27, 32 }
 0x138   :  { %v2918_v35 = vpop.f32.mrb[11].mxu0  ;;  %v2937_v36 = vpop.f32.mrb[9].mxu1  ;;  %3156 = vmatpush3.bf16.msra.mxu0 %v3383_v29  ;;  %p3385_p0 = scmp.ne.s32.totalorder %s2583_s27, %s3384_s4  ;;  %p3390_p2 = scmp.lt.s32.totalorder %s3384_s4, %s3384_s4 }
 0x139   :  { %v2024_v37 = vadd.f32 %v2916_v31, %v1984_v22  ;;  %v2938_v38 = vadd.f32 %v2937_v36, %v2936_v33  ;;  %v2939_v39 = vpop.f32.mrb[10].mxu1 }
 0x13a   :  { %v2940_v40 = vpop.f32.mrb[11].mxu1  ;;  %p3391_p3 = por %p3390_p2, %p3389_p1 }
 0x13b   :  { %v2064_v42 = vadd.f32 %v2938_v38, %v2024_v37 }
 0x13c   :  { %p3392_p4 = pnand %p3391_p3, %p3385_p0 }
 0x155   :  { %v2958_v49 = vpop.f32.mrb[12].mxu0 }
 0x156   :  { %v2959_v50 = vpop.f32.mrb[13].mxu0 }
 0x157   :  { %v2960_v52 = vadd.f32 %v2959_v50, %v2958_v49  ;;  %v2961_v53 = vpop.f32.mrb[14].mxu0  ;;  %v2980_v54 = vpop.f32.mrb[12].mxu1 }
 0x158   :  { %v2962_v55 = vpop.f32.mrb[15].mxu0  ;;  %v2981_v56 = vpop.f32.mrb[13].mxu1 }
 0x159   :  { %v2104_v57 = vadd.f32 %v2960_v52, %v2064_v42  ;;  %v2982_v58 = vadd.f32 %v2981_v56, %v2980_v54  ;;  %v2983_v59 = vpop.f32.mrb[14].mxu1 }
 0x15a   :  { %v2984_v60 = vpop.f32.mrb[15].mxu1 }
 0x15b   :  { %v2144_v61 = vadd.f32 %v2982_v58, %v2104_v57 }
 0x175   :  { %v3002_v62 = vpop.f32.mrb[16].mxu0 }
 0x176   :  { %v3003_v63 = vpop.f32.mrb[17].mxu0 }
 0x177   :  { %v3004_v0 = vadd.f32 %v3003_v63, %v3002_v62  ;;  %v3005_v1 = vpop.f32.mrb[18].mxu0  ;;  %v3024_v2 = vpop.f32.mrb[16].mxu1 }
 0x178   :  { %v3006_v3 = vpop.f32.mrb[19].mxu0  ;;  %v3025_v4 = vpop.f32.mrb[17].mxu1 }
 0x179   :  { %v2184_v5 = vadd.f32 %v3004_v0, %v2144_v61  ;;  %v3026_v6 = vadd.f32 %v3025_v4, %v3024_v2  ;;  %v3027_v41 = vpop.f32.mrb[18].mxu1 }
 0x17a   :  { %v3028_v7 = vpop.f32.mrb[19].mxu1 }
 0x17b   :  { %v2224_v8 = vadd.f32 %v3026_v6, %v2184_v5 }
 0x195   :  { %v3046_v9 = vpop.f32.mrb[20].mxu0 }
 0x196   :  { %v3047_v10 = vpop.f32.mrb[21].mxu0 }
 0x197   :  { %v3048_v11 = vadd.f32 %v3047_v10, %v3046_v9  ;;  %v3049_v12 = vpop.f32.mrb[22].mxu0  ;;  %v3068_v13 = vpop.f32.mrb[20].mxu1 }
 0x198   :  { %v3050_v14 = vpop.f32.mrb[23].mxu0  ;;  %v3069_v15 = vpop.f32.mrb[21].mxu1 }
 0x199   :  { %v2264_v16 = vadd.f32 %v3048_v11, %v2224_v8  ;;  %v3070_v17 = vadd.f32 %v3069_v15, %v3068_v13  ;;  %v3071_v18 = vpop.f32.mrb[22].mxu1 }
 0x19a   :  { %v3072_v19 = vpop.f32.mrb[23].mxu1 }
 0x19b   :  { %v2304_v20 = vadd.f32 %v3070_v17, %v2264_v16 }
 0x1b5   :  { %v2343_v21 = vpop.f32.mrb[24].mxu0 }
 0x1b6   :  { %v2344_v22 = vadd.f32 %v2343_v21, %v2304_v20  ;;  %v3119_v23 = vpop.f32.mrb[25].mxu0 }
 0x1b7   :  { %v2346_v24 = vpop.f32.mrb[26].mxu0 }
 0x1b8   :  { %v2349_v25 = vmax.f32 %v2344_v22, 0.0  ;;  %v3120_v26 = vpop.f32.mrb[27].mxu0 }
 0x1ba   :  { %v2350_v27 = vpack.c.bf16 %v2349_v25, %v2349_v25 }
 0x1bc   :  { %3138 = vmatmul.mubr.bf16.vlgmr.msra.gmra.mrb[24].mxu1 %v2350_v27 }
 0x28f   :  { %v2456_v31 = vpop.f32.mrb[24].mxu1 }
 0x290   :  { %v2457_v32 = vadd.f32 %v2792_v30, %v2456_v31  ;;  %v3139_v33 = vpop.f32.mrb[25].mxu1 }
 0x291   :  { %v2459_v34 = vpop.f32.mrb[26].mxu1 }
 0x292   :  { %v2462_v35 = vmax.f32 %v2457_v32, 0.0  ;;  %v3140_v36 = vpop.f32.mrb[27].mxu1 }
 0x294   :  { %v2463_v37 = vpack.c.bf16 %v2462_v35, %v2462_v35 }
 0x296   :  { %3158 = vmatmul.mubr.bf16.vlgmr.msra.gmra.mrb[28].mxu0 %v2463_v37 }
 0x369   :  { %v2569_v38 = vpop.f32.mrb[28].mxu0 }
 0x36a   :  { %v2570_v39 = vadd.f32 %v2801_v51, %v2569_v38  ;;  %v3159_v40 = vpop.f32.mrb[29].mxu0 }
 0x36b   :  { %v2572_v42 = vpop.f32.mrb[30].mxu0 }
 0x36c   :  { %2575 = vst [vmem:[#allocation2] sm:$0x3] %v2570_v39  ;;  %v3160_v43 = vpop.f32.mrb[31].mxu0 }
 0x36d   :  { %3395 = shalt.err (!%p3392_p4)
}
 0x36e   :  { %s3396_s6 = scalar_lea.hbm %s4206_s7, 32 }
 0x36f   :  { %p3397_p5 = scmp.ne.s32.totalorder %s4206_s7, %s3396_s6  ;;  %p3400_p6 = scmp.lt.u32.totalorder %s3396_s6, %s4206_s7 }
 0x371   :  { %p3402_p7 = pnand %p3400_p6, %p3397_p5 }
 0x373   :  { %3405 = shalt.err (!%p3402_p7)
}
 0x374   :  { %2585 = dma.vmem_to_hbm [thread:$0]  %s2583_s27, 32, %s4206_s7, [#allocation3]  }
 0x375   :  { %3406 = dma.done.wait [#allocation3], 32  }
 0x376   :  { %3407 = vsyncadd [#allocation3], 4294967264 }
 0x377   :  { %2589 = vsyncpa [#allocation3], 1 }

</bundles_post_ra>
